<compile_context>
chip_gen: v6e
topology: v6e:2x2x1
jax: 0.10.0
libtpu: 0.0.40
codegen_flags: <defaults>
</compile_context>

<pallas_src>
import functools

import jax
import jax.numpy as jnp
from jax import lax
from jax.experimental import pallas as pl
from jax.experimental.pallas import tpu as pltpu


def _round_up(x, m):
    return (x + m - 1) // m * m


def _fused_generator_kernel(x_ref, w1_ref, b1_ref, w2_ref, b2_ref,
                            w3_ref, b3_ref, o_ref, s2, s3,
                            *, W, W2p, B, M, PL):
    # x_ref : (1, Cin, PL)      flat zero-padded input, pixel (i,j) at lane B+i*W2p+j
    # wK_ref: (9, Cout, Cin)    3x3 weights, per-tap transposed
    # bK_ref: (Cout, 1)
    # o_ref : (1, nc_out, M)    lane-dense NCHW-flat output (wrapper drops halo cols)
    # s2/s3 : (ngf, PL)         flat zero-padded activation scratches in VMEM
    #
    # With the flat padded layout every one of the 9 taps is a *contiguous lane
    # slice* of the activation, feeding an accumulating f32 MXU matmul.
    taps = [B - W2p - 1 + dy * W2p + dx for dy in range(3) for dx in range(3)]

    # Hoisted validity mask over the M computed columns: column g is a real
    # pixel iff (g % W2p) < W; the other columns are in-row halo positions that
    # must be stored as exact zeros (they act as left/right conv padding).
    col = lax.broadcasted_iota(jnp.int32, (1, M), 1) % W2p
    valid = col < W                                              # (1, M) bool

    def conv3x3(src, w_ref, b_ref):
        # src: (Cin, PL) value; 9 back-to-back accumulating dots, one accumulator.
        acc = jnp.dot(w_ref[0], src[:, taps[0]:taps[0] + M],
                      preferred_element_type=jnp.float32)
        for t in range(1, 9):
            o = taps[t]
            acc = acc + jnp.dot(w_ref[t], src[:, o:o + M],
                                preferred_element_type=jnp.float32)
        return acc + b_ref[...]                                  # (Cout, M)

    def pad_full(y):
        # Place the masked activation at lanes [B, B+M) of a full-width row.
        # The single full-width aligned store below both writes the data and
        # re-zeros every halo lane (prefix, suffix, in-row) each grid step --
        # no separate scratch zeroing needed.
        c = y.shape[0]
        return jnp.concatenate(
            [jnp.zeros((c, B), y.dtype), y,
             jnp.zeros((c, PL - B - M), y.dtype)], axis=1)

    # ---- layer 1: conv3x3 + ReLU --------------------------------------------
    y = conv3x3(x_ref[0], w1_ref, b1_ref)
    y = jnp.where(valid, jnp.maximum(y, 0.0), 0.0)
    s2[:, :] = pad_full(y)

    # ---- layer 2: conv3x3 + ReLU --------------------------------------------
    y = conv3x3(s2[:, :], w2_ref, b2_ref)
    y = jnp.where(valid, jnp.maximum(y, 0.0), 0.0)
    s3[:, :] = pad_full(y)

    # ---- layer 3: conv3x3 + tanh, lane-dense NCHW-direct output --------------
    y = jnp.tanh(conv3x3(s3[:, :], w3_ref, b3_ref))              # (nc_out, M)
    o_ref[0] = y.astype(o_ref.dtype)


@jax.jit
def generator_forward(x_nchw, params):
    """Equivalent of Generator.forward(input): NCHW in -> NCHW out."""
    x = x_nchw.astype(jnp.float32)
    N, nc, H, W = x.shape
    ngf = params["w1"].shape[-1]
    nc_out = params["w3"].shape[-1]

    W2p = _round_up(W + 2, 8)               # padded row pitch (384 lanes for 16x16)
    M = H * W2p                             # computed lanes per conv
    B = _round_up(W2p + 1, 8)               # lane offset of pixel (0, 0)
    PL = _round_up(B + W2p + 1 + M, 8)      # padded-activation lane width (reads stay in-bounds)

    # NCHW -> flat padded (channels, lanes) layout: pads + reshape only,
    # no transpose pass, and no in-kernel input placement stores.
    xp = jnp.pad(x, ((0, 0), (0, 0), (0, 0), (0, W2p - W)))      # zero halo columns
    xp = jnp.pad(xp.reshape(N, nc, M), ((0, 0), (0, 0), (B, PL - B - M)))

    # HWIO (3,3,Ci,Co) -> per-tap transposed (9, Co, Ci); free wrapper reshapes.
    def prep_w(w):
        kh, kw, ci, co = w.shape
        return jnp.transpose(w, (0, 1, 3, 2)).reshape(kh * kw, co, ci)

    w1 = prep_w(params["w1"])
    w2 = prep_w(params["w2"])
    w3 = prep_w(params["w3"])
    b1 = params["b1"].reshape(ngf, 1)
    b2 = params["b2"].reshape(ngf, 1)
    b3 = params["b3"].reshape(nc_out, 1)

    kernel = functools.partial(_fused_generator_kernel,
                               W=W, W2p=W2p, B=B, M=M, PL=PL)
    out_flat = pl.pallas_call(
        kernel,
        out_shape=jax.ShapeDtypeStruct((N, nc_out, M), jnp.float32),
        grid_spec=pltpu.PrefetchScalarGridSpec(
            num_scalar_prefetch=0,
            grid=(N,),
            in_specs=[
                pl.BlockSpec((1, nc, PL), lambda n: (n, 0, 0)),
                pl.BlockSpec((9, ngf, nc), lambda n: (0, 0, 0)),
                pl.BlockSpec((ngf, 1), lambda n: (0, 0)),
                pl.BlockSpec((9, ngf, ngf), lambda n: (0, 0, 0)),
                pl.BlockSpec((ngf, 1), lambda n: (0, 0)),
                pl.BlockSpec((9, nc_out, ngf), lambda n: (0, 0, 0)),
                pl.BlockSpec((nc_out, 1), lambda n: (0, 0)),
            ],
            out_specs=pl.BlockSpec((1, nc_out, M), lambda n: (n, 0, 0)),
            scratch_shapes=[
                pltpu.VMEM((ngf, PL), jnp.float32),
                pltpu.VMEM((ngf, PL), jnp.float32),
            ],
        ),
        compiler_params=pltpu.CompilerParams(
            dimension_semantics=("parallel",),
            vmem_limit_bytes=32 * 1024 * 1024,
        ),
    )(xp, w1, b1, w2, b2, w3, b3)

    # Drop the in-row halo columns; result is already NCHW (no transpose pass).
    return out_flat.reshape(N, nc_out, H, W2p)[:, :, :, :W]


def init_generator_params(key, nc=4, ngf=32):
    """Deterministic parameter init (PyTorch conv weight layout OIHW -> HWIO)."""
    ks = jax.random.split(key, 6)

    def conv_init(kw, kb, cin, cout):
        w_oihw = 0.05 * jax.random.normal(kw, (cout, cin, 3, 3), jnp.float32)
        w_hwio = jnp.transpose(w_oihw, (2, 3, 1, 0))  # (kH, kW, Cin, Cout)
        b = 0.02 * jax.random.normal(kb, (cout,), jnp.float32)
        return w_hwio, b

    w1, b1 = conv_init(ks[0], ks[1], nc, ngf)
    w2, b2 = conv_init(ks[2], ks[3], ngf, ngf)
    w3, b3 = conv_init(ks[4], ks[5], ngf, nc)
    return {"w1": w1, "b1": b1, "w2": w2, "b2": b2, "w3": w3, "b3": b3}


def _reference_forward(x_nchw, params):
    """Pure-JAX reference (lax conv, NCHW) for correctness checking."""
    x = x_nchw.astype(jnp.float32)

    def conv(h, w, b):
        y = lax.conv_general_dilated(
            h, w, window_strides=(1, 1), padding="SAME",
            dimension_numbers=("NCHW", "HWIO", "NCHW"),
        )
        return y + b.reshape(1, -1, 1, 1)

    h = jax.nn.relu(conv(x, params["w1"], params["b1"]))
    h = jax.nn.relu(conv(h, params["w2"], params["b2"]))
    return jnp.tanh(conv(h, params["w3"], params["b3"]))


if __name__ == "__main__":
    key = jax.random.PRNGKey(0)
    k_x, k_p = jax.random.split(key)

    N, NC, H, W = 2, 4, 16, 16
    x = jax.random.normal(k_x, (N, NC, H, W), jnp.float32)   # NCHW, like PyTorch
    params = init_generator_params(k_p, nc=NC, ngf=32)

    out = jax.block_until_ready(generator_forward(x, params))
    ref = jax.block_until_ready(_reference_forward(x, params))

    assert out.shape == (N, NC, H, W), out.shape
    err = float(jnp.max(jnp.abs(out - ref)))
    assert err < 1e-4, err

    print("KERNEL_OK")
</pallas_src>

<mosaic_0001>
module attributes {stable_mosaic.version = 11 : i64} {
  func.func @_fused_generator_kernel(%arg0: i32, %arg1: memref<1x4x448xf32, #tpu.memory_space<vmem>>, %arg2: memref<9x32x4xf32, #tpu.memory_space<vmem>>, %arg3: memref<32x1xf32, #tpu.memory_space<vmem>>, %arg4: memref<9x32x32xf32, #tpu.memory_space<vmem>>, %arg5: memref<32x1xf32, #tpu.memory_space<vmem>>, %arg6: memref<9x4x32xf32, #tpu.memory_space<vmem>>, %arg7: memref<4x1xf32, #tpu.memory_space<vmem>>, %arg8: memref<1x4x384xf32, #tpu.memory_space<vmem>>, %arg9: memref<32x448xf32, #tpu.memory_space<vmem>>, %arg10: memref<32x448xf32, #tpu.memory_space<vmem>>) attributes {dimension_semantics = [#tpu.dimension_semantics<parallel>], iteration_bounds = array<i64: 2>, scalar_prefetch = 0 : i64, scratch_operands = 2 : i64, tpu.core_type = #tpu.core_type<tc>, window_params = [{transform_indices = @transform_0, window_bounds = array<i64: 1, 4, 448>}, {pipeline_mode = #tpu.pipeline_mode<synchronous>, transform_indices = @transform_1, window_bounds = array<i64: 9, 32, 4>}, {pipeline_mode = #tpu.pipeline_mode<synchronous>, transform_indices = @transform_2, window_bounds = array<i64: 32, 1>}, {pipeline_mode = #tpu.pipeline_mode<synchronous>, transform_indices = @transform_3, window_bounds = array<i64: 9, 32, 32>}, {pipeline_mode = #tpu.pipeline_mode<synchronous>, transform_indices = @transform_4, window_bounds = array<i64: 32, 1>}, {pipeline_mode = #tpu.pipeline_mode<synchronous>, transform_indices = @transform_5, window_bounds = array<i64: 9, 4, 32>}, {pipeline_mode = #tpu.pipeline_mode<synchronous>, transform_indices = @transform_6, window_bounds = array<i64: 4, 1>}, {transform_indices = @transform_7, window_bounds = array<i64: 1, 4, 384>}]} {
    %0 = tpu.iota {dimensions = array<i32: 1>} : vector<1x384xi32>
    %c24_i32 = arith.constant 24 : i32
    %c0_i32 = arith.constant 0 : i32
    %1 = arith.cmpi eq, %c24_i32, %c0_i32 : i32
    %c1_i32 = arith.constant 1 : i32
    %2 = arith.select %1, %c1_i32, %c24_i32 : i32
    %3 = vector.broadcast %2 : i32 to vector<1x384xi32>
    %4 = arith.remsi %0, %3 : vector<1x384xi32>
    %c0_i32_0 = arith.constant 0 : i32
    %5 = vector.broadcast %c0_i32_0 : i32 to vector<1x384xi32>
    %6 = arith.cmpi ne, %4, %5 : vector<1x384xi32>
    %c0_i32_1 = arith.constant 0 : i32
    %7 = vector.broadcast %c0_i32_1 : i32 to vector<1x384xi32>
    %8 = arith.cmpi slt, %4, %7 : vector<1x384xi32>
    %c0_i32_2 = arith.constant 0 : i32
    %9 = arith.cmpi slt, %2, %c0_i32_2 : i32
    %10 = vector.broadcast %9 : i1 to vector<1x384xi1>
    %11 = vector.broadcast %10 : vector<1x384xi1> to vector<1x384xi1>
    %12 = arith.xori %8, %11 : vector<1x384xi1>
    %13 = arith.andi %12, %6 : vector<1x384xi1>
    %14 = vector.broadcast %2 : i32 to vector<1x384xi32>
    %15 = arith.addi %4, %14 : vector<1x384xi32>
    %16 = arith.select %13, %15, %4 : vector<1x384xi1>, vector<1x384xi32>
    %c16_i32 = arith.constant 16 : i32
    %17 = vector.broadcast %c16_i32 : i32 to vector<1x384xi32>
    %18 = arith.cmpi slt, %16, %17 : vector<1x384xi32>
    %c0 = arith.constant 0 : index
    %c0_3 = arith.constant 0 : index
    %c0_4 = arith.constant 0 : index
    %19 = vector.load %arg1[%c0, %c0_3, %c0_4] : memref<1x4x448xf32, #tpu.memory_space<vmem>>, vector<1x4x448xf32>
    %20 = vector.shape_cast %19 : vector<1x4x448xf32> to vector<4x448xf32>
    %c0_5 = arith.constant 0 : index
    %c0_6 = arith.constant 0 : index
    %c0_7 = arith.constant 0 : index
    %21 = vector.load %arg2[%c0_5, %c0_6, %c0_7] : memref<9x32x4xf32, #tpu.memory_space<vmem>>, vector<1x32x4xf32>
    %22 = vector.shape_cast %21 : vector<1x32x4xf32> to vector<32x4xf32>
    %23 = vector.extract_strided_slice %20 {offsets = [0, 7], sizes = [4, 384], strides = [1, 1]} : vector<4x448xf32> to vector<4x384xf32>
    %cst = arith.constant dense<0.000000e+00> : vector<32x384xf32>
    %24 = tpu.matmul %22, %23, %cst {dimension_numbers = #tpu.dot_dimension_numbers<[1], [0], [0], [1], [0, 0, 1, 1], [], []>} : vector<32x4xf32>, vector<4x384xf32>, vector<32x384xf32> -> vector<32x384xf32>
    %c1 = arith.constant 1 : index
    %c0_8 = arith.constant 0 : index
    %c0_9 = arith.constant 0 : index
    %25 = vector.load %arg2[%c1, %c0_8, %c0_9] : memref<9x32x4xf32, #tpu.memory_space<vmem>>, vector<1x32x4xf32>
    %26 = vector.shape_cast %25 : vector<1x32x4xf32> to vector<32x4xf32>
    %27 = vector.extract_strided_slice %20 {offsets = [0, 8], sizes = [4, 384], strides = [1, 1]} : vector<4x448xf32> to vector<4x384xf32>
    %cst_10 = arith.constant dense<0.000000e+00> : vector<32x384xf32>
    %28 = tpu.matmul %26, %27, %cst_10 {dimension_numbers = #tpu.dot_dimension_numbers<[1], [0], [0], [1], [0, 0, 1, 1], [], []>} : vector<32x4xf32>, vector<4x384xf32>, vector<32x384xf32> -> vector<32x384xf32>
    %29 = arith.addf %24, %28 : vector<32x384xf32>
    %c2 = arith.constant 2 : index
    %c0_11 = arith.constant 0 : index
    %c0_12 = arith.constant 0 : index
    %30 = vector.load %arg2[%c2, %c0_11, %c0_12] : memref<9x32x4xf32, #tpu.memory_space<vmem>>, vector<1x32x4xf32>
    %31 = vector.shape_cast %30 : vector<1x32x4xf32> to vector<32x4xf32>
    %32 = vector.extract_strided_slice %20 {offsets = [0, 9], sizes = [4, 384], strides = [1, 1]} : vector<4x448xf32> to vector<4x384xf32>
    %cst_13 = arith.constant dense<0.000000e+00> : vector<32x384xf32>
    %33 = tpu.matmul %31, %32, %cst_13 {dimension_numbers = #tpu.dot_dimension_numbers<[1], [0], [0], [1], [0, 0, 1, 1], [], []>} : vector<32x4xf32>, vector<4x384xf32>, vector<32x384xf32> -> vector<32x384xf32>
    %34 = arith.addf %29, %33 : vector<32x384xf32>
    %c3 = arith.constant 3 : index
    %c0_14 = arith.constant 0 : index
    %c0_15 = arith.constant 0 : index
    %35 = vector.load %arg2[%c3, %c0_14, %c0_15] : memref<9x32x4xf32, #tpu.memory_space<vmem>>, vector<1x32x4xf32>
    %36 = vector.shape_cast %35 : vector<1x32x4xf32> to vector<32x4xf32>
    %37 = vector.extract_strided_slice %20 {offsets = [0, 31], sizes = [4, 384], strides = [1, 1]} : vector<4x448xf32> to vector<4x384xf32>
    %cst_16 = arith.constant dense<0.000000e+00> : vector<32x384xf32>
    %38 = tpu.matmul %36, %37, %cst_16 {dimension_numbers = #tpu.dot_dimension_numbers<[1], [0], [0], [1], [0, 0, 1, 1], [], []>} : vector<32x4xf32>, vector<4x384xf32>, vector<32x384xf32> -> vector<32x384xf32>
    %39 = arith.addf %34, %38 : vector<32x384xf32>
    %c4 = arith.constant 4 : index
    %c0_17 = arith.constant 0 : index
    %c0_18 = arith.constant 0 : index
    %40 = vector.load %arg2[%c4, %c0_17, %c0_18] : memref<9x32x4xf32, #tpu.memory_space<vmem>>, vector<1x32x4xf32>
    %41 = vector.shape_cast %40 : vector<1x32x4xf32> to vector<32x4xf32>
    %42 = vector.extract_strided_slice %20 {offsets = [0, 32], sizes = [4, 384], strides = [1, 1]} : vector<4x448xf32> to vector<4x384xf32>
    %cst_19 = arith.constant dense<0.000000e+00> : vector<32x384xf32>
    %43 = tpu.matmul %41, %42, %cst_19 {dimension_numbers = #tpu.dot_dimension_numbers<[1], [0], [0], [1], [0, 0, 1, 1], [], []>} : vector<32x4xf32>, vector<4x384xf32>, vector<32x384xf32> -> vector<32x384xf32>
    %44 = arith.addf %39, %43 : vector<32x384xf32>
    %c5 = arith.constant 5 : index
    %c0_20 = arith.constant 0 : index
    %c0_21 = arith.constant 0 : index
    %45 = vector.load %arg2[%c5, %c0_20, %c0_21] : memref<9x32x4xf32, #tpu.memory_space<vmem>>, vector<1x32x4xf32>
    %46 = vector.shape_cast %45 : vector<1x32x4xf32> to vector<32x4xf32>
    %47 = vector.extract_strided_slice %20 {offsets = [0, 33], sizes = [4, 384], strides = [1, 1]} : vector<4x448xf32> to vector<4x384xf32>
    %cst_22 = arith.constant dense<0.000000e+00> : vector<32x384xf32>
    %48 = tpu.matmul %46, %47, %cst_22 {dimension_numbers = #tpu.dot_dimension_numbers<[1], [0], [0], [1], [0, 0, 1, 1], [], []>} : vector<32x4xf32>, vector<4x384xf32>, vector<32x384xf32> -> vector<32x384xf32>
    %49 = arith.addf %44, %48 : vector<32x384xf32>
    %c6 = arith.constant 6 : index
    %c0_23 = arith.constant 0 : index
    %c0_24 = arith.constant 0 : index
    %50 = vector.load %arg2[%c6, %c0_23, %c0_24] : memref<9x32x4xf32, #tpu.memory_space<vmem>>, vector<1x32x4xf32>
    %51 = vector.shape_cast %50 : vector<1x32x4xf32> to vector<32x4xf32>
    %52 = vector.extract_strided_slice %20 {offsets = [0, 55], sizes = [4, 384], strides = [1, 1]} : vector<4x448xf32> to vector<4x384xf32>
    %cst_25 = arith.constant dense<0.000000e+00> : vector<32x384xf32>
    %53 = tpu.matmul %51, %52, %cst_25 {dimension_numbers = #tpu.dot_dimension_numbers<[1], [0], [0], [1], [0, 0, 1, 1], [], []>} : vector<32x4xf32>, vector<4x384xf32>, vector<32x384xf32> -> vector<32x384xf32>
    %54 = arith.addf %49, %53 : vector<32x384xf32>
    %c7 = arith.constant 7 : index
    %c0_26 = arith.constant 0 : index
    %c0_27 = arith.constant 0 : index
    %55 = vector.load %arg2[%c7, %c0_26, %c0_27] : memref<9x32x4xf32, #tpu.memory_space<vmem>>, vector<1x32x4xf32>
    %56 = vector.shape_cast %55 : vector<1x32x4xf32> to vector<32x4xf32>
    %57 = vector.extract_strided_slice %20 {offsets = [0, 56], sizes = [4, 384], strides = [1, 1]} : vector<4x448xf32> to vector<4x384xf32>
    %cst_28 = arith.constant dense<0.000000e+00> : vector<32x384xf32>
    %58 = tpu.matmul %56, %57, %cst_28 {dimension_numbers = #tpu.dot_dimension_numbers<[1], [0], [0], [1], [0, 0, 1, 1], [], []>} : vector<32x4xf32>, vector<4x384xf32>, vector<32x384xf32> -> vector<32x384xf32>
    %59 = arith.addf %54, %58 : vector<32x384xf32>
    %c8 = arith.constant 8 : index
    %c0_29 = arith.constant 0 : index
    %c0_30 = arith.constant 0 : index
    %60 = vector.load %arg2[%c8, %c0_29, %c0_30] : memref<9x32x4xf32, #tpu.memory_space<vmem>>, vector<1x32x4xf32>
    %61 = vector.shape_cast %60 : vector<1x32x4xf32> to vector<32x4xf32>
    %62 = vector.extract_strided_slice %20 {offsets = [0, 57], sizes = [4, 384], strides = [1, 1]} : vector<4x448xf32> to vector<4x384xf32>
    %cst_31 = arith.constant dense<0.000000e+00> : vector<32x384xf32>
    %63 = tpu.matmul %61, %62, %cst_31 {dimension_numbers = #tpu.dot_dimension_numbers<[1], [0], [0], [1], [0, 0, 1, 1], [], []>} : vector<32x4xf32>, vector<4x384xf32>, vector<32x384xf32> -> vector<32x384xf32>
    %64 = arith.addf %59, %63 : vector<32x384xf32>
    %c0_32 = arith.constant 0 : index
    %c0_33 = arith.constant 0 : index
    %65 = vector.load %arg3[%c0_32, %c0_33] : memref<32x1xf32, #tpu.memory_space<vmem>>, vector<32x1xf32>
    %66 = vector.broadcast %65 : vector<32x1xf32> to vector<32x384xf32>
    %67 = arith.addf %64, %66 : vector<32x384xf32>
    %cst_34 = arith.constant 0.000000e+00 : f32
    %68 = vector.broadcast %cst_34 : f32 to vector<32x384xf32>
    %69 = arith.maximumf %67, %68 : vector<32x384xf32>
    %cst_35 = arith.constant 0.000000e+00 : f32
    %70 = vector.shape_cast %18 : vector<1x384xi1> to vector<1x384xi1>
    %71 = vector.broadcast %70 : vector<1x384xi1> to vector<32x384xi1>
    %72 = vector.broadcast %cst_35 : f32 to vector<32x384xf32>
    %73 = arith.select %71, %69, %72 : vector<32x384xi1>, vector<32x384xf32>
    %cst_36 = arith.constant 0.000000e+00 : f32
    %74 = vector.broadcast %cst_36 : f32 to vector<32x32xf32>
    %cst_37 = arith.constant 0.000000e+00 : f32
    %75 = vector.broadcast %cst_37 : f32 to vector<32x32xf32>
    %76 = tpu.concatenate %74, %73, %75 in 1 : vector<32x32xf32>, vector<32x384xf32>, vector<32x32xf32> -> vector<32x448xf32>
    %c0_38 = arith.constant 0 : index
    %c0_39 = arith.constant 0 : index
    %77 = vector.load %arg9[%c0_38, %c0_39] : memref<32x448xf32, #tpu.memory_space<vmem>>, vector<32x448xf32>
    tpu.vector_store %arg9[%c0_38, %c0_39], %76 {strides = array<i32>} : memref<32x448xf32, #tpu.memory_space<vmem>>, vector<32x448xf32>,
    %c0_40 = arith.constant 0 : index
    %c0_41 = arith.constant 0 : index
    %78 = vector.load %arg9[%c0_40, %c0_41] : memref<32x448xf32, #tpu.memory_space<vmem>>, vector<32x448xf32>
    %c0_42 = arith.constant 0 : index
    %c0_43 = arith.constant 0 : index
    %c0_44 = arith.constant 0 : index
    %79 = vector.load %arg4[%c0_42, %c0_43, %c0_44] : memref<9x32x32xf32, #tpu.memory_space<vmem>>, vector<1x32x32xf32>
    %80 = vector.shape_cast %79 : vector<1x32x32xf32> to vector<32x32xf32>
    %81 = vector.extract_strided_slice %78 {offsets = [0, 7], sizes = [32, 384], strides = [1, 1]} : vector<32x448xf32> to vector<32x384xf32>
    %cst_45 = arith.constant dense<0.000000e+00> : vector<32x384xf32>
    %82 = tpu.matmul %80, %81, %cst_45 {dimension_numbers = #tpu.dot_dimension_numbers<[1], [0], [0], [1], [0, 0, 1, 1], [], []>} : vector<32x32xf32>, vector<32x384xf32>, vector<32x384xf32> -> vector<32x384xf32>
    %c1_46 = arith.constant 1 : index
    %c0_47 = arith.constant 0 : index
    %c0_48 = arith.constant 0 : index
    %83 = vector.load %arg4[%c1_46, %c0_47, %c0_48] : memref<9x32x32xf32, #tpu.memory_space<vmem>>, vector<1x32x32xf32>
    %84 = vector.shape_cast %83 : vector<1x32x32xf32> to vector<32x32xf32>
    %85 = vector.extract_strided_slice %78 {offsets = [0, 8], sizes = [32, 384], strides = [1, 1]} : vector<32x448xf32> to vector<32x384xf32>
    %cst_49 = arith.constant dense<0.000000e+00> : vector<32x384xf32>
    %86 = tpu.matmul %84, %85, %cst_49 {dimension_numbers = #tpu.dot_dimension_numbers<[1], [0], [0], [1], [0, 0, 1, 1], [], []>} : vector<32x32xf32>, vector<32x384xf32>, vector<32x384xf32> -> vector<32x384xf32>
    %87 = arith.addf %82, %86 : vector<32x384xf32>
    %c2_50 = arith.constant 2 : index
    %c0_51 = arith.constant 0 : index
    %c0_52 = arith.constant 0 : index
    %88 = vector.load %arg4[%c2_50, %c0_51, %c0_52] : memref<9x32x32xf32, #tpu.memory_space<vmem>>, vector<1x32x32xf32>
    %89 = vector.shape_cast %88 : vector<1x32x32xf32> to vector<32x32xf32>
    %90 = vector.extract_strided_slice %78 {offsets = [0, 9], sizes = [32, 384], strides = [1, 1]} : vector<32x448xf32> to vector<32x384xf32>
    %cst_53 = arith.constant dense<0.000000e+00> : vector<32x384xf32>
    %91 = tpu.matmul %89, %90, %cst_53 {dimension_numbers = #tpu.dot_dimension_numbers<[1], [0], [0], [1], [0, 0, 1, 1], [], []>} : vector<32x32xf32>, vector<32x384xf32>, vector<32x384xf32> -> vector<32x384xf32>
    %92 = arith.addf %87, %91 : vector<32x384xf32>
    %c3_54 = arith.constant 3 : index
    %c0_55 = arith.constant 0 : index
    %c0_56 = arith.constant 0 : index
    %93 = vector.load %arg4[%c3_54, %c0_55, %c0_56] : memref<9x32x32xf32, #tpu.memory_space<vmem>>, vector<1x32x32xf32>
    %94 = vector.shape_cast %93 : vector<1x32x32xf32> to vector<32x32xf32>
    %95 = vector.extract_strided_slice %78 {offsets = [0, 31], sizes = [32, 384], strides = [1, 1]} : vector<32x448xf32> to vector<32x384xf32>
    %cst_57 = arith.constant dense<0.000000e+00> : vector<32x384xf32>
    %96 = tpu.matmul %94, %95, %cst_57 {dimension_numbers = #tpu.dot_dimension_numbers<[1], [0], [0], [1], [0, 0, 1, 1], [], []>} : vector<32x32xf32>, vector<32x384xf32>, vector<32x384xf32> -> vector<32x384xf32>
    %97 = arith.addf %92, %96 : vector<32x384xf32>
    %c4_58 = arith.constant 4 : index
    %c0_59 = arith.constant 0 : index
    %c0_60 = arith.constant 0 : index
    %98 = vector.load %arg4[%c4_58, %c0_59, %c0_60] : memref<9x32x32xf32, #tpu.memory_space<vmem>>, vector<1x32x32xf32>
    %99 = vector.shape_cast %98 : vector<1x32x32xf32> to vector<32x32xf32>
    %100 = vector.extract_strided_slice %78 {offsets = [0, 32], sizes = [32, 384], strides = [1, 1]} : vector<32x448xf32> to vector<32x384xf32>
    %cst_61 = arith.constant dense<0.000000e+00> : vector<32x384xf32>
    %101 = tpu.matmul %99, %100, %cst_61 {dimension_numbers = #tpu.dot_dimension_numbers<[1], [0], [0], [1], [0, 0, 1, 1], [], []>} : vector<32x32xf32>, vector<32x384xf32>, vector<32x384xf32> -> vector<32x384xf32>
    %102 = arith.addf %97, %101 : vector<32x384xf32>
    %c5_62 = arith.constant 5 : index
    %c0_63 = arith.constant 0 : index
    %c0_64 = arith.constant 0 : index
    %103 = vector.load %arg4[%c5_62, %c0_63, %c0_64] : memref<9x32x32xf32, #tpu.memory_space<vmem>>, vector<1x32x32xf32>
    %104 = vector.shape_cast %103 : vector<1x32x32xf32> to vector<32x32xf32>
    %105 = vector.extract_strided_slice %78 {offsets = [0, 33], sizes = [32, 384], strides = [1, 1]} : vector<32x448xf32> to vector<32x384xf32>
    %cst_65 = arith.constant dense<0.000000e+00> : vector<32x384xf32>
    %106 = tpu.matmul %104, %105, %cst_65 {dimension_numbers = #tpu.dot_dimension_numbers<[1], [0], [0], [1], [0, 0, 1, 1], [], []>} : vector<32x32xf32>, vector<32x384xf32>, vector<32x384xf32> -> vector<32x384xf32>
    %107 = arith.addf %102, %106 : vector<32x384xf32>
    %c6_66 = arith.constant 6 : index
    %c0_67 = arith.constant 0 : index
    %c0_68 = arith.constant 0 : index
    %108 = vector.load %arg4[%c6_66, %c0_67, %c0_68] : memref<9x32x32xf32, #tpu.memory_space<vmem>>, vector<1x32x32xf32>
    %109 = vector.shape_cast %108 : vector<1x32x32xf32> to vector<32x32xf32>
    %110 = vector.extract_strided_slice %78 {offsets = [0, 55], sizes = [32, 384], strides = [1, 1]} : vector<32x448xf32> to vector<32x384xf32>
    %cst_69 = arith.constant dense<0.000000e+00> : vector<32x384xf32>
    %111 = tpu.matmul %109, %110, %cst_69 {dimension_numbers = #tpu.dot_dimension_numbers<[1], [0], [0], [1], [0, 0, 1, 1], [], []>} : vector<32x32xf32>, vector<32x384xf32>, vector<32x384xf32> -> vector<32x384xf32>
    %112 = arith.addf %107, %111 : vector<32x384xf32>
    %c7_70 = arith.constant 7 : index
    %c0_71 = arith.constant 0 : index
    %c0_72 = arith.constant 0 : index
    %113 = vector.load %arg4[%c7_70, %c0_71, %c0_72] : memref<9x32x32xf32, #tpu.memory_space<vmem>>, vector<1x32x32xf32>
    %114 = vector.shape_cast %113 : vector<1x32x32xf32> to vector<32x32xf32>
    %115 = vector.extract_strided_slice %78 {offsets = [0, 56], sizes = [32, 384], strides = [1, 1]} : vector<32x448xf32> to vector<32x384xf32>
    %cst_73 = arith.constant dense<0.000000e+00> : vector<32x384xf32>
    %116 = tpu.matmul %114, %115, %cst_73 {dimension_numbers = #tpu.dot_dimension_numbers<[1], [0], [0], [1], [0, 0, 1, 1], [], []>} : vector<32x32xf32>, vector<32x384xf32>, vector<32x384xf32> -> vector<32x384xf32>
    %117 = arith.addf %112, %116 : vector<32x384xf32>
    %c8_74 = arith.constant 8 : index
    %c0_75 = arith.constant 0 : index
    %c0_76 = arith.constant 0 : index
    %118 = vector.load %arg4[%c8_74, %c0_75, %c0_76] : memref<9x32x32xf32, #tpu.memory_space<vmem>>, vector<1x32x32xf32>
    %119 = vector.shape_cast %118 : vector<1x32x32xf32> to vector<32x32xf32>
    %120 = vector.extract_strided_slice %78 {offsets = [0, 57], sizes = [32, 384], strides = [1, 1]} : vector<32x448xf32> to vector<32x384xf32>
    %cst_77 = arith.constant dense<0.000000e+00> : vector<32x384xf32>
    %121 = tpu.matmul %119, %120, %cst_77 {dimension_numbers = #tpu.dot_dimension_numbers<[1], [0], [0], [1], [0, 0, 1, 1], [], []>} : vector<32x32xf32>, vector<32x384xf32>, vector<32x384xf32> -> vector<32x384xf32>
    %122 = arith.addf %117, %121 : vector<32x384xf32>
    %c0_78 = arith.constant 0 : index
    %c0_79 = arith.constant 0 : index
    %123 = vector.load %arg5[%c0_78, %c0_79] : memref<32x1xf32, #tpu.memory_space<vmem>>, vector<32x1xf32>
    %124 = vector.broadcast %123 : vector<32x1xf32> to vector<32x384xf32>
    %125 = arith.addf %122, %124 : vector<32x384xf32>
    %cst_80 = arith.constant 0.000000e+00 : f32
    %126 = vector.broadcast %cst_80 : f32 to vector<32x384xf32>
    %127 = arith.maximumf %125, %126 : vector<32x384xf32>
    %cst_81 = arith.constant 0.000000e+00 : f32
    %128 = vector.shape_cast %18 : vector<1x384xi1> to vector<1x384xi1>
    %129 = vector.broadcast %128 : vector<1x384xi1> to vector<32x384xi1>
    %130 = vector.broadcast %cst_81 : f32 to vector<32x384xf32>
    %131 = arith.select %129, %127, %130 : vector<32x384xi1>, vector<32x384xf32>
    %cst_82 = arith.constant 0.000000e+00 : f32
    %132 = vector.broadcast %cst_82 : f32 to vector<32x32xf32>
    %cst_83 = arith.constant 0.000000e+00 : f32
    %133 = vector.broadcast %cst_83 : f32 to vector<32x32xf32>
    %134 = tpu.concatenate %132, %131, %133 in 1 : vector<32x32xf32>, vector<32x384xf32>, vector<32x32xf32> -> vector<32x448xf32>
    %c0_84 = arith.constant 0 : index
    %c0_85 = arith.constant 0 : index
    %135 = vector.load %arg10[%c0_84, %c0_85] : memref<32x448xf32, #tpu.memory_space<vmem>>, vector<32x448xf32>
    tpu.vector_store %arg10[%c0_84, %c0_85], %134 {strides = array<i32>} : memref<32x448xf32, #tpu.memory_space<vmem>>, vector<32x448xf32>,
    %c0_86 = arith.constant 0 : index
    %c0_87 = arith.constant 0 : index
    %136 = vector.load %arg10[%c0_86, %c0_87] : memref<32x448xf32, #tpu.memory_space<vmem>>, vector<32x448xf32>
    %c0_88 = arith.constant 0 : index
    %c0_89 = arith.constant 0 : index
    %c0_90 = arith.constant 0 : index
    %137 = vector.load %arg6[%c0_88, %c0_89, %c0_90] : memref<9x4x32xf32, #tpu.memory_space<vmem>>, vector<1x4x32xf32>
    %138 = vector.shape_cast %137 : vector<1x4x32xf32> to vector<4x32xf32>
    %139 = vector.extract_strided_slice %136 {offsets = [0, 7], sizes = [32, 384], strides = [1, 1]} : vector<32x448xf32> to vector<32x384xf32>
    %cst_91 = arith.constant dense<0.000000e+00> : vector<4x384xf32>
    %140 = tpu.matmul %138, %139, %cst_91 {dimension_numbers = #tpu.dot_dimension_numbers<[1], [0], [0], [1], [0, 0, 1, 1], [], []>} : vector<4x32xf32>, vector<32x384xf32>, vector<4x384xf32> -> vector<4x384xf32>
    %c1_92 = arith.constant 1 : index
    %c0_93 = arith.constant 0 : index
    %c0_94 = arith.constant 0 : index
    %141 = vector.load %arg6[%c1_92, %c0_93, %c0_94] : memref<9x4x32xf32, #tpu.memory_space<vmem>>, vector<1x4x32xf32>
    %142 = vector.shape_cast %141 : vector<1x4x32xf32> to vector<4x32xf32>
    %143 = vector.extract_strided_slice %136 {offsets = [0, 8], sizes = [32, 384], strides = [1, 1]} : vector<32x448xf32> to vector<32x384xf32>
    %cst_95 = arith.constant dense<0.000000e+00> : vector<4x384xf32>
    %144 = tpu.matmul %142, %143, %cst_95 {dimension_numbers = #tpu.dot_dimension_numbers<[1], [0], [0], [1], [0, 0, 1, 1], [], []>} : vector<4x32xf32>, vector<32x384xf32>, vector<4x384xf32> -> vector<4x384xf32>
    %145 = arith.addf %140, %144 : vector<4x384xf32>
    %c2_96 = arith.constant 2 : index
    %c0_97 = arith.constant 0 : index
    %c0_98 = arith.constant 0 : index
    %146 = vector.load %arg6[%c2_96, %c0_97, %c0_98] : memref<9x4x32xf32, #tpu.memory_space<vmem>>, vector<1x4x32xf32>
    %147 = vector.shape_cast %146 : vector<1x4x32xf32> to vector<4x32xf32>
    %148 = vector.extract_strided_slice %136 {offsets = [0, 9], sizes = [32, 384], strides = [1, 1]} : vector<32x448xf32> to vector<32x384xf32>
    %cst_99 = arith.constant dense<0.000000e+00> : vector<4x384xf32>
    %149 = tpu.matmul %147, %148, %cst_99 {dimension_numbers = #tpu.dot_dimension_numbers<[1], [0], [0], [1], [0, 0, 1, 1], [], []>} : vector<4x32xf32>, vector<32x384xf32>, vector<4x384xf32> -> vector<4x384xf32>
    %150 = arith.addf %145, %149 : vector<4x384xf32>
    %c3_100 = arith.constant 3 : index
    %c0_101 = arith.constant 0 : index
    %c0_102 = arith.constant 0 : index
    %151 = vector.load %arg6[%c3_100, %c0_101, %c0_102] : memref<9x4x32xf32, #tpu.memory_space<vmem>>, vector<1x4x32xf32>
    %152 = vector.shape_cast %151 : vector<1x4x32xf32> to vector<4x32xf32>
    %153 = vector.extract_strided_slice %136 {offsets = [0, 31], sizes = [32, 384], strides = [1, 1]} : vector<32x448xf32> to vector<32x384xf32>
    %cst_103 = arith.constant dense<0.000000e+00> : vector<4x384xf32>
    %154 = tpu.matmul %152, %153, %cst_103 {dimension_numbers = #tpu.dot_dimension_numbers<[1], [0], [0], [1], [0, 0, 1, 1], [], []>} : vector<4x32xf32>, vector<32x384xf32>, vector<4x384xf32> -> vector<4x384xf32>
    %155 = arith.addf %150, %154 : vector<4x384xf32>
    %c4_104 = arith.constant 4 : index
    %c0_105 = arith.constant 0 : index
    %c0_106 = arith.constant 0 : index
    %156 = vector.load %arg6[%c4_104, %c0_105, %c0_106] : memref<9x4x32xf32, #tpu.memory_space<vmem>>, vector<1x4x32xf32>
    %157 = vector.shape_cast %156 : vector<1x4x32xf32> to vector<4x32xf32>
    %158 = vector.extract_strided_slice %136 {offsets = [0, 32], sizes = [32, 384], strides = [1, 1]} : vector<32x448xf32> to vector<32x384xf32>
    %cst_107 = arith.constant dense<0.000000e+00> : vector<4x384xf32>
    %159 = tpu.matmul %157, %158, %cst_107 {dimension_numbers = #tpu.dot_dimension_numbers<[1], [0], [0], [1], [0, 0, 1, 1], [], []>} : vector<4x32xf32>, vector<32x384xf32>, vector<4x384xf32> -> vector<4x384xf32>
    %160 = arith.addf %155, %159 : vector<4x384xf32>
    %c5_108 = arith.constant 5 : index
    %c0_109 = arith.constant 0 : index
    %c0_110 = arith.constant 0 : index
    %161 = vector.load %arg6[%c5_108, %c0_109, %c0_110] : memref<9x4x32xf32, #tpu.memory_space<vmem>>, vector<1x4x32xf32>
    %162 = vector.shape_cast %161 : vector<1x4x32xf32> to vector<4x32xf32>
    %163 = vector.extract_strided_slice %136 {offsets = [0, 33], sizes = [32, 384], strides = [1, 1]} : vector<32x448xf32> to vector<32x384xf32>
    %cst_111 = arith.constant dense<0.000000e+00> : vector<4x384xf32>
    %164 = tpu.matmul %162, %163, %cst_111 {dimension_numbers = #tpu.dot_dimension_numbers<[1], [0], [0], [1], [0, 0, 1, 1], [], []>} : vector<4x32xf32>, vector<32x384xf32>, vector<4x384xf32> -> vector<4x384xf32>
    %165 = arith.addf %160, %164 : vector<4x384xf32>
    %c6_112 = arith.constant 6 : index
    %c0_113 = arith.constant 0 : index
    %c0_114 = arith.constant 0 : index
    %166 = vector.load %arg6[%c6_112, %c0_113, %c0_114] : memref<9x4x32xf32, #tpu.memory_space<vmem>>, vector<1x4x32xf32>
    %167 = vector.shape_cast %166 : vector<1x4x32xf32> to vector<4x32xf32>
    %168 = vector.extract_strided_slice %136 {offsets = [0, 55], sizes = [32, 384], strides = [1, 1]} : vector<32x448xf32> to vector<32x384xf32>
    %cst_115 = arith.constant dense<0.000000e+00> : vector<4x384xf32>
    %169 = tpu.matmul %167, %168, %cst_115 {dimension_numbers = #tpu.dot_dimension_numbers<[1], [0], [0], [1], [0, 0, 1, 1], [], []>} : vector<4x32xf32>, vector<32x384xf32>, vector<4x384xf32> -> vector<4x384xf32>
    %170 = arith.addf %165, %169 : vector<4x384xf32>
    %c7_116 = arith.constant 7 : index
    %c0_117 = arith.constant 0 : index
    %c0_118 = arith.constant 0 : index
    %171 = vector.load %arg6[%c7_116, %c0_117, %c0_118] : memref<9x4x32xf32, #tpu.memory_space<vmem>>, vector<1x4x32xf32>
    %172 = vector.shape_cast %171 : vector<1x4x32xf32> to vector<4x32xf32>
    %173 = vector.extract_strided_slice %136 {offsets = [0, 56], sizes = [32, 384], strides = [1, 1]} : vector<32x448xf32> to vector<32x384xf32>
    %cst_119 = arith.constant dense<0.000000e+00> : vector<4x384xf32>
    %174 = tpu.matmul %172, %173, %cst_119 {dimension_numbers = #tpu.dot_dimension_numbers<[1], [0], [0], [1], [0, 0, 1, 1], [], []>} : vector<4x32xf32>, vector<32x384xf32>, vector<4x384xf32> -> vector<4x384xf32>
    %175 = arith.addf %170, %174 : vector<4x384xf32>
    %c8_120 = arith.constant 8 : index
    %c0_121 = arith.constant 0 : index
    %c0_122 = arith.constant 0 : index
    %176 = vector.load %arg6[%c8_120, %c0_121, %c0_122] : memref<9x4x32xf32, #tpu.memory_space<vmem>>, vector<1x4x32xf32>
    %177 = vector.shape_cast %176 : vector<1x4x32xf32> to vector<4x32xf32>
    %178 = vector.extract_strided_slice %136 {offsets = [0, 57], sizes = [32, 384], strides = [1, 1]} : vector<32x448xf32> to vector<32x384xf32>
    %cst_123 = arith.constant dense<0.000000e+00> : vector<4x384xf32>
    %179 = tpu.matmul %177, %178, %cst_123 {dimension_numbers = #tpu.dot_dimension_numbers<[1], [0], [0], [1], [0, 0, 1, 1], [], []>} : vector<4x32xf32>, vector<32x384xf32>, vector<4x384xf32> -> vector<4x384xf32>
    %180 = arith.addf %175, %179 : vector<4x384xf32>
    %c0_124 = arith.constant 0 : index
    %c0_125 = arith.constant 0 : index
    %181 = vector.load %arg7[%c0_124, %c0_125] : memref<4x1xf32, #tpu.memory_space<vmem>>, vector<4x1xf32>
    %182 = vector.broadcast %181 : vector<4x1xf32> to vector<4x384xf32>
    %183 = arith.addf %180, %182 : vector<4x384xf32>
    %184 = math.tanh %183 : vector<4x384xf32>
    %c0_126 = arith.constant 0 : index
    %c0_127 = arith.constant 0 : index
    %c0_128 = arith.constant 0 : index
    %185 = vector.load %arg8[%c0_126, %c0_127, %c0_128] : memref<1x4x384xf32, #tpu.memory_space<vmem>>, vector<1x4x384xf32>
    %186 = vector.shape_cast %185 : vector<1x4x384xf32> to vector<4x384xf32>
    %187 = vector.shape_cast %184 : vector<4x384xf32> to vector<1x4x384xf32>
    tpu.vector_store %arg8[%c0_126, %c0_127, %c0_128], %187 {strides = array<i32>} : memref<1x4x384xf32, #tpu.memory_space<vmem>>, vector<1x4x384xf32>,
    return
  }
  func.func @transform_0(%arg0: i32) -> (i32, i32, i32) {
    %c0_i32 = arith.constant 0 : i32
    %c0_i32_0 = arith.constant 0 : i32
    %c0_i32_1 = arith.constant 0 : i32
    return %arg0, %c0_i32, %c0_i32_0 : i32, i32, i32
  }
  func.func @transform_1(%arg0: i32) -> (i32, i32, i32) {
    %c0_i32 = arith.constant 0 : i32
    %c0_i32_0 = arith.constant 0 : i32
    %c0_i32_1 = arith.constant 0 : i32
    %c0_i32_2 = arith.constant 0 : i32
    return %c0_i32, %c0_i32_0, %c0_i32_1 : i32, i32, i32
  }
  func.func @transform_2(%arg0: i32) -> (i32, i32) {
    %c0_i32 = arith.constant 0 : i32
    %c0_i32_0 = arith.constant 0 : i32
    %c0_i32_1 = arith.constant 0 : i32
    return %c0_i32, %c0_i32_0 : i32, i32
  }
  func.func @transform_3(%arg0: i32) -> (i32, i32, i32) {
    %c0_i32 = arith.constant 0 : i32
    %c0_i32_0 = arith.constant 0 : i32
    %c0_i32_1 = arith.constant 0 : i32
    %c0_i32_2 = arith.constant 0 : i32
    return %c0_i32, %c0_i32_0, %c0_i32_1 : i32, i32, i32
  }
  func.func @transform_4(%arg0: i32) -> (i32, i32) {
    %c0_i32 = arith.constant 0 : i32
    %c0_i32_0 = arith.constant 0 : i32
    %c0_i32_1 = arith.constant 0 : i32
    return %c0_i32, %c0_i32_0 : i32, i32
  }
  func.func @transform_5(%arg0: i32) -> (i32, i32, i32) {
    %c0_i32 = arith.constant 0 : i32
    %c0_i32_0 = arith.constant 0 : i32
    %c0_i32_1 = arith.constant 0 : i32
    %c0_i32_2 = arith.constant 0 : i32
    return %c0_i32, %c0_i32_0, %c0_i32_1 : i32, i32, i32
  }
  func.func @transform_6(%arg0: i32) -> (i32, i32) {
    %c0_i32 = arith.constant 0 : i32
    %c0_i32_0 = arith.constant 0 : i32
    %c0_i32_1 = arith.constant 0 : i32
    return %c0_i32, %c0_i32_0 : i32, i32
  }
  func.func @transform_7(%arg0: i32) -> (i32, i32, i32) {
    %c0_i32 = arith.constant 0 : i32
    %c0_i32_0 = arith.constant 0 : i32
    %c0_i32_1 = arith.constant 0 : i32
    return %arg0, %c0_i32, %c0_i32_0 : i32, i32, i32
  }
}

</mosaic_0001>

<bundles_post_ra>
// kernel: generator_forward.1
= control target key start
LH: loop header
LB: loop body
LE: loop exit
PB: predicated region body
PF: predicated region fallthrough
CT: control target
= control target key end

     0   :  { %s7713_s24 = smov 0   ;;  %s10719_s0 = inlined_call_operand.vmem [shape: f32[2,4,448], index: 0, kind: input, shape index: {}]   ;;  %s10720_s1 = inlined_call_operand.vmem [shape: f32[9,32,4], index: 1, kind: input, shape index: {}]   ;;  %s10721_s2 = inlined_call_operand.vmem [shape: f32[32,1], index: 2, kind: input, shape index: {}]   ;;  %s10722_s3 = inlined_call_operand.vmem [shape: f32[9,32,32], index: 3, kind: input, shape index: {}]   ;;  %s10723_s4 = inlined_call_operand.vmem [shape: f32[32,1], index: 4, kind: input, shape index: {}]   ;;  %s10724_s5 = inlined_call_operand.vmem [shape: f32[9,4,32], index: 5, kind: input, shape index: {}]   ;;  %s10725_s6 = inlined_call_operand.vmem [shape: f32[4,1], index: 6, kind: input, shape index: {}]   ;;  %s10726_s7 = inlined_call_operand.vmem [shape: f32[2,4,384], index: 7, kind: output, shape index: {}]  }
   0x1 LB: > { %s6883_s25 = sadd.s32 4294967295, %s7658_s24   ;;  %p6887_p0 = scmp.ge.s32.totalorder %s7658_s24, 1  ;;  %s7658_s24 = sphi %s7713_s24, %s17_s24  }
   0x2   : > { %p237_p1 = scmp.lt.s32.totalorder %s7658_s24, 3 }
   0x4   : > { %p238_p2 = pnand %p6887_p0, %p237_p1 }
   0x6   : > { %241 = sbr.rel (%p238_p2) target bundleno = 1924 (0x784), region = 48 }
   0xb   : > { %p269_p3 = scmp.lt.s32.totalorder %s6883_s25, 1  ;;  %v7724_v0 = vld [vmem:[%s10720_s1 + $0x20] sm:$0xff]  ;;  %vm361_vm0 = vcmask 31744   ;;  %v10727_v1 = vmov 0.0   ;;  %s7661_s9 = smov 120   ;;  %v2308_v6 = vld [vmem:[%s10721_s2 + $0x10] sm:$0xff] }
   0xc   : > { %445 = vmatprep.mubr.f32.mxu0 %v10727_v1  ;;  %7319 = vmatprep.mubr.msk.f32.mxu1 %vm361_vm0, %v7724_v0  ;;  %s7662_s10 = smov 121   ;;  %s7663_s11 = smov 119   ;;  %v2309_v7 = vld [vmem:[%s10721_s2 + $0x18] sm:$0xff]  ;;  %v7670_v8 = vmov 0   ;;  %v2307_v9 = vld [vmem:[%s10721_s2 + $0x8] sm:$0xff]  ;;  %v2306_v10 = vld [vmem:[%s10721_s2] sm:$0xff] }
   0xd   : > { %s11058_s25 = smov (!%p269_p3, %s6883_s25), 1  ;;  %s7664_s12 = smov 97   ;;  %7643 = vset.pattern.permute.xlu1 %v7670_v8  ;;  %7642 = vset.pattern.permute.xlu0 %v7670_v8  ;;  %vm357_vm1 = vcmask 982016   ;;  %vm374_vm2 = vcmask 1043456   ;;  %v6892_v17 = vld [vmem:[%s10720_s1 + $0x28] sm:$0xff]  ;;  %vm563_vm3 = vcmask 990208  }
   0xe   : > { %s7154_s28 = sshll.u32 %s11058_s25, 4  ;;  %s7665_s13 = smov 96   ;;  %v6893_v20 = vld [vmem:[%s10720_s1 + $0x30] sm:$0xff]  ;;  %v6894_v23 = vld [vmem:[%s10720_s1 + $0x38] sm:$0xff]  ;;  %v336_v28 = vld [vmem:[%s10720_s1] sm:$0xff]  ;;  %vm772_vm4 = vcmask 973824  }
   0xf   : > { %s273_s8 = scalar_lea.vmem %s10719_s0, %s7154_s28  ;;  %s7666_s14 = smov 95   ;;  %v337_v31 = vld [vmem:[%s10720_s1 + $0x8] sm:$0xff]  ;;  %v338_v36 = vld [vmem:[%s10720_s1 + $0x10] sm:$0xff]  ;;  %vm993_vm5 = vcmask 793600   ;;  %v339_v40 = vld [vmem:[%s10720_s1 + $0x18] sm:$0xff]  ;;  %vm1214_vm6 = vcmask 785408  }
  0x10   : > { %v334_v2 = vld [vmem:[%s273_s8] sm:$0xff]  ;;  %v335_v3 = vld [vmem:[%s273_s8 + $0x8] sm:$0xff]  ;;  %s7667_s15 = smov 73   ;;  %s7668_s16 = smov 72   ;;  %v6919_v49 = vld [vmem:[%s10720_s1 + $0x50] sm:$0xff]  ;;  %vm1435_vm7 = vcmask 777216  }
  0x11   : > { %349 = vrot.lane.b32.xlu1 %v334_v2, %s7661_s9  ;;  %v347_v4 = vcombine.high %v334_v2, %v334_v2  ;;  %v348_v5 = vcombine.high %v335_v3, %v335_v3  ;;  %s7669_s17 = smov 71   ;;  %v6917_v42 = vld [vmem:[%s10720_s1 + $0x40] sm:$0xff]  ;;  %v6918_v45 = vld [vmem:[%s10720_s1 + $0x48] sm:$0xff]  ;;  %v6920_v51 = vld [vmem:[%s10720_s1 + $0x58] sm:$0xff]  ;;  %vm1656_vm8 = vcmask 596992   ;;  %vm10752_vm9 = vcmask 588800  }
  0x12   : > { %v6932_v56 = vld [vmem:[%s10720_s1 + $0x60] sm:$0xff]  ;;  %v6933_v59 = vld [vmem:[%s10720_s1 + $0x68] sm:$0xff]  ;;  %v6934_v62 = vld [vmem:[%s10720_s1 + $0x70] sm:$0xff]  ;;  %vm10729_vm10 = vcmask 580608   ;;  %s7671_s26 = smov 32   ;;  %s7614_s29 = smul.u32 12, %s11058_s25 }
  0x13   : > { %351 = vrot.lane.b32.xlu0 %v347_v4, %s7661_s9  ;;  %v6948_v8 = vld [vmem:[%s10720_s1 + $0x88] sm:$0xff] }
  0x15   : > { %355 = vrot.lane.b32.xlu1 %v348_v5, %s7661_s9 }
  0x17   : > { %353 = vrot.lane.b32.xlu0 %v335_v3, %s7661_s9 }
  0x19   : > { %561 = vrot.lane.b32.xlu1 %v348_v5, %s7662_s10 }
  0x1b   : > { %559 = vrot.lane.b32.xlu0 %v335_v3, %s7662_s10 }
  0x1d   : > { %555 = vrot.lane.b32.xlu1 %v334_v2, %s7662_s10 }
  0x1f   : > { %557 = vrot.lane.b32.xlu0 %v347_v4, %s7662_s10 }
  0x21   : > { %768 = vrot.lane.b32.xlu1 %v335_v3, %s7663_s11 }
  0x23   : > { %766 = vrot.lane.b32.xlu0 %v347_v4, %s7663_s11 }
  0x25   : > { %770 = vrot.lane.b32.xlu1 %v348_v5, %s7663_s11 }
  0x27   : > { %764 = vrot.lane.b32.xlu0 %v334_v2, %s7663_s11 }
  0x29   : > { %991 = vrot.lane.b32.xlu1 %v348_v5, %s7664_s12 }
  0x2b   : > { %989 = vrot.lane.b32.xlu0 %v335_v3, %s7664_s12 }
  0x2d   : > { %985 = vrot.lane.b32.xlu1 %v334_v2, %s7664_s12 }
  0x2f   : > { %987 = vrot.lane.b32.xlu0 %v347_v4, %s7664_s12 }
  0x31   : > { %1210 = vrot.lane.b32.xlu1 %v335_v3, %s7665_s13 }
  0x33   : > { %1208 = vrot.lane.b32.xlu0 %v347_v4, %s7665_s13 }
  0x35   : > { %1212 = vrot.lane.b32.xlu1 %v348_v5, %s7665_s13 }
  0x37   : > { %1206 = vrot.lane.b32.xlu0 %v334_v2, %s7665_s13 }
  0x39   : > { %1433 = vrot.lane.b32.xlu1 %v348_v5, %s7666_s14 }
  0x3b   : > { %1431 = vrot.lane.b32.xlu0 %v335_v3, %s7666_s14 }
  0x3d   : > { %1427 = vrot.lane.b32.xlu1 %v334_v2, %s7666_s14 }
  0x3f   : > { %1429 = vrot.lane.b32.xlu0 %v347_v4, %s7666_s14 }
  0x41   : > { %1652 = vrot.lane.b32.xlu1 %v335_v3, %s7667_s15 }
  0x43   : > { %1650 = vrot.lane.b32.xlu0 %v347_v4, %s7667_s15 }
  0x45   : > { %1654 = vrot.lane.b32.xlu1 %v348_v5, %s7667_s15 }
  0x47   : > { %1648 = vrot.lane.b32.xlu0 %v334_v2, %s7667_s15 }
  0x49   : > { %1875 = vrot.lane.b32.xlu1 %v348_v5, %s7668_s16 }
  0x4b   : > { %1873 = vrot.lane.b32.xlu0 %v335_v3, %s7668_s16 }
  0x4d   : > { %1869 = vrot.lane.b32.xlu1 %v334_v2, %s7668_s16 }
  0x4f   : > { %1871 = vrot.lane.b32.xlu0 %v347_v4, %s7668_s16 }
  0x51   : > { %2094 = vrot.lane.b32.xlu1 %v335_v3, %s7669_s17 }
  0x53   : > { %2092 = vrot.lane.b32.xlu0 %v347_v4, %s7669_s17 }
  0x55   : > { %2096 = vrot.lane.b32.xlu1 %v348_v5, %s7669_s17  ;;  %v6935_v5 = vld [vmem:[%s10720_s1 + $0x78] sm:$0xff] }
  0x57   : > { %2090 = vrot.lane.b32.xlu0 %v334_v2, %s7669_s17 }
  0x59   : > { %2322 = vperm.xlu1 %7643, %v2308_v6   ;;  %v6947_v6 = vld [vmem:[%s10720_s1 + $0x80] sm:$0xff] }
  0x5b   : > { %2327 = vperm.xlu0 %7642, %v2309_v7  }
  0x5d   : > { %2317 = vperm.xlu1 %7643, %v2307_v9  }
  0x5f   : > { %2312 = vperm.xlu0 %7642, %v2306_v10  }
  0x83   : > { %v350_v11 = vpop.permute.xlu1 %349 }
  0x85   : > { %v352_v12 = vpop.permute.xlu0 %351 }
  0x86   : > { %v358_v19 = vsel %vm357_vm1, %v350_v11, %v352_v12  ;;  %v6949_v11 = vld [vmem:[%s10720_s1 + $0x90] sm:$0xff] }
  0x87   : > { %v356_v13 = vpop.permute.xlu1 %355 }
  0x89   : > { %v354_v14 = vpop.permute.xlu0 %353 }
  0x8a   : > { %v359_v15 = vsel %vm357_vm1, %v352_v12, %v354_v14  ;;  %v360_v16 = vsel %vm357_vm1, %v354_v14, %v356_v13 }
  0x8b   : > { %v562_v18 = vpop.permute.xlu1 %561  ;;  %6895 = vmatprep.subr.msk.mxu0 %vm374_vm2, %v359_v15  ;;  %7317 = vmatprep.subr.msk.mxu1 %vm374_vm2, %v360_v16  ;;  %v6950_v15 = vld [vmem:[%s10720_s1 + $0x98] sm:$0xff] }
  0x8c   : > { %6896 = vmatpush1.msk.msra.mxu0 %vm374_vm2, %v358_v19  ;;  %7318 = vmatpush3.msk.msra.mxu1 %vm374_vm2, %v360_v16  ;;  %v6962_v16 = vld [vmem:[%s10720_s1 + $0xa0] sm:$0xff] }
  0x8d   : > { %6897 = vmatmul.mubr.msk.f32.vlgmr.msra.gmra.mxu0 %vm361_vm0, %v7724_v0  ;;  %7320 = vmatmul.mubr.msk.f32.vlgmr.msra.gmra.mxu1 %vm361_vm0, %v6892_v17  ;;  %v560_v21 = vpop.permute.xlu0 %559 }
  0x8e   : > { %v566_v22 = vsel %vm563_vm3, %v560_v21, %v562_v18  ;;  %451 = vmatprep.mubr.f32.mxu0 %v10727_v1  ;;  %7322 = vmatprep.mubr.msk.f32.mxu1 %vm361_vm0, %v6893_v20 }
  0x8f   : > { %v556_v24 = vpop.permute.xlu1 %555  ;;  %7325 = vmatprep.subr.msk.mxu0 %vm374_vm2, %v566_v22 }
  0x90   : > { %7326 = vmatpush3.msk.msra.mxu0 %vm374_vm2, %v566_v22  ;;  %v6964_v22 = vld [vmem:[%s10720_s1 + $0xb0] sm:$0xff] }
  0x91   : > { %6898 = vmatmul.mubr.msk.f32.gmra.mxu0 %vm361_vm0, %v6892_v17  ;;  %7323 = vmatmul.mubr.msk.f32.gmra.mxu1 %vm361_vm0, %v6894_v23  ;;  %v558_v25 = vpop.permute.xlu0 %557 }
  0x92   : > { %v564_v26 = vsel %vm563_vm3, %v556_v24, %v558_v25  ;;  %v565_v27 = vsel %vm563_vm3, %v558_v25, %v560_v21  ;;  %457 = vmatprep.mubr.f32.mxu0 %v10727_v1  ;;  %649 = vmatprep.mubr.f32.mxu1 %v10727_v1 }
  0x93   : > { %v769_v29 = vpop.permute.xlu1 %768  ;;  %6906 = vmatprep.subr.msk.mxu1 %vm374_vm2, %v565_v27  ;;  %v6977_v27 = vld [vmem:[%s10720_s1 + $0xc0] sm:$0xff] }
  0x94   : > { %6907 = vmatpush1.msk.msra.mxu1 %vm374_vm2, %v564_v26  ;;  %v6965_v26 = vld [vmem:[%s10720_s1 + $0xb8] sm:$0xff] }
  0x95   : > { %6899 = vmatmul.mubr.msk.f32.gmra.mxu0 %vm361_vm0, %v6893_v20  ;;  %6908 = vmatmul.mubr.msk.f32.vlgmr.msra.gmra.mxu1 %vm361_vm0, %v336_v28  ;;  %v767_v30 = vpop.permute.xlu0 %766  ;;  %v6963_v20 = vld [vmem:[%s10720_s1 + $0xa8] sm:$0xff] }
  0x96   : > { %463 = vmatprep.mubr.f32.mxu0 %v10727_v1  ;;  %655 = vmatprep.mubr.f32.mxu1 %v10727_v1  ;;  %v774_v32 = vsel %vm772_vm4, %v767_v30, %v769_v29 }
  0x97   : > { %v771_v33 = vpop.permute.xlu1 %770  ;;  %6921 = vmatprep.subr.msk.mxu0 %vm374_vm2, %v774_v32  ;;  %v6979_v32 = vld [vmem:[%s10720_s1 + $0xd0] sm:$0xff] }
  0x98   : > { %v775_v34 = vsel %vm772_vm4, %v769_v29, %v771_v33 }
  0x99   : > { %6900 = vmatmul.mubr.msk.f32.gmra.mxu0 %vm361_vm0, %v6894_v23  ;;  %6909 = vmatmul.mubr.msk.f32.gmra.mxu1 %vm361_vm0, %v337_v31  ;;  %v765_v35 = vpop.permute.xlu0 %764 }
  0x9a   : > { %7333 = vmatprep.subr.msk.mxu1 %vm374_vm2, %v775_v34  ;;  %661 = vmatprep.mubr.f32.mxu1 %v10727_v1  ;;  %v773_v37 = vsel %vm772_vm4, %v765_v35, %v767_v30  ;;  %v6980_v35 = vld [vmem:[%s10720_s1 + $0xd8] sm:$0xff] }
  0x9b   : > { %7334 = vmatpush3.msk.msra.mxu1 %vm374_vm2, %v775_v34  ;;  %7327 = vmatprep.mubr.msk.f32.mxu0 %vm361_vm0, %v336_v28  ;;  %v992_v38 = vpop.permute.xlu1 %991  ;;  %v6978_v28 = vld [vmem:[%s10720_s1 + $0xc8] sm:$0xff] }
  0x9d   : > { %6910 = vmatmul.mubr.msk.f32.gmra.mxu1 %vm361_vm0, %v338_v36  ;;  %7328 = vmatmul.mubr.msk.f32.vlgmr.msra.gmra.mxu0 %vm361_vm0, %v337_v31  ;;  %v990_v39 = vpop.permute.xlu0 %989 }
  0x9e   : > { %6922 = vmatpush1.msk.msra.mxu0 %vm374_vm2, %v773_v37  ;;  %667 = vmatprep.mubr.f32.mxu1 %v10727_v1  ;;  %v996_v41 = vsel %vm993_vm5, %v990_v39, %v992_v38  ;;  %v6993_v37 = vld [vmem:[%s10720_s1 + $0xe8] sm:$0xff] }
  0x9f   : > { %7330 = vmatprep.mubr.msk.f32.mxu0 %vm361_vm0, %v338_v36  ;;  %v986_v43 = vpop.permute.xlu1 %985  ;;  %7341 = vmatprep.subr.msk.mxu0 %vm374_vm2, %v996_v41  ;;  %v6992_v36 = vld [vmem:[%s10720_s1 + $0xe0] sm:$0xff] }
  0xa1   : > { %6911 = vmatmul.mubr.msk.f32.gmra.mxu1 %vm361_vm0, %v339_v40  ;;  %7331 = vmatmul.mubr.msk.f32.gmra.mxu0 %vm361_vm0, %v339_v40  ;;  %v988_v44 = vpop.permute.xlu0 %987 }
  0xa2   : > { %858 = vmatprep.mubr.f32.mxu0 %v10727_v1  ;;  %7335 = vmatprep.mubr.msk.f32.mxu1 %vm361_vm0, %v6917_v42  ;;  %v995_v46 = vsel %vm993_vm5, %v988_v44, %v990_v39  ;;  %v994_v48 = vsel %vm993_vm5, %v986_v43, %v988_v44  ;;  %v6994_v39 = vld [vmem:[%s10720_s1 + $0xf0] sm:$0xff]  ;;  %v7008_v43 = vld [vmem:[%s10720_s1 + $0x108] sm:$0xff] }
  0xa3   : > { %6936 = vmatprep.subr.msk.mxu1 %vm374_vm2, %v995_v46  ;;  %v1211_v47 = vpop.permute.xlu1 %1210  ;;  %v7009_v44 = vld [vmem:[%s10720_s1 + $0x110] sm:$0xff] }
  0xa5   : > { %6923 = vmatmul.mubr.msk.f32.vlgmr.msra.gmra.mxu0 %vm361_vm0, %v6917_v42  ;;  %7336 = vmatmul.mubr.msk.f32.vlgmr.msra.gmra.mxu1 %vm361_vm0, %v6918_v45  ;;  %v1209_v50 = vpop.permute.xlu0 %1208  ;;  %v7007_v42 = vld [vmem:[%s10720_s1 + $0x100] sm:$0xff] }
  0xa6   : > { %7342 = vmatpush3.msk.msra.mxu0 %vm374_vm2, %v996_v41  ;;  %864 = vmatprep.mubr.f32.mxu0 %v10727_v1  ;;  %v1216_v52 = vsel %vm1214_vm6, %v1209_v50, %v1211_v47  ;;  %v6995_v41 = vld [vmem:[%s10720_s1 + $0xf8] sm:$0xff] }
  0xa7   : > { %7338 = vmatprep.mubr.msk.f32.mxu1 %vm361_vm0, %v6919_v49  ;;  %6937 = vmatpush1.msk.msra.mxu1 %vm374_vm2, %v994_v48  ;;  %v1213_v53 = vpop.permute.xlu1 %1212 }
  0xa8   : > { %v1217_v54 = vsel %vm1214_vm6, %v1211_v47, %v1213_v53  ;;  %6951 = vmatprep.subr.msk.mxu0 %vm374_vm2, %v1216_v52 }
  0xa9   : > { %6924 = vmatmul.mubr.msk.f32.gmra.mxu0 %vm361_vm0, %v6918_v45  ;;  %7339 = vmatmul.mubr.msk.f32.gmra.mxu1 %vm361_vm0, %v6920_v51  ;;  %v1207_v55 = vpop.permute.xlu0 %1206  ;;  %v7010_v45 = vld [vmem:[%s10720_s1 + $0x118] sm:$0xff] }
  0xaa   : > { %870 = vmatprep.mubr.f32.mxu0 %v10727_v1  ;;  %1079 = vmatprep.mubr.f32.mxu1 %v10727_v1  ;;  %v1215_v0 = vsel %vm1214_vm6, %v1207_v55, %v1209_v50 }
  0xab   : > { %7349 = vmatprep.subr.msk.mxu1 %vm374_vm2, %v1217_v54  ;;  %v1434_v57 = vpop.permute.xlu1 %1433 }
  0xad   : > { %6925 = vmatmul.mubr.msk.f32.gmra.mxu0 %vm361_vm0, %v6919_v49  ;;  %6938 = vmatmul.mubr.msk.f32.vlgmr.msra.gmra.mxu1 %vm361_vm0, %v6932_v56  ;;  %v1432_v58 = vpop.permute.xlu0 %1431 }
  0xae   : > { %876 = vmatprep.mubr.f32.mxu0 %v10727_v1  ;;  %1085 = vmatprep.mubr.f32.mxu1 %v10727_v1  ;;  %v1438_v2 = vsel %vm1435_vm7, %v1432_v58, %v1434_v57 }
  0xaf   : > { %7350 = vmatpush3.msk.msra.mxu1 %vm374_vm2, %v1217_v54  ;;  %v1428_v60 = vpop.permute.xlu1 %1427 }
  0xb1   : > { %6926 = vmatmul.mubr.msk.f32.gmra.mxu0 %vm361_vm0, %v6920_v51  ;;  %6939 = vmatmul.mubr.msk.f32.gmra.mxu1 %vm361_vm0, %v6933_v59  ;;  %v1430_v61 = vpop.permute.xlu0 %1429 }
  0xb2   : > { %1091 = vmatprep.mubr.f32.mxu1 %v10727_v1  ;;  %7343 = vmatprep.mubr.msk.f32.mxu0 %vm361_vm0, %v6932_v56  ;;  %v1437_v63 = vsel %vm1435_vm7, %v1430_v61, %v1432_v58  ;;  %v1436_v10 = vsel %vm1435_vm7, %v1428_v60, %v1430_v61 }
  0xb3   : > { %6966 = vmatprep.subr.msk.mxu1 %vm374_vm2, %v1437_v63  ;;  %v1653_v3 = vpop.permute.xlu1 %1652 }
  0xb5   : > { %6940 = vmatmul.mubr.msk.f32.gmra.mxu1 %vm361_vm0, %v6934_v62  ;;  %7344 = vmatmul.mubr.msk.f32.vlgmr.msra.gmra.mxu0 %vm361_vm0, %v6933_v59  ;;  %v1651_v4 = vpop.permute.xlu0 %1650 }
  0xb6   : > { %6952 = vmatpush1.msk.msra.mxu0 %vm374_vm2, %v1215_v0  ;;  %1097 = vmatprep.mubr.f32.mxu1 %v10727_v1  ;;  %v1658_v13 = vsel %vm1656_vm8, %v1651_v4, %v1653_v3 }
  0xb7   : > { %7346 = vmatprep.mubr.msk.f32.mxu0 %vm361_vm0, %v6934_v62  ;;  %7357 = vmatprep.subr.msk.mxu0 %vm374_vm2, %v1438_v2  ;;  %v1655_v9 = vpop.permute.xlu1 %1654 }
  0xb8   : > { %v1659_v12 = vsel %vm1656_vm8, %v1653_v3, %v1655_v9 }
  0xb9   : > { %6941 = vmatmul.mubr.msk.f32.gmra.mxu1 %vm361_vm0, %v6935_v5  ;;  %7347 = vmatmul.mubr.msk.f32.gmra.mxu0 %vm361_vm0, %v6935_v5  ;;  %v1649_v7 = vpop.permute.xlu0 %1648 }
  0xba   : > { %1300 = vmatprep.mubr.f32.mxu0 %v10727_v1  ;;  %7351 = vmatprep.mubr.msk.f32.mxu1 %vm361_vm0, %v6947_v6  ;;  %v1657_v23 = vsel %vm1656_vm8, %v1649_v7, %v1651_v4 }
  0xbb   : > { %v1876_v17 = vpop.permute.xlu1 %1875 }
  0xbd   : > { %6953 = vmatmul.mubr.msk.f32.vlgmr.msra.gmra.mxu0 %vm361_vm0, %v6947_v6  ;;  %7352 = vmatmul.mubr.msk.f32.vlgmr.msra.gmra.mxu1 %vm361_vm0, %v6948_v8  ;;  %v1874_v14 = vpop.permute.xlu0 %1873 }
  0xbe   : > { %7358 = vmatpush3.msk.msra.mxu0 %vm374_vm2, %v1438_v2  ;;  %1306 = vmatprep.mubr.f32.mxu0 %v10727_v1  ;;  %v1880_v24 = vsel %vm10752_vm9, %v1874_v14, %v1876_v17 }
  0xbf   : > { %7354 = vmatprep.mubr.msk.f32.mxu1 %vm361_vm0, %v6949_v11  ;;  %6967 = vmatpush1.msk.msra.mxu1 %vm374_vm2, %v1436_v10  ;;  %v1870_v21 = vpop.permute.xlu1 %1869 }
  0xc0   : > { %7365 = vmatprep.subr.msk.mxu1 %vm374_vm2, %v1659_v12  ;;  %6981 = vmatprep.subr.msk.mxu0 %vm374_vm2, %v1658_v13 }
  0xc1   : > { %6954 = vmatmul.mubr.msk.f32.gmra.mxu0 %vm361_vm0, %v6948_v8  ;;  %7355 = vmatmul.mubr.msk.f32.gmra.mxu1 %vm361_vm0, %v6950_v15  ;;  %v1872_v18 = vpop.permute.xlu0 %1871 }
  0xc2   : > { %1312 = vmatprep.mubr.f32.mxu0 %v10727_v1  ;;  %1521 = vmatprep.mubr.f32.mxu1 %v10727_v1  ;;  %v1879_v19 = vsel %vm10752_vm9, %v1872_v18, %v1874_v14  ;;  %v1878_v31 = vsel %vm10752_vm9, %v1870_v21, %v1872_v18 }
  0xc3   : > { %v2095_v25 = vpop.permute.xlu1 %2094 }
  0xc5   : > { %6955 = vmatmul.mubr.msk.f32.gmra.mxu0 %vm361_vm0, %v6949_v11  ;;  %6968 = vmatmul.mubr.msk.f32.vlgmr.msra.gmra.mxu1 %vm361_vm0, %v6962_v16  ;;  %v2093_v30 = vpop.permute.xlu0 %2092 }
  0xc6   : > { %1318 = vmatprep.mubr.f32.mxu0 %v10727_v1  ;;  %1527 = vmatprep.mubr.f32.mxu1 %v10727_v1  ;;  %v2100_v34 = vsel %vm10729_vm10, %v2093_v30, %v2095_v25 }
  0xc7   : > { %7366 = vmatpush3.msk.msra.mxu1 %vm374_vm2, %v1659_v12  ;;  %v2097_v29 = vpop.permute.xlu1 %2096 }
  0xc8   : > { %6996 = vmatprep.subr.msk.mxu1 %vm374_vm2, %v1879_v19  ;;  %v2101_v33 = vsel %vm10729_vm10, %v2095_v25, %v2097_v29 }
  0xc9   : > { %6956 = vmatmul.mubr.msk.f32.gmra.mxu0 %vm361_vm0, %v6950_v15  ;;  %6969 = vmatmul.mubr.msk.f32.gmra.mxu1 %vm361_vm0, %v6963_v20  ;;  %v2091_v38 = vpop.permute.xlu0 %2090 }
  0xca   : > { %1533 = vmatprep.mubr.f32.mxu1 %v10727_v1  ;;  %7359 = vmatprep.mubr.msk.f32.mxu0 %vm361_vm0, %v6962_v16  ;;  %v2099_v40 = vsel %vm10729_vm10, %v2091_v38, %v2093_v30 }
  0xcd   : > { %6970 = vmatmul.mubr.msk.f32.gmra.mxu1 %vm361_vm0, %v6964_v22  ;;  %7360 = vmatmul.mubr.msk.f32.vlgmr.msra.gmra.mxu0 %vm361_vm0, %v6963_v20 }
  0xce   : > { %6982 = vmatpush1.msk.msra.mxu0 %vm374_vm2, %v1657_v23  ;;  %1539 = vmatprep.mubr.f32.mxu1 %v10727_v1 }
  0xcf   : > { %7362 = vmatprep.mubr.msk.f32.mxu0 %vm361_vm0, %v6964_v22  ;;  %7373 = vmatprep.subr.msk.mxu0 %vm374_vm2, %v1880_v24 }
  0xd1   : > { %6971 = vmatmul.mubr.msk.f32.gmra.mxu1 %vm361_vm0, %v6965_v26  ;;  %7363 = vmatmul.mubr.msk.f32.gmra.mxu0 %vm361_vm0, %v6965_v26 }
  0xd2   : > { %1742 = vmatprep.mubr.f32.mxu0 %v10727_v1  ;;  %7367 = vmatprep.mubr.msk.f32.mxu1 %vm361_vm0, %v6977_v27 }
  0xd5   : > { %6983 = vmatmul.mubr.msk.f32.vlgmr.msra.gmra.mxu0 %vm361_vm0, %v6977_v27  ;;  %7368 = vmatmul.mubr.msk.f32.vlgmr.msra.gmra.mxu1 %vm361_vm0, %v6978_v28 }
  0xd6   : > { %7374 = vmatpush3.msk.msra.mxu0 %vm374_vm2, %v1880_v24  ;;  %1748 = vmatprep.mubr.f32.mxu0 %v10727_v1 }
  0xd7   : > { %7370 = vmatprep.mubr.msk.f32.mxu1 %vm361_vm0, %v6979_v32  ;;  %6997 = vmatpush1.msk.msra.mxu1 %vm374_vm2, %v1878_v31 }
  0xd8   : > { %7381 = vmatprep.subr.msk.mxu1 %vm374_vm2, %v2101_v33  ;;  %7011 = vmatprep.subr.msk.mxu0 %vm374_vm2, %v2100_v34 }
  0xd9   : > { %6984 = vmatmul.mubr.msk.f32.gmra.mxu0 %vm361_vm0, %v6978_v28  ;;  %7371 = vmatmul.mubr.msk.f32.gmra.mxu1 %vm361_vm0, %v6980_v35 }
  0xda   : > { %1754 = vmatprep.mubr.f32.mxu0 %v10727_v1  ;;  %1963 = vmatprep.mubr.f32.mxu1 %v10727_v1 }
  0xdd   : > { %6985 = vmatmul.mubr.msk.f32.gmra.mxu0 %vm361_vm0, %v6979_v32  ;;  %6998 = vmatmul.mubr.msk.f32.vlgmr.msra.gmra.mxu1 %vm361_vm0, %v6992_v36 }
  0xde   : > { %1760 = vmatprep.mubr.f32.mxu0 %v10727_v1  ;;  %1969 = vmatprep.mubr.f32.mxu1 %v10727_v1 }
  0xdf   : > { %7382 = vmatpush3.msk.msra.mxu1 %vm374_vm2, %v2101_v33 }
  0xe1   : > { %6986 = vmatmul.mubr.msk.f32.gmra.mxu0 %vm361_vm0, %v6980_v35  ;;  %6999 = vmatmul.mubr.msk.f32.gmra.mxu1 %vm361_vm0, %v6993_v37 }
  0xe2   : > { %1975 = vmatprep.mubr.f32.mxu1 %v10727_v1  ;;  %7375 = vmatprep.mubr.msk.f32.mxu0 %vm361_vm0, %v6992_v36 }
  0xe5   : > { %7000 = vmatmul.mubr.msk.f32.gmra.mxu1 %vm361_vm0, %v6994_v39  ;;  %7376 = vmatmul.mubr.msk.f32.vlgmr.msra.gmra.mxu0 %vm361_vm0, %v6993_v37  ;;  %v279_v37 = vlaneseq }
  0xe6   : > { %1981 = vmatprep.mubr.f32.mxu1 %v10727_v1  ;;  %7378 = vmatprep.mubr.msk.f32.mxu0 %vm361_vm0, %v6994_v39 }
  0xe7   : > { %7012 = vmatpush1.msk.msra.mxu0 %vm374_vm2, %v2099_v40 }
  0xe9   : > { %7001 = vmatmul.mubr.msk.f32.gmra.mxu1 %vm361_vm0, %v6995_v41  ;;  %7379 = vmatmul.mubr.msk.f32.gmra.mxu0 %vm361_vm0, %v6995_v41 }
  0xea   : > { %2184 = vmatprep.mubr.f32.mxu0 %v10727_v1  ;;  %7383 = vmatprep.mubr.msk.f32.mxu1 %vm361_vm0, %v7007_v42 }
  0xed   : > { %7013 = vmatmul.mubr.msk.f32.vlgmr.msra.gmra.mxu0 %vm361_vm0, %v7007_v42  ;;  %7384 = vmatmul.mubr.msk.f32.vlgmr.msra.gmra.mxu1 %vm361_vm0, %v7008_v43  ;;  %v280_v42 = vand.u32 127, %v279_v37 }
  0xee   : > { %2190 = vmatprep.mubr.f32.mxu0 %v10727_v1  ;;  %7386 = vmatprep.mubr.msk.f32.mxu1 %vm361_vm0, %v7009_v44 }
  0xf1   : > { %7014 = vmatmul.mubr.msk.f32.gmra.mxu0 %vm361_vm0, %v7008_v43  ;;  %7387 = vmatmul.mubr.msk.f32.gmra.mxu1 %vm361_vm0, %v7010_v45 }
  0xf2   : > { %2196 = vmatprep.mubr.f32.mxu0 %v10727_v1  ;;  %2631 = vmatprep.mubr.f32.mxu1 %v10727_v1 }
  0xf5   : > { %7015 = vmatmul.mubr.msk.f32.gmra.mxu0 %vm361_vm0, %v7009_v44 }
  0xf6   : > { %2202 = vmatprep.mubr.f32.mxu0 %v10727_v1 }
  0xf9   : > { %7016 = vmatmul.mubr.msk.f32.gmra.mxu0 %vm361_vm0, %v7010_v45 }
 0x14d   : > { %v447_v46 = vpop.f32.mrf.mxu0  ;;  %v7321_v47 = vpop.f32.mrf.mxu1 }
 0x14f   : > { %v8059_v48 = vpop.f32.mrf.mxu0  ;;  %v8061_v49 = vpop.f32.mrf.mxu1 }
 0x151   : > { %v453_v50 = vpop.f32.mrf.mxu0  ;;  %v7324_v51 = vpop.f32.mrf.mxu1 }
 0x153   : > { %v8063_v52 = vpop.f32.mrf.mxu0  ;;  %v8065_v53 = vpop.f32.mrf.mxu1 }
 0x155   : > { %v459_v54 = vpop.f32.mrf.mxu0  ;;  %v651_v55 = vpop.f32.mrf.mxu1 }
 0x156   : > { %v8067_v56 = vadd.f32 %v651_v55, %v447_v46 }
 0x157   : > { %v8069_v57 = vpop.f32.mrf.mxu0  ;;  %v8071_v58 = vpop.f32.mrf.mxu1 }
 0x159   : > { %v465_v59 = vpop.f32.mrf.mxu0  ;;  %v657_v60 = vpop.f32.mrf.mxu1 }
 0x15a   : > { %v658_v61 = vadd.f32 %v657_v60, %v453_v50 }
 0x15b   : > { %v8073_v62 = vpop.f32.mrf.mxu0  ;;  %v8075_v63 = vpop.f32.mrf.mxu1 }
 0x15d   : > { %v663_v0 = vpop.f32.mrf.mxu1  ;;  %v7329_v2 = vpop.f32.mrf.mxu0 }
 0x15e   : > { %v664_v3 = vadd.f32 %v663_v0, %v459_v54  ;;  %v8077_v4 = vadd.f32 %v7329_v2, %v7321_v47  ;;  %v282_v47 = vadd.s32 256, %v280_v42  ;;  %v281_v54 = vadd.s32 128, %v280_v42 }
 0x15f   : > { %v8079_v5 = vpop.f32.mrf.mxu1  ;;  %v8081_v6 = vpop.f32.mrf.mxu0 }
 0x161   : > { %v669_v7 = vpop.f32.mrf.mxu1  ;;  %v7332_v8 = vpop.f32.mrf.mxu0 }
 0x162   : > { %v670_v9 = vadd.f32 %v669_v7, %v465_v59  ;;  %v756_v10 = vadd.f32 %v7332_v8, %v7324_v51 }
 0x163   : > { %v8083_v11 = vpop.f32.mrf.mxu1  ;;  %v8085_v12 = vpop.f32.mrf.mxu0 }
 0x165   : > { %v8087_v13 = vpop.f32.mrf.mxu0  ;;  %v8089_v14 = vpop.f32.mrf.mxu1 }
 0x167   : > { %v8091_v15 = vpop.f32.mrf.mxu0  ;;  %v8093_v16 = vpop.f32.mrf.mxu1 }
 0x169   : > { %v866_v17 = vpop.f32.mrf.mxu0  ;;  %v7340_v18 = vpop.f32.mrf.mxu1 }
 0x16a   : > { %v8095_v19 = vadd.f32 %v866_v17, %v658_v61  ;;  %v8097_v20 = vadd.f32 %v7340_v18, %v756_v10  ;;  %v8151_v60 = vmul.u32.u64.low 2863311531, %v282_v47  ;;  %v8152_v61 = vmul.u32.u64.high 2863311531, %v282_v47, %v8151_v60 }
 0x16b   : > { %v8099_v21 = vpop.f32.mrf.mxu0  ;;  %v8101_v22 = vpop.f32.mrf.mxu1 }
 0x16c   : > { %v311_v60 = vshrl.u32 %v8152_v61, 4 }
 0x16d   : > { %v872_v23 = vpop.f32.mrf.mxu0  ;;  %v8103_v24 = vpop.f32.mrf.mxu1 }
 0x16e   : > { %v8105_v25 = vadd.f32 %v872_v23, %v664_v3  ;;  %v8158_v3 = vmul.u32.u64.low 2863311531, %v280_v42  ;;  %v8159_v7 = vmul.u32.u64.high 2863311531, %v280_v42, %v8158_v3 }
 0x16f   : > { %v8107_v26 = vpop.f32.mrf.mxu0  ;;  %v8109_v27 = vpop.f32.mrf.mxu1 }
 0x171   : > { %v878_v28 = vpop.f32.mrf.mxu0  ;;  %v8111_v29 = vpop.f32.mrf.mxu1 }
 0x172   : > { %v8113_v30 = vadd.f32 %v878_v28, %v670_v9  ;;  %v8161_v8 = vmul.u32.u64.low 2863311531, %v281_v54  ;;  %v8162_v9 = vmul.u32.u64.high 2863311531, %v281_v54, %v8161_v8 }
 0x173   : > { %v8115_v31 = vpop.f32.mrf.mxu0  ;;  %v8117_v32 = vpop.f32.mrf.mxu1  ;;  %v289_v8 = vshrl.u32 %v8159_v7, 4 }
 0x175   : > { %v8119_v33 = vpop.f32.mrf.mxu1  ;;  %v8121_v34 = vpop.f32.mrf.mxu0 }
 0x177   : > { %v8123_v35 = vpop.f32.mrf.mxu1  ;;  %v8125_v36 = vpop.f32.mrf.mxu0 }
 0x179   : > { %v8127_v38 = vpop.f32.mrf.mxu1  ;;  %v8129_v39 = vpop.f32.mrf.mxu0 }
 0x17b   : > { %v8131_v40 = vpop.f32.mrf.mxu1  ;;  %v8133_v41 = vpop.f32.mrf.mxu0 }
 0x17d   : > { %v8135_v43 = vpop.f32.mrf.mxu0  ;;  %v8137_v44 = vpop.f32.mrf.mxu1 }
 0x17f   : > { %v8139_v45 = vpop.f32.mrf.mxu0  ;;  %v8141_v46 = vpop.f32.mrf.mxu1 }
 0x181   : > { %v8143_v50 = vpop.f32.mrf.mxu0  ;;  %v8145_v51 = vpop.f32.mrf.mxu1 }
 0x183   : > { %v8147_v55 = vpop.f32.mrf.mxu0  ;;  %v8149_v59 = vpop.f32.mrf.mxu1 }
 0x184   : > { %10773 = vst [vmem:[#allocation4_spill] sm:$0xff] %v8149_v59 }
 0x185   : > { %v8154_v0 = vpop.f32.mrf.mxu0  ;;  %v8156_v2 = vpop.f32.mrf.mxu1 }
 0x186   : > { %10774 = vst [vmem:[#allocation5_spill] sm:$0xff] %v8154_v0 }
 0x187   : > { %v8164_v10 = vpop.f32.mrf.mxu0  ;;  %v8166_v17 = vpop.f32.mrf.mxu1 }
 0x188   : > { %10775 = vst [vmem:[#allocation6_spill] sm:$0xff] %v8164_v10  ;;  %10776 = vst [vmem:[#allocation7_spill] sm:$0xff] %v8166_v17  ;;  %v300_v10 = vshrl.u32 %v8162_v9, 4 }
 0x189   : > { %v8168_v18 = vpop.f32.mrf.mxu0  ;;  %v8170_v23 = vpop.f32.mrf.mxu1 }
 0x18a   : > { %10777 = vst [vmem:[#allocation8_spill] sm:$0xff] %v8168_v18  ;;  %10778 = vst [vmem:[#allocation9_spill] sm:$0xff] %v8170_v23  ;;  %v312_v18 = vmul.u32 24, %v311_v60  ;;  %v301_v59 = vmul.u32 24, %v300_v10 }
 0x18b   : > { %v8172_v28 = vpop.f32.mrf.mxu0  ;;  %v8174_v37 = vpop.f32.mrf.mxu1 }
 0x18c   : > { %10779 = vst [vmem:[#allocation10_spill] sm:$0xff] %v8172_v28  ;;  %10780 = vst [vmem:[#allocation11_spill] sm:$0xff] %v8174_v37  ;;  %v290_v37 = vmul.u32 24, %v289_v8 }
 0x18d   : > { %v8177_v1 = vpop.f32.mrf.mxu1  ;;  %v8179_v3 = vpop.f32.mrf.mxu0 }
 0x18e   : > { %10781 = vst [vmem:[#allocation12_spill] sm:$0xff] %v8177_v1  ;;  %10782 = vst [vmem:[#allocation13_spill] sm:$0xff] %v8179_v3  ;;  %v8195_v3 = vsub.s32 %v282_v47, %v312_v18 }
 0x18f   : > { %v8183_v0 = vpop.f32.mrf.mxu1  ;;  %v8185_v17 = vpop.f32.mrf.mxu0 }
 0x190   : > { %10783 = vst [vmem:[#allocation14_spill] sm:$0xff] %v8183_v0  ;;  %10784 = vst [vmem:[#allocation15_spill] sm:$0xff] %v8185_v17  ;;  %v8201_v0 = vsub.s32 %v280_v42, %v290_v37  ;;  %v8203_v17 = vsub.s32 %v281_v54, %v301_v59  ;;  %vm318_vm11 = vcmp.ne.s32.totalorder %v8195_v3, 0  ;;  %vm321_vm12 = vcmp.lt.s32.totalorder %v8195_v3, 0 }
 0x191   : > { %v8187_v23 = vpop.f32.mrf.mxu1  ;;  %v8189_v28 = vpop.f32.mrf.mxu0  ;;  %vm8223_vm2 = vmand %vm321_vm12, %vm318_vm11  ;;  %v8228_v18 = vadd.s32 24, %v8195_v3  ;;  %v666_v59 = vadd.f32 %v8079_v5, %v8069_v57 }
 0x192   : > { %10785 = vst [vmem:[#allocation16_spill] sm:$0xff] %v8187_v23  ;;  %vm316_vm13 = vcmp.ne.s32.totalorder %v8201_v0, 0  ;;  %vm319_vm14 = vcmp.lt.s32.totalorder %v8201_v0, 0  ;;  %vm317_vm15 = vcmp.ne.s32.totalorder %v8203_v17, 0  ;;  %vm320_vm0 = vcmp.lt.s32.totalorder %v8203_v17, 0 }
 0x193   : > { %v8191_v61 = vpop.f32.mrf.mxu1  ;;  %v8193_v1 = vpop.f32.mrf.mxu0  ;;  %vm8230_vm10 = vmand %vm319_vm14, %vm316_vm13  ;;  %v8235_v8 = vadd.s32 24, %v8201_v0  ;;  %vm2408_vm14 = vcmask 261120  }
 0x194   : > { %10786 = vst [vmem:[#allocation17_spill] sm:$0xff] %v8191_v61  ;;  %10787 = vst [vmem:[#allocation18_spill] sm:$0xff] %v8193_v1  ;;  %v8238_v61 = vadd.s32 24, %v8203_v17 }
 0x195   : > { %v8197_v7 = vpop.f32.mrf.mxu0  ;;  %v8199_v9 = vpop.f32.mrf.mxu1  ;;  %vm8244_vm11 = vmand %vm320_vm0, %vm317_vm15  ;;  %vm2444_vm15 = vcmask 523264   ;;  %vm10899_vm0 = vcmask 580608  }
 0x197   : > { %v8205_v60 = vpop.f32.mrf.mxu0  ;;  %v8207_v23 = vpop.f32.mrf.mxu1 }
 0x198   : > { %10788 = vst [vmem:[#allocation19_spill] sm:$0xff] %v8205_v60  ;;  %10789 = vst [vmem:[#allocation20_spill] sm:$0xff] %v8207_v23  ;;  %v330_v60 = vsel %vm8223_vm2, %v8228_v18, %v8195_v3  ;;  %v751_v3 = vadd.f32 %v8085_v12, %v8065_v53  ;;  %v973_v18 = vadd.f32 %v8089_v14, %v8077_v4 }
 0x199   : > { %v8211_v10 = vpop.f32.mrf.mxu0  ;;  %v8213_v47 = vpop.f32.mrf.mxu1  ;;  %v975_v12 = vadd.f32 %v8107_v26, %v666_v59  ;;  %vm10900_vm2 = vmmov %vm10899_vm0 }
 0x19a   : > { %10790 = vst [vmem:[#allocation21_spill] sm:$0xff] %v8211_v10  ;;  %10791 = vst [vmem:[#allocation22_spill] sm:$0xff] %v8213_v47  ;;  %v654_v47 = vadd.f32 %v8071_v58, %v8059_v48  ;;  %v328_v48 = vsel %vm8230_vm10, %v8235_v8, %v8201_v0  ;;  %v329_v58 = vsel %vm8244_vm11, %v8238_v61, %v8203_v17  ;;  %vm8337_vm10 = vcmp.lt.s32.totalorder %v330_v60, 16 }
 0x19b   : > { %v8219_v42 = vpop.f32.mrf.mxu0  ;;  %v8221_v54 = vpop.f32.mrf.mxu1  ;;  %v672_v0 = vadd.f32 %v8083_v11, %v8073_v62  ;;  %v976_v53 = vadd.f32 %v8101_v22, %v751_v3  ;;  %v1192_v62 = vadd.f32 %v8111_v29, %v8095_v19  ;;  %v1194_v14 = vadd.f32 %v8121_v34, %v973_v18  ;;  %vm10901_vm11 = vmmov %vm10899_vm0 }
 0x19c   : > { %10792 = vst [vmem:[#allocation23_spill] sm:$0xff] %v8219_v42  ;;  %10793 = vst [vmem:[#allocation24_spill] sm:$0xff] %v8221_v54  ;;  %v1200_v19 = vadd.f32 %v8129_v39, %v8097_v20  ;;  %vm8341_vm12 = vcmp.lt.s32.totalorder %v328_v48, 16  ;;  %vm8382_vm13 = vcmp.lt.s32.totalorder %v329_v58, 16 }
 0x19d   : > { %v8240_v42 = vpop.f32.mrf.mxu0  ;;  %v8242_v54 = vpop.f32.mrf.mxu1  ;;  %v978_v4 = vadd.f32 %v8115_v31, %v672_v0 }
 0x19e   : > { %10798 = vst [vmem:[#allocation25_spill] sm:$0xff] %v8240_v42  ;;  %10799 = vst [vmem:[#allocation26_spill] sm:$0xff] %v8242_v54  ;;  %v660_v42 = vadd.f32 %v8075_v63, %v8063_v52  ;;  %v741_v54 = vadd.f32 %v8081_v6, %v8061_v49  ;;  %v968_v52 = vadd.f32 %v8087_v13, %v8067_v56 }
 0x19f   : > { %v8250_v1 = vpop.f32.mrf.mxu0  ;;  %v8252_v23 = vpop.f32.mrf.mxu1  ;;  %v969_v49 = vadd.f32 %v8091_v15, %v654_v47  ;;  %v1199_v29 = vadd.f32 %v8131_v40, %v978_v4  ;;  %v1421_v20 = vadd.f32 %v8145_v51, %v1200_v19  ;;  %v10807_v51 = vld [vmem:[#allocation8_spill] sm:$0xff] }
 0x1a0   : > { %v970_v57 = vadd.f32 %v8093_v16, %v741_v54  ;;  %v972_v5 = vadd.f32 %v8099_v21, %v660_v42  ;;  %v1189_v56 = vadd.f32 %v8103_v24, %v968_v52  ;;  %v1195_v16 = vadd.f32 %v8119_v33, %v8105_v25  ;;  %v8313_v25 = vpop.permute.xlu0 %2327  ;;  %v8325_v42 = vpop.permute.xlu1 %2322 }
 0x1a1   : > { %v8277_v63 = vpop.f32.mrf.mxu0  ;;  %v8279_v6 = vpop.f32.mrf.mxu1  ;;  %v1190_v13 = vadd.f32 %v8109_v27, %v969_v49  ;;  %v1196_v21 = vadd.f32 %v8123_v35, %v975_v12  ;;  %v1198_v24 = vadd.f32 %v8127_v38, %v8113_v30  ;;  %v1197_v33 = vadd.f32 %v8133_v41, %v976_v53  ;;  %v10803_v41 = vld [vmem:[#allocation4_spill] sm:$0xff]  ;;  %v10815_v53 = vld [vmem:[#allocation9_spill] sm:$0xff]  ;;  %v10816_v12 = vld [vmem:[#allocation10_spill] sm:$0xff] }
 0x1a2   : > { %v1193_v11 = vadd.f32 %v8117_v32, %v972_v5  ;;  %v1191_v22 = vadd.f32 %v8125_v36, %v970_v57  ;;  %v1410_v31 = vadd.f32 %v8135_v43, %v1189_v56  ;;  %v1415_v32 = vadd.f32 %v8137_v44, %v1194_v14  ;;  %v10802_v43 = vld [vmem:[#allocation13_spill] sm:$0xff] }
 0x1a3   : > { %v8291_v15 = vpop.f32.mrf.mxu0  ;;  %v8293_v47 = vpop.f32.mrf.mxu1  ;;  %v1411_v34 = vadd.f32 %v8139_v45, %v1190_v13  ;;  %v1413_v35 = vadd.f32 %v8143_v50, %v1192_v62  ;;  %v1418_v54 = vadd.f32 %v10803_v41, %v1197_v33  ;;  %v10804_v45 = vld [vmem:[#allocation5_spill] sm:$0xff]  ;;  %v10806_v50 = vld [vmem:[#allocation7_spill] sm:$0xff]  ;;  %v1419_v49 = vadd.f32 %v10807_v51, %v1198_v24  ;;  %v10822_v33 = vld [vmem:[#allocation14_spill] sm:$0xff] }
 0x1a4   : > { %v1412_v30 = vadd.f32 %v8141_v46, %v1191_v22  ;;  %v1414_v39 = vadd.f32 %v8147_v55, %v1193_v11  ;;  %v1631_v40 = vadd.f32 %v8156_v2, %v1410_v31  ;;  %v1636_v44 = vadd.f32 %v10802_v43, %v1415_v32  ;;  %v10805_v46 = vld [vmem:[#allocation6_spill] sm:$0xff]  ;;  %v10808_v55 = vld [vmem:[#allocation15_spill] sm:$0xff]  ;;  %v2313_v19 = vpop.permute.xlu0 %2312  ;;  %v10821_v31 = vld [vmem:[#allocation12_spill] sm:$0xff] }
 0x1a5   : > { %v8306_v26 = vpop.f32.mrf.mxu1  ;;  %v7377_v27 = vpop.f32.mrf.mxu0  ;;  %v1416_v37 = vadd.f32 %v10804_v45, %v1195_v16  ;;  %v1417_v8 = vadd.f32 %v10805_v46, %v1196_v21  ;;  %v1632_v59 = vadd.f32 %v10806_v50, %v1411_v34  ;;  %v10809_v57 = vmov 0  ;;  %v10817_v62 = vld [vmem:[#allocation11_spill] sm:$0xff]  ;;  %v10819_v16 = vld [vmem:[#allocation20_spill] sm:$0xff]  ;;  %v10820_v22 = vld [vmem:[#allocation26_spill] sm:$0xff] }
 0x1a6   : > { %v1633_v0 = vadd.f32 %v10808_v55, %v1412_v30  ;;  %v1852_v2 = vadd.f32 %v8197_v7, %v1631_v40  ;;  %v1857_v18 = vadd.f32 %v8199_v9, %v1636_v44  ;;  %v10810_v57 = vsel %vm8337_vm10, 4294967295, %v10809_v57  ;;  %v10818_v9 = vld [vmem:[#allocation19_spill] sm:$0xff]  ;;  %v2318_v44 = vpop.permute.xlu1 %2317  ;;  %v10825_v46 = vld [vmem:[#allocation21_spill] sm:$0xff]  ;;  %v10827_v51 = vld [vmem:[#allocation24_spill] sm:$0xff] }
 0x1a7   : > { %v8319_v36 = vpop.f32.mrf.mxu1  ;;  %v2054_v38 = vpop.f32.mrf.mxu0  ;;  %10811 = vst [vmem:[#allocation13_spill] sm:$0xff] %v10810_v57  ;;  %v10812_v5 = vmov 0  ;;  %v1634_v56 = vadd.f32 %v10815_v53, %v1413_v35  ;;  %v1420_v13 = vadd.f32 %v10816_v12, %v1199_v29  ;;  %v1635_v4 = vadd.f32 %v10817_v62, %v1414_v39  ;;  %v10823_v29 = vld [vmem:[#allocation18_spill] sm:$0xff]  ;;  %v10828_v12 = vld [vmem:[#allocation16_spill] sm:$0xff] }
 0x1a8   : > { %v10813_v5 = vsel %vm8341_vm12, 4294967295, %v10812_v5  ;;  %v1642_v11 = vadd.f32 %v8189_v28, %v1421_v20  ;;  %v1853_v60 = vadd.f32 %v10818_v9, %v1632_v59  ;;  %v1854_v21 = vadd.f32 %v10819_v16, %v1633_v0  ;;  %v10824_v35 = vld [vmem:[#allocation22_spill] sm:$0xff] }
 0x1a9   : > { %v8331_v3 = vpop.f32.mrf.mxu1  ;;  %v7380_v52 = vpop.f32.mrf.mxu0  ;;  %10814 = vst [vmem:[#allocation4_spill] sm:$0xff] %v10813_v5  ;;  %v2073_v48 = vadd.f32 %v10820_v22, %v1852_v2  ;;  %v2078_v24 = vadd.f32 %v7377_v27, %v1857_v18  ;;  %v1637_v32 = vadd.f32 %v10821_v31, %v1416_v37  ;;  %v1638_v34 = vadd.f32 %v10822_v33, %v1417_v8  ;;  %v10826_v27 = vld [vmem:[#allocation23_spill] sm:$0xff]  ;;  %v10830_v22 = vld [vmem:[#allocation25_spill] sm:$0xff] }
 0x1aa   : > { %v1639_v30 = vadd.f32 %v10823_v29, %v1418_v54  ;;  %v1863_v39 = vadd.f32 %v10824_v35, %v1642_v11  ;;  %v2074_v40 = vadd.f32 %v8252_v23, %v1853_v60  ;;  %v2075_v43 = vadd.f32 %v2054_v38, %v1854_v21  ;;  %v10829_v23 = vld [vmem:[#allocation17_spill] sm:$0xff] }
 0x1ab   : > { %v8349_v14 = vpop.f32.mrf.mxu1  ;;  %v2064_v7 = vpop.f32.mrf.mxu0  ;;  %v1855_v50 = vadd.f32 %v10825_v46, %v1634_v56  ;;  %v1856_v59 = vadd.f32 %v10826_v27, %v1635_v4  ;;  %v1640_v62 = vadd.f32 %v10828_v12, %v1419_v49  ;;  %v1641_v38 = vadd.f32 %v10829_v23, %v1420_v13 }
 0x1ac   : > { %v1860_v37 = vadd.f32 %v10827_v51, %v1639_v30  ;;  %v2084_v55 = vadd.f32 %v7380_v52, %v1863_v39 }
 0x1ad   : > { %v2186_v28 = vpop.f32.mrf.mxu0  ;;  %v7385_v20 = vpop.f32.mrf.mxu1  ;;  %v2076_v11 = vadd.f32 %v8279_v6, %v1855_v50  ;;  %v2077_v9 = vadd.f32 %v8293_v47, %v1856_v59 }
 0x1ae   : > { %v2294_v41 = vadd.f32 %v2186_v28, %v2073_v48  ;;  %v2299_v45 = vadd.f32 %v7385_v20, %v2078_v24  ;;  %v2081_v4 = vadd.f32 %v2064_v7, %v1860_v37  ;;  %v1858_v48 = vadd.f32 %v10830_v22, %v1637_v32 }
 0x1af   : > { %v2188_v8 = vpop.f32.mrf.mxu0  ;;  %v2275_v0 = vpop.f32.mrf.mxu1  ;;  %v1859_v24 = vadd.f32 %v8250_v1, %v1638_v34  ;;  %v1861_v20 = vadd.f32 %v8277_v63, %v1640_v62 }
 0x1b0   : > { %v2335_v54 = vadd.f32 %v2318_v44, %v2299_v45  ;;  %v2295_v2 = vadd.f32 %v2188_v8, %v2074_v40  ;;  %v2296_v18 = vadd.f32 %v2275_v0, %v2075_v43  ;;  %v2330_v53 = vadd.f32 %v2313_v19, %v2294_v41 }
 0x1b1   : > { %v2192_v56 = vpop.f32.mrf.mxu0  ;;  %v7388_v60 = vpop.f32.mrf.mxu1  ;;  %v2079_v1 = vadd.f32 %v8306_v26, %v1858_v48  ;;  %v1862_v26 = vadd.f32 %v8291_v15, %v1641_v38  ;;  %v2080_v40 = vadd.f32 %v8319_v36, %v1859_v24  ;;  %v2082_v58 = vadd.f32 %v8331_v3, %v1861_v20 }
 0x1b2   : > { %v2347_v16 = vmax.f32 %v2335_v54, 0.0  ;;  %v2305_v21 = vadd.f32 %v7388_v60, %v2084_v55  ;;  %v2342_v52 = vmax.f32 %v2330_v53, 0.0  ;;  %v2331_v29 = vadd.f32 %v2313_v19, %v2295_v2 }
 0x1b3   : > { %v2194_v31 = vpop.f32.mrf.mxu0  ;;  %v2285_v33 = vpop.f32.mrf.mxu1  ;;  %v2332_v49 = vadd.f32 %v2313_v19, %v2296_v18  ;;  %v2297_v30 = vadd.f32 %v2192_v56, %v2076_v11  ;;  %v10831_v19 = vmov 0  ;;  %v2083_v63 = vadd.f32 %v8349_v14, %v1862_v26 }
 0x1b4   : > { %v2341_v13 = vadd.f32 %v8313_v25, %v2305_v21  ;;  %v2298_v6 = vadd.f32 %v2194_v31, %v2077_v9  ;;  %v2302_v35 = vadd.f32 %v2285_v33, %v2081_v4  ;;  %v2365_v47 = vsel %vm8337_vm10, %v2347_v16, 0.0 }
 0x1b5   : > { %v2198_v7 = vpop.f32.mrf.mxu0  ;;  %v2360_v39 = vsel %vm8341_vm12, %v2342_v52, 0.0  ;;  %v2343_v28 = vmax.f32 %v2331_v29, 0.0  ;;  %v2344_v32 = vmax.f32 %v2332_v49, 0.0  ;;  %2394 = vrot.lane.b32.xlu1 %v2365_v47, %s7671_s26  ;;  %v10832_v19 = vsel %vm8382_vm13, 4294967295, %v10831_v19 }
 0x1b6   : > { %v2338_v34 = vadd.f32 %v8325_v42, %v2302_v35  ;;  %2384 = vrot.lane.b32.xlu0 %v2360_v39, %s7671_s26  ;;  %10833 = vst [vmem:[#allocation5_spill] sm:$0xff] %v10832_v19  ;;  %v2333_v41 = vadd.f32 %v2318_v44, %v2297_v30  ;;  %v2353_v45 = vmax.f32 %v2341_v13, 0.0  ;;  %v2334_v46 = vadd.f32 %v2318_v44, %v2298_v6 }
 0x1b7   : > { %v2200_v43 = vpop.f32.mrf.mxu0  ;;  %v2300_v50 = vadd.f32 %v2198_v7, %v2079_v1  ;;  %v2361_v17 = vsel %vm8382_vm13, %v2343_v28, 0.0  ;;  %v2362_v61 = vsel %vm8337_vm10, %v2344_v32, 0.0 }
 0x1b8   : > { %v2350_v27 = vmax.f32 %v2338_v34, 0.0  ;;  %v2301_v10 = vadd.f32 %v2200_v43, %v2080_v40  ;;  %v2345_v36 = vmax.f32 %v2333_v41, 0.0  ;;  %v2346_v44 = vmax.f32 %v2334_v46, 0.0 }
 0x1b9   : > { %v2204_v59 = vpop.f32.mrf.mxu0  ;;  %2386 = vrot.lane.b32.xlu1 %v2361_v17, %s7671_s26  ;;  %v2336_v51 = vadd.f32 %v8325_v42, %v2300_v50  ;;  %v2371_v37 = vsel %vm8337_vm10, %v2353_v45, 0.0 }
 0x1ba   : > { %2388 = vrot.lane.b32.xlu0 %v2362_v61, %s7671_s26  ;;  %v2337_v55 = vadd.f32 %v8325_v42, %v2301_v10  ;;  %v2303_v8 = vadd.f32 %v2204_v59, %v2082_v58  ;;  %v2368_v54 = vsel %vm8337_vm10, %v2350_v27, 0.0  ;;  %v2363_v3 = vsel %vm8341_vm12, %v2345_v36, 0.0 }
 0x1bb   : > { %v2206_v15 = vpop.f32.mrf.mxu0  ;;  %v2364_v14 = vsel %vm8382_vm13, %v2346_v44, 0.0  ;;  %v2348_v2 = vmax.f32 %v2336_v51, 0.0 }
 0x1bc   : > { %v2304_v0 = vadd.f32 %v2206_v15, %v2083_v63  ;;  %v2349_v18 = vmax.f32 %v2337_v55, 0.0  ;;  %v2339_v53 = vadd.f32 %v8313_v25, %v2303_v8 }
 0x1bd   : > { %2406 = vrot.lane.b32.xlu1 %v2371_v37, %s7671_s26  ;;  %v2366_v38 = vsel %vm8341_vm12, %v2348_v2, 0.0 }
 0x1be   : > { %2400 = vrot.lane.b32.xlu0 %v2368_v54, %s7671_s26  ;;  %v2340_v42 = vadd.f32 %v8313_v25, %v2304_v0  ;;  %v2351_v12 = vmax.f32 %v2339_v53, 0.0  ;;  %v2367_v23 = vsel %vm8382_vm13, %v2349_v18, 0.0 }
 0x1c0   : > { %v2352_v62 = vmax.f32 %v2340_v42, 0.0  ;;  %v2369_v11 = vsel %vm8341_vm12, %v2351_v12, 0.0 }
 0x1c1   : > { %2390 = vrot.lane.b32.xlu1 %v2363_v3, %s7671_s26 }
 0x1c2   : > { %2392 = vrot.lane.b32.xlu0 %v2364_v14, %s7671_s26  ;;  %v2370_v25 = vsel %vm8382_vm13, %v2352_v62, 0.0 }
 0x1c5   : > { %2398 = vrot.lane.b32.xlu1 %v2367_v23, %s7671_s26 }
 0x1c6   : > { %2396 = vrot.lane.b32.xlu0 %v2366_v38, %s7671_s26 }
 0x1c9   : > { %2402 = vrot.lane.b32.xlu1 %v2369_v11, %s7671_s26 }
 0x1ca   : > { %2404 = vrot.lane.b32.xlu0 %v2370_v25, %s7671_s26 }
 0x227   : > { %v2395_v9 = vpop.permute.xlu1 %2394 }
 0x228   : > { %v2385_v56 = vpop.permute.xlu0 %2384  ;;  %v2438_v60 = vsel %vm2408_vm14, %v2395_v9, 0.0 }
 0x229   : > { %v8427_v4 = vsel %vm2408_vm14, 0.0, %v2385_v56  ;;  %2449 = vst.msk [vmem:[#allocation2 + $0x38] sm:$0xff] %vm2444_vm15, %v2438_v60 }
 0x22a   : > { %2499 = vrot.lane.b32.xlu0 %v8427_v4, %s7661_s9 }
 0x22b   : > { %v2387_v16 = vpop.permute.xlu1 %2386 }
 0x22c   : > { %v2389_v21 = vpop.permute.xlu0 %2388  ;;  %v8433_v52 = vsel %vm2408_vm14, %v2385_v56, %v2387_v16 }
 0x22d   : > { %v8436_v22 = vsel %vm2408_vm14, %v2387_v16, %v2389_v21  ;;  %v2437_v48 = vsel %vm2408_vm14, %v2389_v21, 0.0 }
 0x22e   : > { %2445 = vst.msk [vmem:[#allocation2 + $0x18] sm:$0xff] %vm2444_vm15, %v2437_v48 }
 0x22f   : > { %v2407_v24 = vpop.permute.xlu1 %2406 }
 0x230   : > { %v2401_v31 = vpop.permute.xlu0 %2400  ;;  %v2440_v33 = vsel %vm2408_vm14, %v2407_v24, 0.0  ;;  %v8442_v49 = vld [vmem:[#allocation2 + $0x38] sm:$0xff] }
 0x231   : > { %v2439_v29 = vsel %vm2408_vm14, %v2401_v31, 0.0  ;;  %2457 = vst.msk [vmem:[#allocation2 + $0x78] sm:$0xff] %vm2444_vm15, %v2440_v33  ;;  %2513 = vrot.lane.b32.xlu1 %v8442_v49, %s7661_s9  ;;  %2755 = vrot.lane.b32.xlu0 %v8442_v49, %s7662_s10 }
 0x232   : > { %2453 = vst.msk [vmem:[#allocation2 + $0x58] sm:$0xff] %vm2444_vm15, %v2439_v29 }
 0x233   : > { %v2391_v30 = vpop.permute.xlu1 %2390 }
 0x234   : > { %v2393_v13 = vpop.permute.xlu0 %2392  ;;  %v8451_v6 = vsel %vm2408_vm14, 0.0, %v2391_v30 }
 0x235   : > { %v8454_v35 = vsel %vm2408_vm14, %v2391_v30, %v2393_v13  ;;  %v8457_v47 = vsel %vm2408_vm14, %v2393_v13, %v2395_v9  ;;  %3002 = vrot.lane.b32.xlu1 %v8442_v49, %s7663_s11  ;;  %2741 = vrot.lane.b32.xlu0 %v8427_v4, %s7662_s10  ;;  %v8505_v41 = vld [vmem:[#allocation2 + $0x18] sm:$0xff]  ;;  %v8708_v9 = vld [vmem:[%s10722_s3 + $0x20] sm:$0xff] }
 0x236   : > { %7397 = vmatprep.mubr.msk.f32.mxu0 %vm2408_vm14, %v8708_v9 }
 0x237   : > { %v2399_v7 = vpop.permute.xlu1 %2398 }
 0x238   : > { %v2397_v39 = vpop.permute.xlu0 %2396  ;;  %v8464_v28 = vsel %vm2408_vm14, %v2399_v7, %v2401_v31  ;;  %v8523_v45 = vld [vmem:[#allocation2 + $0x78] sm:$0xff] }
 0x239   : > { %v8467_v32 = vsel %vm2408_vm14, %v2397_v39, %v2399_v7  ;;  %v8470_v1 = vsel %vm2408_vm14, 0.0, %v2397_v39  ;;  %3520 = vrot.lane.b32.xlu1 %v8442_v49, %s7665_s13  ;;  %2988 = vrot.lane.b32.xlu0 %v8427_v4, %s7663_s11  ;;  %v8565_v46 = vld [vmem:[#allocation2 + $0x58] sm:$0xff] }
 0x23b   : > { %v2403_v34 = vpop.permute.xlu1 %2402 }
 0x23c   : > { %v2405_v20 = vpop.permute.xlu0 %2404  ;;  %v8477_v26 = vsel %vm2408_vm14, 0.0, %v2403_v34 }
 0x23d   : > { %v8480_v40 = vsel %vm2408_vm14, %v2403_v34, %v2405_v20  ;;  %v8483_v43 = vsel %vm2408_vm14, %v2405_v20, %v2407_v24  ;;  %2503 = vrot.lane.b32.xlu1 %v8436_v22, %s7661_s9  ;;  %3261 = vrot.lane.b32.xlu0 %v8442_v49, %s7664_s12 }
 0x241   : > { %2745 = vrot.lane.b32.xlu1 %v8436_v22, %s7662_s10  ;;  %3247 = vrot.lane.b32.xlu0 %v8427_v4, %s7664_s12 }
 0x245   : > { %2743 = vrot.lane.b32.xlu1 %v8433_v52, %s7662_s10  ;;  %3506 = vrot.lane.b32.xlu0 %v8427_v4, %s7665_s13 }
 0x249   : > { %2992 = vrot.lane.b32.xlu1 %v8436_v22, %s7663_s11  ;;  %3779 = vrot.lane.b32.xlu0 %v8442_v49, %s7666_s14 }
 0x24d   : > { %3251 = vrot.lane.b32.xlu1 %v8436_v22, %s7664_s12  ;;  %2501 = vrot.lane.b32.xlu0 %v8433_v52, %s7661_s9 }
 0x251   : > { %3249 = vrot.lane.b32.xlu1 %v8433_v52, %s7664_s12  ;;  %2505 = vrot.lane.b32.xlu0 %v8505_v41, %s7661_s9 }
 0x255   : > { %3510 = vrot.lane.b32.xlu1 %v8436_v22, %s7665_s13  ;;  %2747 = vrot.lane.b32.xlu0 %v8505_v41, %s7662_s10 }
 0x259   : > { %3769 = vrot.lane.b32.xlu1 %v8436_v22, %s7666_s14  ;;  %2990 = vrot.lane.b32.xlu0 %v8433_v52, %s7663_s11 }
 0x25d   : > { %2507 = vrot.lane.b32.xlu1 %v8451_v6, %s7661_s9  ;;  %2994 = vrot.lane.b32.xlu0 %v8505_v41, %s7663_s11 }
 0x261   : > { %2529 = vrot.lane.b32.xlu1 %v8523_v45, %s7661_s9  ;;  %3253 = vrot.lane.b32.xlu0 %v8505_v41, %s7664_s12 }
 0x265   : > { %2996 = vrot.lane.b32.xlu1 %v8451_v6, %s7663_s11  ;;  %3508 = vrot.lane.b32.xlu0 %v8433_v52, %s7665_s13 }
 0x269   : > { %3018 = vrot.lane.b32.xlu1 %v8523_v45, %s7663_s11  ;;  %3512 = vrot.lane.b32.xlu0 %v8505_v41, %s7665_s13 }
 0x26d   : > { %3514 = vrot.lane.b32.xlu1 %v8451_v6, %s7665_s13  ;;  %3771 = vrot.lane.b32.xlu0 %v8505_v41, %s7666_s14 }
 0x271   : > { %3536 = vrot.lane.b32.xlu1 %v8523_v45, %s7665_s13  ;;  %2771 = vrot.lane.b32.xlu0 %v8523_v45, %s7662_s10 }
 0x275   : > { %2509 = vrot.lane.b32.xlu1 %v8454_v35, %s7661_s9  ;;  %2749 = vrot.lane.b32.xlu0 %v8451_v6, %s7662_s10 }
 0x279   : > { %2753 = vrot.lane.b32.xlu1 %v8457_v47, %s7662_s10  ;;  %3277 = vrot.lane.b32.xlu0 %v8523_v45, %s7664_s12 }
 0x27d   : > { %2751 = vrot.lane.b32.xlu1 %v8454_v35, %s7662_s10  ;;  %3255 = vrot.lane.b32.xlu0 %v8451_v6, %s7664_s12 }
 0x281   : > { %2998 = vrot.lane.b32.xlu1 %v8454_v35, %s7663_s11  ;;  %3795 = vrot.lane.b32.xlu0 %v8523_v45, %s7666_s14 }
 0x285   : > { %3259 = vrot.lane.b32.xlu1 %v8457_v47, %s7664_s12  ;;  %2511 = vrot.lane.b32.xlu0 %v8457_v47, %s7661_s9 }
 0x289   : > { %3257 = vrot.lane.b32.xlu1 %v8454_v35, %s7664_s12  ;;  %2521 = vrot.lane.b32.xlu0 %v8565_v46, %s7661_s9 }
 0x28d   : > { %3516 = vrot.lane.b32.xlu1 %v8454_v35, %s7665_s13  ;;  %2763 = vrot.lane.b32.xlu0 %v8565_v46, %s7662_s10 }
 0x291   : > { %3777 = vrot.lane.b32.xlu1 %v8457_v47, %s7666_s14  ;;  %3000 = vrot.lane.b32.xlu0 %v8457_v47, %s7663_s11 }
 0x295   : > { %3775 = vrot.lane.b32.xlu1 %v8454_v35, %s7666_s14  ;;  %3010 = vrot.lane.b32.xlu0 %v8565_v46, %s7663_s11 }
 0x299   : > { %2519 = vrot.lane.b32.xlu1 %v8464_v28, %s7661_s9  ;;  %3269 = vrot.lane.b32.xlu0 %v8565_v46, %s7664_s12 }
 0x29c   : > { %v8591_v50 = vpop.permute.xlu0 %2499 }
 0x29d   : > { %2761 = vrot.lane.b32.xlu1 %v8464_v28, %s7662_s10  ;;  %3518 = vrot.lane.b32.xlu0 %v8457_v47, %s7665_s13 }
 0x2a1   : > { %2759 = vrot.lane.b32.xlu1 %v8467_v32, %s7662_s10  ;;  %3528 = vrot.lane.b32.xlu0 %v8565_v46, %s7665_s13 }
 0x2a3   : > { %v8597_v27 = vpop.permute.xlu1 %2513  ;;  %v8599_v10 = vpop.permute.xlu0 %2755 }
 0x2a5   : > { %3008 = vrot.lane.b32.xlu1 %v8464_v28, %s7663_s11  ;;  %3787 = vrot.lane.b32.xlu0 %v8565_v46, %s7666_s14 }
 0x2a7   : > { %v8605_v59 = vpop.permute.xlu1 %3002  ;;  %v8607_v17 = vpop.permute.xlu0 %2741 }
 0x2a9   : > { %3267 = vrot.lane.b32.xlu1 %v8464_v28, %s7664_s12  ;;  %2515 = vrot.lane.b32.xlu0 %v8470_v1, %s7661_s9 }
 0x2ab   : > { %v8613_v61 = vpop.permute.xlu1 %3520  ;;  %v8615_v58 = vpop.permute.xlu0 %2988 }
 0x2ac   : > { %10834 = vst [vmem:[#allocation6_spill] sm:$0xff] %v8613_v61 }
 0x2ad   : > { %3265 = vrot.lane.b32.xlu1 %v8467_v32, %s7664_s12  ;;  %2757 = vrot.lane.b32.xlu0 %v8470_v1, %s7662_s10 }
 0x2af   : > { %v8621_v63 = vpop.permute.xlu1 %2503  ;;  %v8623_v15 = vpop.permute.xlu0 %3261 }
 0x2b1   : > { %3526 = vrot.lane.b32.xlu1 %v8464_v28, %s7665_s13  ;;  %3004 = vrot.lane.b32.xlu0 %v8470_v1, %s7663_s11 }
 0x2b3   : > { %v8629_v36 = vpop.permute.xlu1 %2745  ;;  %v8631_v44 = vpop.permute.xlu0 %3247 }
 0x2b4   : > { %10835 = vst [vmem:[#allocation7_spill] sm:$0xff] %v8631_v44 }
 0x2b5   : > { %3785 = vrot.lane.b32.xlu1 %v8464_v28, %s7666_s14  ;;  %3263 = vrot.lane.b32.xlu0 %v8470_v1, %s7664_s12 }
 0x2b7   : > { %v8637_v51 = vpop.permute.xlu1 %2743  ;;  %v8639_v37 = vpop.permute.xlu0 %3506 }
 0x2b8   : > { %10836 = vst [vmem:[#allocation8_spill] sm:$0xff] %v8639_v37 }
 0x2b9   : > { %3783 = vrot.lane.b32.xlu1 %v8467_v32, %s7666_s14  ;;  %3522 = vrot.lane.b32.xlu0 %v8470_v1, %s7665_s13 }
 0x2bb   : > { %v8645_v55 = vpop.permute.xlu1 %2992  ;;  %v8647_v8 = vpop.permute.xlu0 %3779 }
 0x2bc   : > { %10837 = vst [vmem:[#allocation15_spill] sm:$0xff] %v8647_v8 }
 0x2bd   : > { %2523 = vrot.lane.b32.xlu1 %v8477_v26, %s7661_s9  ;;  %3781 = vrot.lane.b32.xlu0 %v8470_v1, %s7666_s14 }
 0x2bf   : > { %v8653_v0 = vpop.permute.xlu1 %3251  ;;  %v8655_v54 = vpop.permute.xlu0 %2501 }
 0x2c0   : > { %10838 = vst [vmem:[#allocation9_spill] sm:$0xff] %v8653_v0 }
 0x2c1   : > { %3012 = vrot.lane.b32.xlu1 %v8477_v26, %s7663_s11  ;;  %2517 = vrot.lane.b32.xlu0 %v8467_v32, %s7661_s9 }
 0x2c3   : > { %v8661_v3 = vpop.permute.xlu1 %3249  ;;  %v8663_v14 = vpop.permute.xlu0 %2505 }
 0x2c4   : > { %10839 = vst [vmem:[#allocation10_spill] sm:$0xff] %v8661_v3 }
 0x2c5   : > { %3530 = vrot.lane.b32.xlu1 %v8477_v26, %s7665_s13  ;;  %3006 = vrot.lane.b32.xlu0 %v8467_v32, %s7663_s11 }
 0x2c7   : > { %v8669_v2 = vpop.permute.xlu1 %3510  ;;  %v8671_v18 = vpop.permute.xlu0 %2747 }
 0x2c8   : > { %10840 = vst [vmem:[#allocation11_spill] sm:$0xff] %v8669_v2 }
 0x2c9   : > { %2525 = vrot.lane.b32.xlu1 %v8480_v40, %s7661_s9  ;;  %3524 = vrot.lane.b32.xlu0 %v8467_v32, %s7665_s13 }
 0x2cb   : > { %v8677_v53 = vpop.permute.xlu1 %3769  ;;  %v8679_v42 = vpop.permute.xlu0 %2990 }
 0x2cc   : > { %10841 = vst [vmem:[#allocation19_spill] sm:$0xff] %v8677_v53 }
 0x2cd   : > { %3767 = vrot.lane.b32.xlu1 %v8433_v52, %s7666_s14  ;;  %2765 = vrot.lane.b32.xlu0 %v8477_v26, %s7662_s10 }
 0x2cf   : > { %v8685_v12 = vpop.permute.xlu1 %2507  ;;  %v8687_v62 = vpop.permute.xlu0 %2994 }
 0x2d1   : > { %4048 = vrot.lane.b32.xlu1 %v8477_v26, %s7667_s15  ;;  %3271 = vrot.lane.b32.xlu0 %v8477_v26, %s7664_s12 }
 0x2d3   : > { %v8693_v23 = vpop.permute.xlu1 %2529  ;;  %v8695_v38 = vpop.permute.xlu0 %3253 }
 0x2d4   : > { %10842 = vst [vmem:[#allocation20_spill] sm:$0xff] %v8695_v38 }
 0x2d5   : > { %4044 = vrot.lane.b32.xlu1 %v8464_v28, %s7667_s15  ;;  %3789 = vrot.lane.b32.xlu0 %v8477_v26, %s7666_s14 }
 0x2d7   : > { %v8701_v11 = vpop.permute.xlu1 %2996  ;;  %v8703_v25 = vpop.permute.xlu0 %3508 }
 0x2d8   : > { %10843 = vst [vmem:[#allocation26_spill] sm:$0xff] %v8703_v25 }
 0x2d9   : > { %4034 = vrot.lane.b32.xlu1 %v8454_v35, %s7667_s15  ;;  %2527 = vrot.lane.b32.xlu0 %v8483_v43, %s7661_s9 }
 0x2db   : > { %v8716_v56 = vpop.permute.xlu1 %3018  ;;  %v8718_v60 = vpop.permute.xlu0 %3512 }
 0x2dc   : > { %10844 = vst [vmem:[#allocation12_spill] sm:$0xff] %v8718_v60 }
 0x2dd   : > { %4032 = vrot.lane.b32.xlu1 %v8451_v6, %s7667_s15  ;;  %3773 = vrot.lane.b32.xlu0 %v8451_v6, %s7666_s14 }
 0x2df   : > { %v8724_v16 = vpop.permute.xlu1 %3514  ;;  %v8726_v21 = vpop.permute.xlu0 %3771 }
 0x2e0   : > { %10845 = vst [vmem:[#allocation14_spill] sm:$0xff] %v8724_v16  ;;  %10846 = vst [vmem:[#allocation18_spill] sm:$0xff] %v8726_v21 }
 0x2e1   : > { %2769 = vrot.lane.b32.xlu1 %v8483_v43, %s7662_s10  ;;  %3765 = vrot.lane.b32.xlu0 %v8427_v4, %s7666_s14 }
 0x2e3   : > { %v8732_v48 = vpop.permute.xlu1 %3536  ;;  %v8734_v24 = vpop.permute.xlu0 %2771 }
 0x2e4   : > { %10847 = vst [vmem:[#allocation22_spill] sm:$0xff] %v8732_v48 }
 0x2e5   : > { %2767 = vrot.lane.b32.xlu1 %v8480_v40, %s7662_s10  ;;  %4042 = vrot.lane.b32.xlu0 %v8467_v32, %s7667_s15 }
 0x2e7   : > { %v8740_v31 = vpop.permute.xlu1 %2509  ;;  %v8742_v33 = vpop.permute.xlu0 %2749 }
 0x2e9   : > { %4028 = vrot.lane.b32.xlu1 %v8436_v22, %s7667_s15  ;;  %4040 = vrot.lane.b32.xlu0 %v8470_v1, %s7667_s15 }
 0x2eb   : > { %v8748_v29 = vpop.permute.xlu1 %2753  ;;  %v8750_v30 = vpop.permute.xlu0 %3277 }
 0x2ed   : > { %4054 = vrot.lane.b32.xlu1 %v8523_v45, %s7667_s15  ;;  %4036 = vrot.lane.b32.xlu0 %v8457_v47, %s7667_s15 }
 0x2ef   : > { %v8756_v13 = vpop.permute.xlu1 %2751  ;;  %v8758_v7 = vpop.permute.xlu0 %3255 }
 0x2f0   : > { %10848 = vst [vmem:[#allocation21_spill] sm:$0xff] %v8758_v7 }
 0x2f1   : > { %4038 = vrot.lane.b32.xlu1 %v8442_v49, %s7667_s15  ;;  %3014 = vrot.lane.b32.xlu0 %v8480_v40, %s7663_s11 }
 0x2f3   : > { %v8764_v39 = vpop.permute.xlu1 %2998  ;;  %v8766_v34 = vpop.permute.xlu0 %3795 }
 0x2f4   : > { %10849 = vst [vmem:[#allocation23_spill] sm:$0xff] %v8766_v34 }
 0x2f5   : > { %3016 = vrot.lane.b32.xlu1 %v8483_v43, %s7663_s11  ;;  %4026 = vrot.lane.b32.xlu0 %v8433_v52, %s7667_s15 }
 0x2f7   : > { %v8772_v20 = vpop.permute.xlu1 %3259  ;;  %v8774_v19 = vpop.permute.xlu0 %2511 }
 0x2f9   : > { %4303 = vrot.lane.b32.xlu1 %v8464_v28, %s7668_s16  ;;  %4024 = vrot.lane.b32.xlu0 %v8427_v4, %s7667_s15 }
 0x2fb   : > { %v8780_v57 = vpop.permute.xlu1 %3257  ;;  %v8782_v5 = vpop.permute.xlu0 %2521 }
 0x2fc   : > { %10850 = vst [vmem:[#allocation24_spill] sm:$0xff] %v8780_v57 }
 0x2fd   : > { %3275 = vrot.lane.b32.xlu1 %v8483_v43, %s7664_s12  ;;  %4046 = vrot.lane.b32.xlu0 %v8565_v46, %s7667_s15 }
 0x2ff   : > { %v8788_v53 = vpop.permute.xlu1 %3516  ;;  %v8790_v21 = vpop.permute.xlu0 %2763 }
 0x300   : > { %10851 = vst [vmem:[#allocation16_spill] sm:$0xff] %v8788_v53 }
 0x301   : > { %3273 = vrot.lane.b32.xlu1 %v8480_v40, %s7664_s12  ;;  %4030 = vrot.lane.b32.xlu0 %v8505_v41, %s7667_s15 }
 0x303   : > { %v8796_v8 = vpop.permute.xlu1 %3777  ;;  %v8798_v34 = vpop.permute.xlu0 %3000 }
 0x304   : > { %10852 = vst [vmem:[#allocation17_spill] sm:$0xff] %v8796_v8 }
 0x305   : > { %4295 = vrot.lane.b32.xlu1 %v8457_v47, %s7668_s16  ;;  %4313 = vrot.lane.b32.xlu0 %v8523_v45, %s7668_s16 }
 0x307   : > { %v8804_v37 = vpop.permute.xlu1 %3775  ;;  %v8806_v60 = vpop.permute.xlu0 %3010 }
 0x308   : > { %10853 = vst [vmem:[#allocation25_spill] sm:$0xff] %v8804_v37 }
 0x309   : > { %4301 = vrot.lane.b32.xlu1 %v8467_v32, %s7668_s16  ;;  %3532 = vrot.lane.b32.xlu0 %v8480_v40, %s7665_s13 }
 0x30b   : > { %v8812_v25 = vpop.permute.xlu1 %2519  ;;  %v8814_v8 = vpop.permute.xlu0 %3269 }
 0x30d   : > { %3534 = vrot.lane.b32.xlu1 %v8483_v43, %s7665_s13  ;;  %4305 = vrot.lane.b32.xlu0 %v8565_v46, %s7668_s16 }
 0x30f   : > { %v8820_v2 = vpop.permute.xlu1 %2761  ;;  %v8822_v37 = vpop.permute.xlu0 %3518 }
 0x310   : > { %10854 = vst [vmem:[#allocation27_spill] sm:$0xff] %v8822_v37 }
 0x311   : > { %4287 = vrot.lane.b32.xlu1 %v8436_v22, %s7668_s16  ;;  %4307 = vrot.lane.b32.xlu0 %v8477_v26, %s7668_s16 }
 0x313   : > { %v8828_v16 = vpop.permute.xlu1 %2759  ;;  %v8830_v61 = vpop.permute.xlu0 %3528 }
 0x314   : > { %10855 = vst [vmem:[#allocation28_spill] sm:$0xff] %v8830_v61 }
 0x315   : > { %4293 = vrot.lane.b32.xlu1 %v8454_v35, %s7668_s16  ;;  %4297 = vrot.lane.b32.xlu0 %v8442_v49, %s7668_s16 }
 0x317   : > { %v8836_v53 = vpop.permute.xlu1 %3008  ;;  %v8838_v48 = vpop.permute.xlu0 %3787 }
 0x318   : > { %10856 = vst [vmem:[#allocation29_spill] sm:$0xff] %v8838_v48 }
 0x319   : > { %3793 = vrot.lane.b32.xlu1 %v8483_v43, %s7666_s14  ;;  %4299 = vrot.lane.b32.xlu0 %v8470_v1, %s7668_s16 }
 0x31b   : > { %v8844_v37 = vpop.permute.xlu1 %3267  ;;  %v8846_v44 = vpop.permute.xlu0 %2515 }
 0x31d   : > { %3791 = vrot.lane.b32.xlu1 %v8480_v40, %s7666_s14  ;;  %4289 = vrot.lane.b32.xlu0 %v8505_v41, %s7668_s16 }
 0x31f   : > { %v8852_v61 = vpop.permute.xlu1 %3265  ;;  %v8854_v3 = vpop.permute.xlu0 %2757 }
 0x320   : > { %10857 = vst [vmem:[#allocation30_spill] sm:$0xff] %v8852_v61 }
 0x321   : > { %4285 = vrot.lane.b32.xlu1 %v8433_v52, %s7668_s16  ;;  %4050 = vrot.lane.b32.xlu0 %v8480_v40, %s7667_s15 }
 0x323   : > { %v8860_v48 = vpop.permute.xlu1 %3526  ;;  %v8862_v7 = vpop.permute.xlu0 %3004 }
 0x324   : > { %10858 = vst [vmem:[#allocation31_spill] sm:$0xff] %v8860_v48 }
 0x325   : > { %4052 = vrot.lane.b32.xlu1 %v8483_v43, %s7667_s15  ;;  %4291 = vrot.lane.b32.xlu0 %v8451_v6, %s7668_s16 }
 0x327   : > { %v8868_v57 = vpop.permute.xlu1 %3785  ;;  %v8870_v0 = vpop.permute.xlu0 %3263 }
 0x328   : > { %10859 = vst [vmem:[#allocation32_spill] sm:$0xff] %v8868_v57 }
 0x329   : > { %4566 = vrot.lane.b32.xlu1 %v8477_v26, %s7669_s17  ;;  %4283 = vrot.lane.b32.xlu0 %v8427_v4, %s7668_s16 }
 0x32b   : > { %v8876_v38 = vpop.permute.xlu1 %3783  ;;  %v8878_v48 = vpop.permute.xlu0 %3522 }
 0x32c   : > { %10860 = vst [vmem:[#allocation33_spill] sm:$0xff] %v8876_v38  ;;  %10861 = vst [vmem:[#allocation34_spill] sm:$0xff] %v8878_v48 }
 0x32d   : > { %4562 = vrot.lane.b32.xlu1 %v8464_v28, %s7669_s17  ;;  %4560 = vrot.lane.b32.xlu0 %v8467_v32, %s7669_s17 }
 0x32f   : > { %v2524_v61 = vpop.permute.xlu1 %2523  ;;  %v8884_v57 = vpop.permute.xlu0 %3781 }
 0x330   : > { %10862 = vst [vmem:[#allocation35_spill] sm:$0xff] %v8884_v57 }
 0x331   : > { %4552 = vrot.lane.b32.xlu1 %v8454_v35, %s7669_s17  ;;  %4558 = vrot.lane.b32.xlu0 %v8470_v1, %s7669_s17 }
 0x333   : > { %v8890_v26 = vpop.permute.xlu1 %3012  ;;  %v2518_v38 = vpop.permute.xlu0 %2517 }
 0x335   : > { %4311 = vrot.lane.b32.xlu1 %v8483_v43, %s7668_s16  ;;  %4554 = vrot.lane.b32.xlu0 %v8457_v47, %s7669_s17 }
 0x337   : > { %v8896_v28 = vpop.permute.xlu1 %3530  ;;  %v8898_v32 = vpop.permute.xlu0 %3006 }
 0x339   : > { %4309 = vrot.lane.b32.xlu1 %v8480_v40, %s7668_s16  ;;  %4568 = vrot.lane.b32.xlu0 %v8480_v40, %s7669_s17 }
 0x33b   : > { %v2526_v35 = vpop.permute.xlu1 %2525  ;;  %v8904_v1 = vpop.permute.xlu0 %3524 }
 0x33d   : > { %4570 = vrot.lane.b32.xlu1 %v8483_v43, %s7669_s17  ;;  %4544 = vrot.lane.b32.xlu0 %v8433_v52, %s7669_s17 }
 0x33f   : > { %v8910_v47 = vpop.permute.xlu1 %3767  ;;  %v8912_v57 = vpop.permute.xlu0 %2765 }
 0x341   : > { %4550 = vrot.lane.b32.xlu1 %v8451_v6, %s7669_s17  ;;  %4542 = vrot.lane.b32.xlu0 %v8427_v4, %s7669_s17  ;;  %v4798_v4 = vld [vmem:[%s10723_s4 + $0x10] sm:$0xff] }
 0x343   : > { %v8918_v40 = vpop.permute.xlu1 %4048  ;;  %v8920_v48 = vpop.permute.xlu0 %3271 }
 0x344   : > { %10863 = vst [vmem:[#allocation36_spill] sm:$0xff] %v8918_v40 }
 0x345   : > { %4546 = vrot.lane.b32.xlu1 %v8436_v22, %s7669_s17  ;;  %4564 = vrot.lane.b32.xlu0 %v8565_v46, %s7669_s17 }
 0x347   : > { %v8926_v52 = vpop.permute.xlu1 %4044  ;;  %v8928_v43 = vpop.permute.xlu0 %3789 }
 0x348   : > { %10864 = vst [vmem:[#allocation37_spill] sm:$0xff] %v8926_v52 }
 0x349   : > { %4572 = vrot.lane.b32.xlu1 %v8523_v45, %s7669_s17  ;;  %4548 = vrot.lane.b32.xlu0 %v8505_v41, %s7669_s17  ;;  %v4799_v41 = vld [vmem:[%s10723_s4 + $0x18] sm:$0xff]  ;;  %v2540_v45 = vsel %vm357_vm1, %v2524_v61, %v2526_v35  ;;  %v2537_v61 = vsel %vm357_vm1, %v8846_v44, %v2518_v38  ;;  %v2534_v44 = vsel %vm357_vm1, %v8685_v12, %v8740_v31  ;;  %v7023_v12 = vld [vmem:[%s10722_s3 + $0x28] sm:$0xff] }
 0x34b   : > { %v8937_v6 = vpop.permute.xlu1 %4034  ;;  %v2528_v22 = vpop.permute.xlu0 %2527 }
 0x34c   : > { %10865 = vst [vmem:[#allocation38_spill] sm:$0xff] %v8937_v6  ;;  %v2541_v40 = vsel %vm357_vm1, %v2526_v35, %v2528_v22  ;;  %v2542_v46 = vsel %vm357_vm1, %v2528_v22, %v8693_v23  ;;  %v2538_v6 = vsel %vm357_vm1, %v2518_v38, %v8812_v25  ;;  %v4797_v35 = vld [vmem:[%s10723_s4 + $0x8] sm:$0xff] }
 0x34d   : > { %4556 = vrot.lane.b32.xlu1 %v8442_v49, %s7669_s17  ;;  %4812 = vperm.xlu0 %7642, %v4798_v4   ;;  %v2539_v49 = vsel %vm357_vm1, %v8812_v25, %v8782_v5  ;;  %v2535_v5 = vsel %vm357_vm1, %v8740_v31, %v8774_v19  ;;  %v2536_v25 = vsel %vm357_vm1, %v8774_v19, %v8597_v27 }
 0x34e   : > { %2591 = vmatprep.subr.mxu1 %v2541_v40  ;;  %7389 = vmatprep.subr.mxu0 %v2542_v46  ;;  %v4796_v40 = vld [vmem:[%s10723_s4] sm:$0xff]  ;;  %v2533_v19 = vsel %vm357_vm1, %v8621_v63, %v8663_v14  ;;  %v2531_v27 = vsel %vm357_vm1, %v8591_v50, %v8655_v54  ;;  %v7024_v14 = vld [vmem:[%s10722_s3 + $0x30] sm:$0xff] }
 0x34f   : > { %v8948_v52 = vpop.permute.xlu1 %4032  ;;  %2592 = vmatpush1.msra.mxu1 %v2540_v45  ;;  %7390 = vmatpush3.msra.mxu0 %v2542_v46  ;;  %v8955_v23 = vpop.permute.xlu0 %3773 }
 0x350   : > { %2593 = vmatprep.subr.mxu1 %v2538_v6  ;;  %7391 = vmatprep.subr.mxu0 %v2539_v49  ;;  %v2532_v6 = vsel %vm357_vm1, %v8655_v54, %v8621_v63  ;;  %v2781_v54 = vsel %vm563_vm3, %v8820_v2, %v8790_v21  ;;  %v10866_v21 = vmov 0.0  }
 0x351   : > { %4817 = vperm.xlu1 %7643, %v4799_v41   ;;  %2594 = vmatpush1.msra.mxu1 %v2537_v61 }
 0x352   : > { %7392 = vmatpush3.msra.mxu0 %v2539_v49  ;;  %4802 = vperm.xlu0 %7642, %v4796_v40   ;;  %v2774_v40 = vsel %vm563_vm3, %v8637_v51, %v8629_v36 }
 0x353   : > { %v2770_v4 = vpop.permute.xlu1 %2769  ;;  %2595 = vmatprep.subr.mxu1 %v2535_v5  ;;  %7393 = vmatprep.subr.mxu0 %v2536_v25  ;;  %v8974_v38 = vpop.permute.xlu0 %3765 }
 0x354   : > { %2596 = vmatpush1.msra.mxu1 %v2534_v44  ;;  %7394 = vmatpush3.msra.mxu0 %v2536_v25  ;;  %v2784_v31 = vsel %vm563_vm3, %v2770_v4, %v8734_v24  ;;  %v2779_v24 = vsel %vm563_vm3, %v8854_v3, %v8828_v16  ;;  %v2778_v3 = vsel %vm563_vm3, %v8748_v29, %v8599_v10 }
 0x355   : > { %4807 = vperm.xlu1 %7643, %v4797_v35   ;;  %2597 = vmatprep.subr.mxu1 %v2532_v6  ;;  %v2775_v10 = vsel %vm563_vm3, %v8629_v36, %v8671_v18  ;;  %v2475_v18 = vld [vmem:[%s10722_s3 + $0x8] sm:$0xff]  ;;  %v2476_v35 = vld [vmem:[%s10722_s3 + $0x10] sm:$0xff] }
 0x356   : > { %7395 = vmatprep.subr.mxu0 %v2533_v19  ;;  %2598 = vmatpush1.msra.mxu1 %v2531_v27  ;;  %v2477_v27 = vld [vmem:[%s10722_s3 + $0x18] sm:$0xff] }
 0x357   : > { %v2768_v22 = vpop.permute.xlu1 %2767  ;;  %7396 = vmatpush3.msra.mxu0 %v2533_v19  ;;  %7026 = vmatmul.mubr.msk.f32.vlgmr.msra.gmra.mxu1 %vm2408_vm14, %v8708_v9  ;;  %v8992_v46 = vpop.permute.xlu0 %4042  ;;  %v2780_v9 = vsel %vm563_vm3, %v8828_v16, %v8820_v2  ;;  %v2777_v2 = vsel %vm563_vm3, %v8756_v13, %v8748_v29  ;;  %v2776_v16 = vsel %vm563_vm3, %v8742_v33, %v8756_v13  ;;  %v2474_v33 = vld [vmem:[%s10722_s3] sm:$0xff] }
 0x358   : > { %7398 = vmatmul.mubr.msk.f32.vlgmr.msra.gmra.mxu0 %vm2408_vm14, %v7023_v12  ;;  %v2783_v50 = vsel %vm563_vm3, %v2768_v22, %v2770_v4  ;;  %7403 = vmatprep.subr.mxu1 %v2784_v31  ;;  %v2782_v63 = vsel %vm563_vm3, %v8912_v57, %v2768_v22  ;;  %v7025_v57 = vld [vmem:[%s10722_s3 + $0x38] sm:$0xff]  ;;  %v2773_v29 = vsel %vm563_vm3, %v8607_v17, %v8637_v51 }
 0x359   : > { %2833 = vmatprep.subr.mxu0 %v2783_v50  ;;  %7404 = vmatpush3.msra.mxu1 %v2784_v31  ;;  %v3027_v19 = vsel %vm772_vm4, %v8898_v32, %v8836_v53  ;;  %v3021_v31 = vsel %vm772_vm4, %v8679_v42, %v8645_v55  ;;  %v3022_v22 = vsel %vm772_vm4, %v8645_v55, %v8687_v62  ;;  %v7043_v50 = vld [vmem:[%s10722_s3 + $0x48] sm:$0xff] }
 0x35a   : > { %2834 = vmatpush1.msra.mxu0 %v2782_v63  ;;  %7405 = vmatprep.subr.mxu1 %v2781_v54 }
 0x35b   : > { %v9013_v41 = vpop.permute.xlu1 %4028  ;;  %2835 = vmatprep.subr.mxu0 %v2780_v9  ;;  %2637 = vmatprep.mubr.f32.mxu1 %v10866_v21  ;;  %v9016_v45 = vpop.permute.xlu0 %4040 }
 0x35c   : > { %7400 = vmatprep.mubr.msk.f32.mxu0 %vm2408_vm14, %v7024_v14  ;;  %2836 = vmatpush1.msra.mxu0 %v2779_v24  ;;  %v10867_v24 = vld [vmem:[#allocation30_spill] sm:$0xff] }
 0x35d   : > { %7406 = vmatpush3.msra.mxu1 %v2781_v54  ;;  %7401 = vmatmul.mubr.msk.f32.gmra.mxu0 %vm2408_vm14, %v7025_v57  ;;  %v7045_v54 = vld [vmem:[%s10722_s3 + $0x58] sm:$0xff] }
 0x35e   : > { %7027 = vmatmul.mubr.msk.f32.gmra.mxu1 %vm2408_vm14, %v7023_v12  ;;  %2837 = vmatprep.subr.mxu0 %v2777_v2  ;;  %v3286_v2 = vsel %vm993_vm5, %v10867_v24, %v8844_v37 }
 0x35f   : > { %7407 = vmatprep.subr.mxu1 %v2778_v3  ;;  %2838 = vmatpush1.msra.mxu0 %v2776_v16  ;;  %v9030_v49 = vpop.permute.xlu1 %4054  ;;  %v9035_v61 = vpop.permute.xlu0 %4036 }
 0x360   : > { %7408 = vmatpush3.msra.mxu1 %v2778_v3  ;;  %2839 = vmatprep.subr.mxu0 %v2774_v40  ;;  %v10869_v3 = vld [vmem:[#allocation9_spill] sm:$0xff]  ;;  %v3285_v40 = vsel %vm993_vm5, %v8870_v0, %v10867_v24  ;;  %v10883_v24 = vld [vmem:[#allocation26_spill] sm:$0xff] }
 0x361   : > { %7409 = vmatprep.subr.mxu1 %v2775_v10  ;;  %2643 = vmatprep.mubr.f32.mxu1 %v10866_v21 }
 0x362   : > { %2840 = vmatpush1.msra.mxu0 %v2773_v29  ;;  %2873 = vmatprep.mubr.f32.mxu0 %v10866_v21  ;;  %v10871_v29 = vld [vmem:[#allocation21_spill] sm:$0xff] }
 0x363   : > { %7410 = vmatpush3.msra.mxu1 %v2775_v10  ;;  %7034 = vmatmul.mubr.msk.f32.vlgmr.msra.gmra.mxu0 %vm2408_vm14, %v2474_v33  ;;  %v9049_v13 = vpop.permute.xlu1 %4038  ;;  %v3015_v36 = vpop.permute.xlu0 %3014 }
 0x364   : > { %7028 = vmatmul.mubr.msk.f32.gmra.mxu1 %vm2408_vm14, %v7024_v14  ;;  %2879 = vmatprep.mubr.f32.mxu0 %v10866_v21  ;;  %v3029_v6 = vsel %vm772_vm4, %v8890_v26, %v3015_v36  ;;  %v3026_v26 = vsel %vm772_vm4, %v8862_v7, %v8898_v32  ;;  %v3025_v7 = vsel %vm772_vm4, %v8798_v34, %v8605_v59 }
 0x365   : > { %2649 = vmatprep.mubr.f32.mxu1 %v10866_v21  ;;  %v3023_v32 = vsel %vm772_vm4, %v8701_v11, %v8764_v39  ;;  %v3020_v59 = vsel %vm772_vm4, %v8615_v58, %v8679_v42  ;;  %v7042_v11 = vld [vmem:[%s10722_s3 + $0x40] sm:$0xff]  ;;  %v7044_v58 = vld [vmem:[%s10722_s3 + $0x50] sm:$0xff] }
 0x367   : > { %7035 = vmatmul.mubr.msk.f32.gmra.mxu0 %vm2408_vm14, %v2475_v18  ;;  %v3017_v17 = vpop.permute.xlu1 %3016  ;;  %v9058_v51 = vpop.permute.xlu0 %4026 }
 0x368   : > { %7029 = vmatmul.mubr.msk.f32.gmra.mxu1 %vm2408_vm14, %v7025_v57  ;;  %2885 = vmatprep.mubr.f32.mxu0 %v10866_v21  ;;  %v3030_v5 = vsel %vm772_vm4, %v3015_v36, %v3017_v17  ;;  %v3031_v25 = vsel %vm772_vm4, %v3017_v17, %v8716_v56  ;;  %v3028_v56 = vsel %vm772_vm4, %v8836_v53, %v8806_v60 }
 0x369   : > { %7411 = vmatprep.mubr.msk.f32.mxu1 %vm2408_vm14, %v2474_v33  ;;  %3080 = vmatprep.subr.mxu1 %v3030_v5  ;;  %v3024_v53 = vsel %vm772_vm4, %v8764_v39, %v8798_v34 }
 0x36a   : > { %7417 = vmatprep.subr.mxu0 %v3031_v25 }
 0x36b   : > { %7036 = vmatmul.mubr.msk.f32.gmra.mxu0 %vm2408_vm14, %v2476_v35  ;;  %v9070_v4 = vpop.permute.xlu1 %4303  ;;  %v9072_v44 = vpop.permute.xlu0 %4024 }
 0x36c   : > { %7412 = vmatmul.mubr.msk.f32.vlgmr.msra.gmra.mxu1 %vm2408_vm14, %v2475_v18  ;;  %7418 = vmatpush3.msra.mxu0 %v3031_v25  ;;  %v10872_v18 = vld [vmem:[#allocation10_spill] sm:$0xff] }
 0x36d   : > { %3081 = vmatpush1.msra.mxu1 %v3029_v6  ;;  %7419 = vmatprep.subr.mxu0 %v3028_v56  ;;  %v3280_v17 = vsel %vm993_vm5, %v10872_v18, %v10869_v3  ;;  %v10874_v25 = vld [vmem:[#allocation22_spill] sm:$0xff] }
 0x36e   : > { %3082 = vmatprep.subr.mxu1 %v3027_v19  ;;  %2891 = vmatprep.mubr.f32.mxu0 %v10866_v21 }
 0x36f   : > { %7414 = vmatprep.mubr.msk.f32.mxu1 %vm2408_vm14, %v2476_v35  ;;  %3083 = vmatpush1.msra.mxu1 %v3026_v26  ;;  %v3276_v60 = vpop.permute.xlu1 %3275  ;;  %v9091_v12 = vpop.permute.xlu0 %4046  ;;  %v10873_v35 = vld [vmem:[#allocation7_spill] sm:$0xff] }
 0x370   : > { %7420 = vmatpush3.msra.mxu0 %v3028_v56  ;;  %7415 = vmatmul.mubr.msk.f32.gmra.mxu1 %vm2408_vm14, %v2477_v27  ;;  %v3290_v55 = vsel %vm993_vm5, %v3276_v60, %v8750_v30  ;;  %v3287_v30 = vsel %vm993_vm5, %v8844_v37, %v8814_v8  ;;  %v3284_v8 = vsel %vm993_vm5, %v8772_v20, %v8623_v15  ;;  %v10870_v15 = vld [vmem:[#allocation24_spill] sm:$0xff] }
 0x371   : > { %7037 = vmatmul.mubr.msk.f32.gmra.mxu0 %vm2408_vm14, %v2477_v27  ;;  %3084 = vmatprep.subr.mxu1 %v3024_v53  ;;  %v3283_v10 = vsel %vm993_vm5, %v10870_v15, %v8772_v20  ;;  %v3282_v36 = vsel %vm993_vm5, %v10871_v29, %v10870_v15  ;;  %v7054_v20 = vld [vmem:[%s10722_s3 + $0x60] sm:$0xff]  ;;  %v3279_v5 = vsel %vm993_vm5, %v10873_v35, %v10872_v18  ;;  %v7055_v27 = vld [vmem:[%s10722_s3 + $0x68] sm:$0xff]  ;;  %v10886_v29 = vld [vmem:[#allocation23_spill] sm:$0xff] }
 0x372   : > { %7421 = vmatprep.subr.mxu0 %v3025_v7  ;;  %3085 = vmatpush1.msra.mxu1 %v3023_v32  ;;  %v10876_v32 = vld [vmem:[#allocation31_spill] sm:$0xff]  ;;  %v7067_v18 = vld [vmem:[%s10722_s3 + $0x88] sm:$0xff] }
 0x373   : > { %7422 = vmatpush3.msra.mxu0 %v3025_v7  ;;  %3086 = vmatprep.subr.mxu1 %v3021_v31  ;;  %v3274_v39 = vpop.permute.xlu1 %3273  ;;  %v9116_v34 = vpop.permute.xlu0 %4030  ;;  %v10875_v7 = vld [vmem:[#allocation28_spill] sm:$0xff]  ;;  %v10887_v35 = vld [vmem:[#allocation29_spill] sm:$0xff] }
 0x374   : > { %7423 = vmatprep.subr.mxu0 %v3022_v22  ;;  %3087 = vmatpush1.msra.mxu1 %v3020_v59  ;;  %v3289_v42 = vsel %vm993_vm5, %v3274_v39, %v3276_v60  ;;  %v3288_v14 = vsel %vm993_vm5, %v8920_v48, %v3274_v39  ;;  %v10868_v48 = vld [vmem:[#allocation20_spill] sm:$0xff]  ;;  %v3546_v31 = vsel %vm1214_vm6, %v10876_v32, %v10875_v7 }
 0x375   : > { %3120 = vmatprep.mubr.f32.mxu1 %v10866_v21  ;;  %7424 = vmatpush3.msra.mxu0 %v3022_v22  ;;  %v3281_v16 = vsel %vm993_vm5, %v10869_v3, %v10868_v48  ;;  %v7056_v22 = vld [vmem:[%s10722_s3 + $0x70] sm:$0xff]  ;;  %v3545_v59 = vsel %vm1214_vm6, %v8904_v1, %v10876_v32  ;;  %v10884_v48 = vld [vmem:[#allocation12_spill] sm:$0xff]  ;;  %v7069_v32 = vld [vmem:[%s10722_s3 + $0x98] sm:$0xff] }
 0x376   : > { %7425 = vmatprep.mubr.msk.f32.mxu0 %vm2408_vm14, %v7042_v11  ;;  %7046 = vmatmul.mubr.msk.f32.vlgmr.msra.gmra.mxu1 %vm2408_vm14, %v7042_v11  ;;  %v7057_v11 = vld [vmem:[%s10722_s3 + $0x78] sm:$0xff] }
 0x377   : > { %7426 = vmatmul.mubr.msk.f32.vlgmr.msra.gmra.mxu0 %vm2408_vm14, %v7043_v50  ;;  %7431 = vmatprep.subr.mxu1 %v3290_v55  ;;  %v9131_v62 = vpop.permute.xlu1 %4295  ;;  %v9133_v63 = vpop.permute.xlu0 %4313 }
 0x378   : > { %7432 = vmatpush3.msra.mxu1 %v3290_v55  ;;  %3126 = vmatprep.mubr.f32.mxu1 %v10866_v21 }
 0x379   : > { %7433 = vmatprep.subr.mxu1 %v3287_v30  ;;  %7428 = vmatprep.mubr.msk.f32.mxu0 %vm2408_vm14, %v7044_v58 }
 0x37a   : > { %7434 = vmatpush3.msra.mxu1 %v3287_v30  ;;  %3339 = vmatprep.subr.mxu0 %v3289_v42  ;;  %v10879_v42 = vld [vmem:[#allocation16_spill] sm:$0xff] }
 0x37b   : > { %7047 = vmatmul.mubr.msk.f32.gmra.mxu1 %vm2408_vm14, %v7043_v50  ;;  %7429 = vmatmul.mubr.msk.f32.gmra.mxu0 %vm2408_vm14, %v7045_v54  ;;  %v9150_v9 = vpop.permute.xlu1 %4301  ;;  %v3533_v57 = vpop.permute.xlu0 %3532 }
 0x37c   : > { %7435 = vmatprep.subr.mxu1 %v3284_v8  ;;  %3340 = vmatpush1.msra.mxu0 %v3288_v14  ;;  %v3547_v53 = vsel %vm1214_vm6, %v8896_v28, %v3533_v57  ;;  %v10877_v28 = vld [vmem:[#allocation34_spill] sm:$0xff] }
 0x37d   : > { %7436 = vmatpush3.msra.mxu1 %v3284_v8  ;;  %3341 = vmatprep.subr.mxu0 %v3286_v2  ;;  %v3544_v39 = vsel %vm1214_vm6, %v10877_v28, %v8904_v1  ;;  %v10881_v14 = vld [vmem:[#allocation14_spill] sm:$0xff] }
 0x37e   : > { %7437 = vmatprep.subr.mxu1 %v3281_v16  ;;  %3132 = vmatprep.mubr.f32.mxu1 %v10866_v21  ;;  %v3541_v8 = vsel %vm1214_vm6, %v10881_v14, %v10879_v42  ;;  %v10892_v28 = vld [vmem:[#allocation18_spill] sm:$0xff] }
 0x37f   : > { %3342 = vmatpush1.msra.mxu0 %v3285_v40  ;;  %7438 = vmatpush3.msra.mxu1 %v3281_v16  ;;  %v3535_v37 = vpop.permute.xlu1 %3534  ;;  %v9165_v33 = vpop.permute.xlu0 %4305  ;;  %v7066_v16 = vld [vmem:[%s10722_s3 + $0x80] sm:$0xff] }
 0x380   : > { %7048 = vmatmul.mubr.msk.f32.gmra.mxu1 %vm2408_vm14, %v7044_v58  ;;  %3343 = vmatprep.subr.mxu0 %v3283_v10  ;;  %v3548_v0 = vsel %vm1214_vm6, %v3533_v57, %v3535_v37  ;;  %v3549_v6 = vsel %vm1214_vm6, %v3535_v37, %v10874_v25  ;;  %v10878_v58 = vld [vmem:[#allocation27_spill] sm:$0xff]  ;;  %v10885_v10 = vld [vmem:[#allocation8_spill] sm:$0xff] }
 0x381   : > { %3344 = vmatpush1.msra.mxu0 %v3282_v36  ;;  %3138 = vmatprep.mubr.f32.mxu1 %v10866_v21  ;;  %v3542_v30 = vsel %vm1214_vm6, %v10879_v42, %v10878_v58  ;;  %v10882_v57 = vld [vmem:[#allocation11_spill] sm:$0xff]  ;;  %v3538_v37 = vsel %vm1214_vm6, %v10885_v10, %v10883_v24  ;;  %v10896_v10 = vld [vmem:[#allocation36_spill] sm:$0xff] }
 0x382   : > { %3345 = vmatprep.subr.mxu0 %v3280_v17  ;;  %3379 = vmatprep.mubr.f32.mxu0 %v10866_v21  ;;  %v3539_v2 = vsel %vm1214_vm6, %v10883_v24, %v10882_v57  ;;  %v3540_v3 = vsel %vm1214_vm6, %v10882_v57, %v10884_v48  ;;  %v7079_v48 = vld [vmem:[%s10722_s3 + $0xa8] sm:$0xff] }
 0x383   : > { %3346 = vmatpush1.msra.mxu0 %v3279_v5  ;;  %3598 = vmatprep.subr.mxu1 %v3548_v0  ;;  %v9185_v56 = vpop.permute.xlu1 %4287  ;;  %v9187_v19 = vpop.permute.xlu0 %4307  ;;  %v10888_v5 = vld [vmem:[#allocation32_spill] sm:$0xff] }
 0x384   : > { %7049 = vmatmul.mubr.msk.f32.gmra.mxu1 %vm2408_vm14, %v7045_v54  ;;  %7058 = vmatmul.mubr.msk.f32.vlgmr.msra.gmra.mxu0 %vm2408_vm14, %v7054_v20  ;;  %v10880_v54 = vld [vmem:[#allocation6_spill] sm:$0xff]  ;;  %v3805_v25 = vsel %vm1435_vm7, %v10888_v5, %v10887_v35 }
 0x385   : > { %3385 = vmatprep.mubr.f32.mxu0 %v10866_v21  ;;  %7439 = vmatprep.mubr.msk.f32.mxu1 %vm2408_vm14, %v7054_v20  ;;  %v3543_v1 = vsel %vm1214_vm6, %v10878_v58, %v10880_v54 }
 0x386   : > { %7445 = vmatprep.subr.mxu0 %v3549_v6 }
 0x387   : > { %7446 = vmatpush3.msra.mxu0 %v3549_v6  ;;  %v9196_v26 = vpop.permute.xlu1 %4293  ;;  %v9198_v60 = vpop.permute.xlu0 %4297  ;;  %v7068_v6 = vld [vmem:[%s10722_s3 + $0x90] sm:$0xff] }
 0x388   : > { %7059 = vmatmul.mubr.msk.f32.gmra.mxu0 %vm2408_vm14, %v7055_v27  ;;  %7440 = vmatmul.mubr.msk.f32.vlgmr.msra.gmra.mxu1 %vm2408_vm14, %v7055_v27 }
 0x389   : > { %3599 = vmatpush1.msra.mxu1 %v3547_v53  ;;  %7447 = vmatprep.subr.mxu0 %v3546_v31 }
 0x38a   : > { %3600 = vmatprep.subr.mxu1 %v3545_v59  ;;  %3391 = vmatprep.mubr.f32.mxu0 %v10866_v21 }
 0x38b   : > { %7442 = vmatprep.mubr.msk.f32.mxu1 %vm2408_vm14, %v7056_v22  ;;  %3601 = vmatpush1.msra.mxu1 %v3544_v39  ;;  %v3794_v50 = vpop.permute.xlu1 %3793  ;;  %v9221_v55 = vpop.permute.xlu0 %4299  ;;  %v10893_v39 = vld [vmem:[#allocation19_spill] sm:$0xff] }
 0x38c   : > { %7448 = vmatpush3.msra.mxu0 %v3546_v31  ;;  %7443 = vmatmul.mubr.msk.f32.gmra.mxu1 %vm2408_vm14, %v7057_v11  ;;  %v3808_v36 = vsel %vm1435_vm7, %v3794_v50, %v10886_v29  ;;  %v10889_v31 = vld [vmem:[#allocation15_spill] sm:$0xff] }
 0x38d   : > { %7060 = vmatmul.mubr.msk.f32.gmra.mxu0 %vm2408_vm14, %v7056_v22  ;;  %3602 = vmatprep.subr.mxu1 %v3542_v30  ;;  %v10890_v22 = vld [vmem:[#allocation17_spill] sm:$0xff]  ;;  %v10894_v30 = vld [vmem:[#allocation35_spill] sm:$0xff] }
 0x38e   : > { %7449 = vmatprep.subr.mxu0 %v3543_v1  ;;  %3603 = vmatpush1.msra.mxu1 %v3541_v8  ;;  %v3802_v59 = vsel %vm1435_vm7, %v10890_v22, %v10889_v31  ;;  %v7078_v8 = vld [vmem:[%s10722_s3 + $0xa0] sm:$0xff] }
 0x38f   : > { %7450 = vmatpush3.msra.mxu0 %v3543_v1  ;;  %3604 = vmatprep.subr.mxu1 %v3539_v2  ;;  %v3792_v40 = vpop.permute.xlu1 %3791  ;;  %v9243_v15 = vpop.permute.xlu0 %4289  ;;  %v10895_v1 = vld [vmem:[#allocation25_spill] sm:$0xff]  ;;  %v3798_v2 = vsel %vm1435_vm7, %v8910_v47, %v10893_v39 }
 0x390   : > { %7451 = vmatprep.subr.mxu0 %v3540_v3  ;;  %3397 = vmatprep.mubr.f32.mxu0 %v10866_v21  ;;  %v3807_v0 = vsel %vm1435_vm7, %v3792_v40, %v3794_v50  ;;  %v3806_v27 = vsel %vm1435_vm7, %v8928_v43, %v3792_v40  ;;  %v10891_v43 = vld [vmem:[#allocation33_spill] sm:$0xff]  ;;  %v3799_v50 = vsel %vm1435_vm7, %v10893_v39, %v10892_v28 }
 0x391   : > { %3605 = vmatpush1.msra.mxu1 %v3538_v37  ;;  %3638 = vmatprep.mubr.f32.mxu1 %v10866_v21  ;;  %v3803_v54 = vsel %vm1435_vm7, %v10894_v30, %v10891_v43  ;;  %v3801_v14 = vsel %vm1435_vm7, %v10895_v1, %v10890_v22  ;;  %v3800_v57 = vsel %vm1435_vm7, %v8955_v23, %v10895_v1 }
 0x392   : > { %7452 = vmatpush3.msra.mxu0 %v3540_v3  ;;  %7070 = vmatmul.mubr.msk.f32.vlgmr.msra.gmra.mxu1 %vm2408_vm14, %v7066_v16  ;;  %v3797_v23 = vsel %vm1435_vm7, %v8974_v38, %v8910_v47  ;;  %v10897_v47 = vld [vmem:[#allocation37_spill] sm:$0xff] }
 0x393   : > { %7061 = vmatmul.mubr.msk.f32.gmra.mxu0 %vm2408_vm14, %v7057_v11  ;;  %3644 = vmatprep.mubr.f32.mxu1 %v10866_v21  ;;  %v9259_v17 = vpop.permute.xlu1 %4285  ;;  %v4051_v20 = vpop.permute.xlu0 %4050  ;;  %v3804_v11 = vsel %vm1435_vm7, %v10891_v43, %v10888_v5  ;;  %v4063_v38 = vsel %vm1656_vm8, %v8992_v46, %v10897_v47  ;;  %v7102_v43 = vld [vmem:[%s10722_s3 + $0xe0] sm:$0xff] }
 0x394   : > { %7453 = vmatprep.mubr.msk.f32.mxu0 %vm2408_vm14, %v7066_v16  ;;  %7459 = vmatprep.subr.mxu1 %v3808_v36  ;;  %v4065_v37 = vsel %vm1656_vm8, %v10896_v10, %v4051_v20  ;;  %v4316_v30 = vsel %vm10752_vm9, %v9259_v17, %v9185_v56 }
 0x395   : > { %7460 = vmatpush3.msra.mxu1 %v3808_v36  ;;  %3857 = vmatprep.subr.mxu0 %v3807_v0  ;;  %v4064_v36 = vsel %vm1656_vm8, %v10897_v47, %v9091_v12  ;;  %v7081_v0 = vld [vmem:[%s10722_s3 + $0xb8] sm:$0xff] }
 0x396   : > { %7071 = vmatmul.mubr.msk.f32.gmra.mxu1 %vm2408_vm14, %v7067_v18  ;;  %7461 = vmatprep.subr.mxu1 %v3805_v25  ;;  %v7117_v47 = vld [vmem:[%s10722_s3 + $0x118] sm:$0xff] }
 0x397   : > { %7454 = vmatmul.mubr.msk.f32.vlgmr.msra.gmra.mxu0 %vm2408_vm14, %v7067_v18  ;;  %3650 = vmatprep.mubr.f32.mxu1 %v10866_v21  ;;  %v4053_v53 = vpop.permute.xlu1 %4052  ;;  %v9273_v7 = vpop.permute.xlu0 %4291  ;;  %v4062_v18 = vsel %vm1656_vm8, %v9016_v45, %v8992_v46  ;;  %v4061_v45 = vsel %vm1656_vm8, %v9035_v61, %v9049_v13 }
 0x398   : > { %7456 = vmatprep.mubr.msk.f32.mxu0 %vm2408_vm14, %v7068_v6  ;;  %7462 = vmatpush3.msra.mxu1 %v3805_v25  ;;  %v4066_v24 = vsel %vm1656_vm8, %v4051_v20, %v4053_v53  ;;  %v4067_v16 = vsel %vm1656_vm8, %v4053_v53, %v9030_v49  ;;  %v7080_v49 = vld [vmem:[%s10722_s3 + $0xb0] sm:$0xff]  ;;  %v4057_v25 = vsel %vm1656_vm8, %v9058_v51, %v9013_v41 }
 0x399   : > { %7463 = vmatprep.subr.mxu1 %v3802_v59  ;;  %3858 = vmatpush1.msra.mxu0 %v3806_v27  ;;  %v10898_v20 = vld [vmem:[#allocation38_spill] sm:$0xff] }
 0x39a   : > { %7072 = vmatmul.mubr.msk.f32.gmra.mxu1 %vm2408_vm14, %v7068_v6  ;;  %3859 = vmatprep.subr.mxu0 %v3804_v11  ;;  %v4060_v12 = vsel %vm1656_vm8, %v10898_v20, %v9035_v61  ;;  %v4059_v46 = vsel %vm1656_vm8, %v8948_v52, %v10898_v20  ;;  %v4058_v6 = vsel %vm1656_vm8, %v9013_v41, %v9116_v34  ;;  %v7090_v52 = vld [vmem:[%s10722_s3 + $0xc0] sm:$0xff]  ;;  %v7092_v53 = vld [vmem:[%s10722_s3 + $0xd0] sm:$0xff] }
 0x39b   : > { %7457 = vmatmul.mubr.msk.f32.gmra.mxu0 %vm2408_vm14, %v7069_v32  ;;  %7464 = vmatpush3.msra.mxu1 %v3802_v59  ;;  %v9290_v58 = vpop.permute.xlu1 %4566  ;;  %v9292_v42 = vpop.permute.xlu0 %4283  ;;  %v4056_v61 = vsel %vm1656_vm8, %v9072_v44, %v9058_v51  ;;  %v7091_v51 = vld [vmem:[%s10722_s3 + $0xc8] sm:$0xff]  ;;  %v7093_v59 = vld [vmem:[%s10722_s3 + $0xd8] sm:$0xff] }
 0x39c   : > { %7465 = vmatprep.subr.mxu1 %v3799_v50  ;;  %3656 = vmatprep.mubr.f32.mxu1 %v10866_v21 }
 0x39d   : > { %3860 = vmatpush1.msra.mxu0 %v3803_v54  ;;  %7466 = vmatpush3.msra.mxu1 %v3799_v50  ;;  %v4319_v50 = vsel %vm10752_vm9, %v9196_v26, %v9131_v62 }
 0x39e   : > { %7073 = vmatmul.mubr.msk.f32.gmra.mxu1 %vm2408_vm14, %v7069_v32  ;;  %3861 = vmatprep.subr.mxu0 %v3801_v14  ;;  %v4320_v32 = vsel %vm10752_vm9, %v9131_v62, %v9198_v60  ;;  %v4322_v60 = vsel %vm10752_vm9, %v9150_v9, %v9070_v4  ;;  %v7104_v62 = vld [vmem:[%s10722_s3 + $0xf0] sm:$0xff] }
 0x39f   : > { %3862 = vmatpush1.msra.mxu0 %v3800_v57  ;;  %3897 = vmatprep.mubr.f32.mxu0 %v10866_v21  ;;  %v9316_v3 = vpop.permute.xlu1 %4562  ;;  %v9324_v40 = vpop.permute.xlu0 %4560 }
 0x3a0   : > { %3863 = vmatprep.subr.mxu0 %v3798_v2  ;;  %7467 = vmatprep.mubr.msk.f32.mxu1 %vm2408_vm14, %v7078_v8 }
 0x3a1   : > { %3864 = vmatpush1.msra.mxu0 %v3797_v23  ;;  %4116 = vmatprep.subr.mxu1 %v4066_v24  ;;  %v7115_v23 = vld [vmem:[%s10722_s3 + $0x108] sm:$0xff] }
 0x3a2   : > { %7082 = vmatmul.mubr.msk.f32.vlgmr.msra.gmra.mxu0 %vm2408_vm14, %v7078_v8  ;;  %7468 = vmatmul.mubr.msk.f32.vlgmr.msra.gmra.mxu1 %vm2408_vm14, %v7079_v48  ;;  %v7114_v8 = vld [vmem:[%s10722_s3 + $0x100] sm:$0xff] }
 0x3a3   : > { %7473 = vmatprep.subr.mxu0 %v4067_v16  ;;  %4117 = vmatpush1.msra.mxu1 %v4065_v37  ;;  %v9336_v29 = vpop.permute.xlu1 %4552  ;;  %v9353_v5 = vpop.permute.xlu0 %4558 }
 0x3a4   : > { %7474 = vmatpush3.msra.mxu0 %v4067_v16  ;;  %4118 = vmatprep.subr.mxu1 %v4063_v38  ;;  %v4580_v54 = vsel %vm10899_vm0, %v9353_v5, %v9324_v40 }
 0x3a5   : > { %7475 = vmatprep.subr.mxu0 %v4064_v36  ;;  %3903 = vmatprep.mubr.f32.mxu0 %v10866_v21 }
 0x3a6   : > { %7470 = vmatprep.mubr.msk.f32.mxu1 %vm2408_vm14, %v7080_v49  ;;  %4119 = vmatpush1.msra.mxu1 %v4062_v18 }
 0x3a7   : > { %7476 = vmatpush3.msra.mxu0 %v4064_v36  ;;  %7471 = vmatmul.mubr.msk.f32.gmra.mxu1 %vm2408_vm14, %v7081_v0  ;;  %v4312_v35 = vpop.permute.xlu1 %4311  ;;  %v9379_v41 = vpop.permute.xlu0 %4554 }
 0x3a8   : > { %7083 = vmatmul.mubr.msk.f32.gmra.mxu0 %vm2408_vm14, %v7079_v48  ;;  %4120 = vmatprep.subr.mxu1 %v4060_v12  ;;  %v4326_v27 = vsel %vm10752_vm9, %v4312_v35, %v9133_v63  ;;  %v4323_v63 = vsel %vm10752_vm9, %v9070_v4, %v9165_v33  ;;  %v4321_v4 = vsel %vm10752_vm9, %v9221_v55, %v9150_v9 }
 0x3a9   : > { %7477 = vmatprep.subr.mxu0 %v4061_v45  ;;  %4121 = vmatpush1.msra.mxu1 %v4059_v46  ;;  %v4318_v9 = vsel %vm10752_vm9, %v9273_v7, %v9196_v26  ;;  %v4315_v26 = vsel %vm10752_vm9, %v9292_v42, %v9259_v17  ;;  %v4581_v7 = vsel %vm10901_vm11, %v9324_v40, %v9316_v3  ;;  %vm10903_vm11 = vmmov %vm10899_vm0 }
 0x3aa   : > { %7478 = vmatpush3.msra.mxu0 %v4061_v45  ;;  %4122 = vmatprep.subr.mxu1 %v4057_v25  ;;  %v4578_v1 = vsel %vm10903_vm11, %v9336_v29, %v9379_v41  ;;  %vm10907_vm11 = vmmov %vm10899_vm0 }
 0x3ab   : > { %7479 = vmatprep.subr.mxu0 %v4058_v6  ;;  %3909 = vmatprep.mubr.f32.mxu0 %v10866_v21  ;;  %v4310_v13 = vpop.permute.xlu1 %4309  ;;  %v4569_v33 = vpop.permute.xlu0 %4568 }
 0x3ac   : > { %4123 = vmatpush1.msra.mxu1 %v4056_v61  ;;  %4156 = vmatprep.mubr.f32.mxu1 %v10866_v21  ;;  %v4325_v34 = vsel %vm10752_vm9, %v4310_v13, %v4312_v35  ;;  %v4324_v31 = vsel %vm10752_vm9, %v9187_v19, %v4310_v13  ;;  %v4317_v19 = vsel %vm10752_vm9, %v9185_v56, %v9243_v15  ;;  %v7103_v15 = vld [vmem:[%s10722_s3 + $0xe8] sm:$0xff]  ;;  %v7105_v56 = vld [vmem:[%s10722_s3 + $0xf8] sm:$0xff]  ;;  %vm10904_vm9 = vmmov %vm10899_vm0 }
 0x3ad   : > { %7480 = vmatpush3.msra.mxu0 %v4058_v6  ;;  %7094 = vmatmul.mubr.msk.f32.vlgmr.msra.gmra.mxu1 %vm2408_vm14, %v7090_v52  ;;  %v4583_v55 = vsel %vm10900_vm2, %v9290_v58, %v4569_v33  ;;  %vm10902_vm2 = vmmov %vm10899_vm0 }
 0x3ae   : > { %7084 = vmatmul.mubr.msk.f32.gmra.mxu0 %vm2408_vm14, %v7080_v49  ;;  %4162 = vmatprep.mubr.f32.mxu1 %v10866_v21 }
 0x3af   : > { %3915 = vmatprep.mubr.f32.mxu0 %v10866_v21  ;;  %7487 = vmatprep.subr.mxu1 %v4326_v27  ;;  %v9388_v44 = vpop.permute.xlu1 %4570  ;;  %v4545_v28 = vpop.permute.xlu0 %4544 }
 0x3b0   : > { %7488 = vmatpush3.msra.mxu1 %v4326_v27  ;;  %4375 = vmatprep.subr.mxu0 %v4325_v34  ;;  %v4584_v11 = vsel %vm10899_vm0, %v4569_v33, %v9388_v44 }
 0x3b1   : > { %7095 = vmatmul.mubr.msk.f32.gmra.mxu1 %vm2408_vm14, %v7091_v51  ;;  %7489 = vmatprep.subr.mxu1 %v4323_v63 }
 0x3b2   : > { %7085 = vmatmul.mubr.msk.f32.gmra.mxu0 %vm2408_vm14, %v7081_v0  ;;  %4168 = vmatprep.mubr.f32.mxu1 %v10866_v21 }
 0x3b3   : > { %7481 = vmatprep.mubr.msk.f32.mxu0 %vm2408_vm14, %v7090_v52  ;;  %7490 = vmatpush3.msra.mxu1 %v4323_v63  ;;  %v4551_v22 = vpop.permute.xlu1 %4550  ;;  %v4543_v58 = vpop.permute.xlu0 %4542 }
 0x3b4   : > { %7491 = vmatprep.subr.mxu1 %v4320_v32  ;;  %v4577_v17 = vsel %vm10902_vm2, %v4551_v22, %v9336_v29  ;;  %v4574_v57 = vsel %vm10899_vm0, %v4543_v58, %v4545_v28  ;;  %vm10905_vm2 = vmmov %vm10899_vm0 }
 0x3b5   : > { %7096 = vmatmul.mubr.msk.f32.gmra.mxu1 %vm2408_vm14, %v7092_v53 }
 0x3b6   : > { %7482 = vmatmul.mubr.msk.f32.vlgmr.msra.gmra.mxu0 %vm2408_vm14, %v7091_v51  ;;  %4174 = vmatprep.mubr.f32.mxu1 %v10866_v21 }
 0x3b7   : > { %7484 = vmatprep.mubr.msk.f32.mxu0 %vm2408_vm14, %v7092_v53  ;;  %4376 = vmatpush1.msra.mxu0 %v4324_v31  ;;  %v9431_v39 = vpop.permute.xlu1 %4546  ;;  %v4565_v2 = vpop.permute.xlu0 %4564 }
 0x3b8   : > { %7492 = vmatpush3.msra.mxu1 %v4320_v32  ;;  %4377 = vmatprep.subr.mxu0 %v4322_v60  ;;  %v4575_v14 = vsel %vm10904_vm9, %v4545_v28, %v9431_v39  ;;  %vm10906_vm9 = vmmov %vm10899_vm0 }
 0x3b9   : > { %7097 = vmatmul.mubr.msk.f32.gmra.mxu1 %vm2408_vm14, %v7093_v59  ;;  %7493 = vmatprep.subr.mxu1 %v4317_v19  ;;  %v4582_v16 = vsel %vm10906_vm9, %v9316_v3, %v4565_v2  ;;  %v7116_v3 = vld [vmem:[%s10722_s3 + $0x110] sm:$0xff] }
 0x3ba   : > { %7485 = vmatmul.mubr.msk.f32.gmra.mxu0 %vm2408_vm14, %v7093_v59  ;;  %7494 = vmatpush3.msra.mxu1 %v4317_v19 }
 0x3bb   : > { %4378 = vmatpush1.msra.mxu0 %v4321_v4  ;;  %7495 = vmatprep.mubr.msk.f32.mxu1 %vm2408_vm14, %v7102_v43  ;;  %v4573_v42 = vpop.permute.xlu1 %4572  ;;  %v4549_v10 = vpop.permute.xlu0 %4548 }
 0x3bc   : > { %4379 = vmatprep.subr.mxu0 %v4319_v50  ;;  %4634 = vmatprep.subr.mxu1 %v4584_v11  ;;  %v4585_v24 = vsel %vm10905_vm2, %v9388_v44, %v4573_v42  ;;  %v4576_v37 = vsel %vm10899_vm0, %v9431_v39, %v4549_v10 }
 0x3bd   : > { %7496 = vmatmul.mubr.msk.f32.vlgmr.msra.gmra.mxu1 %vm2408_vm14, %v7103_v15  ;;  %4380 = vmatpush1.msra.mxu0 %v4318_v9 }
 0x3be   : > { %4635 = vmatpush1.msra.mxu1 %v4583_v55  ;;  %4381 = vmatprep.subr.mxu0 %v4316_v30 }
 0x3bf   : > { %4636 = vmatprep.subr.mxu1 %v4581_v7  ;;  %4382 = vmatpush1.msra.mxu0 %v4315_v26  ;;  %v4557_v48 = vpop.permute.xlu1 %4556 }
 0x3c0   : > { %4415 = vmatprep.mubr.f32.mxu0 %v10866_v21  ;;  %7498 = vmatprep.mubr.msk.f32.mxu1 %vm2408_vm14, %v7104_v62  ;;  %v4579_v40 = vsel %vm10907_vm11, %v9379_v41, %v4557_v48  ;;  %vm11046_vm11 = vmmov %vm10899_vm0 }
 0x3c1   : > { %4637 = vmatpush1.msra.mxu1 %v4580_v54  ;;  %7106 = vmatmul.mubr.msk.f32.vlgmr.msra.gmra.mxu0 %vm2408_vm14, %v7102_v43 }
 0x3c2   : > { %7499 = vmatmul.mubr.msk.f32.gmra.mxu1 %vm2408_vm14, %v7105_v56  ;;  %4638 = vmatprep.subr.mxu1 %v4578_v1 }
 0x3c3   : > { %4639 = vmatpush1.msra.mxu1 %v4577_v17  ;;  %4421 = vmatprep.mubr.f32.mxu0 %v10866_v21 }
 0x3c4   : > { %4640 = vmatprep.subr.mxu1 %v4575_v14  ;;  %4674 = vmatprep.mubr.f32.mxu1 %v10866_v21 }
 0x3c5   : > { %7107 = vmatmul.mubr.msk.f32.gmra.mxu0 %vm2408_vm14, %v7103_v15  ;;  %4641 = vmatpush1.msra.mxu1 %v4574_v57 }
 0x3c6   : > { %7118 = vmatmul.mubr.msk.f32.vlgmr.msra.gmra.mxu1 %vm2408_vm14, %v7114_v8  ;;  %4427 = vmatprep.mubr.f32.mxu0 %v10866_v21 }
 0x3c7   : > { %7501 = vmatprep.subr.mxu0 %v4585_v24  ;;  %4680 = vmatprep.mubr.f32.mxu1 %v10866_v21 }
 0x3c8   : > { %7502 = vmatpush3.msra.mxu0 %v4585_v24  ;;  %7515 = vmatprep.subr.mxu1 %v10866_v21 }
 0x3c9   : > { %7108 = vmatmul.mubr.msk.f32.gmra.mxu0 %vm2408_vm14, %v7104_v62  ;;  %7503 = vmatprep.subr.mxu0 %v4582_v16 }
 0x3ca   : > { %7119 = vmatmul.mubr.msk.f32.gmra.mxu1 %vm2408_vm14, %v7115_v23  ;;  %4433 = vmatprep.mubr.f32.mxu0 %v10866_v21 }
 0x3cb   : > { %7504 = vmatpush3.msra.mxu0 %v4582_v16  ;;  %4686 = vmatprep.mubr.f32.mxu1 %v10866_v21 }
 0x3cc   : > { %7505 = vmatprep.subr.mxu0 %v4579_v40 }
 0x3cd   : > { %7109 = vmatmul.mubr.msk.f32.gmra.mxu0 %vm2408_vm14, %v7105_v56 }
 0x3ce   : > { %7506 = vmatpush3.msra.mxu0 %v4579_v40  ;;  %7120 = vmatmul.mubr.msk.f32.gmra.mxu1 %vm2408_vm14, %v7116_v3 }
 0x3cf   : > { %7507 = vmatprep.subr.mxu0 %v4576_v37  ;;  %7509 = vmatprep.mubr.msk.f32.mxu0 %vm2408_vm14, %v7114_v8 }
 0x3d0   : > { %7508 = vmatpush3.msra.mxu0 %v4576_v37  ;;  %4692 = vmatprep.mubr.f32.mxu1 %v10866_v21 }
 0x3d1   : > { %7510 = vmatmul.mubr.msk.f32.vlgmr.msra.gmra.mxu0 %vm2408_vm14, %v7115_v23 }
 0x3d2   : > { %7121 = vmatmul.mubr.msk.f32.gmra.mxu1 %vm2408_vm14, %v7117_v47  ;;  %7512 = vmatprep.mubr.msk.f32.mxu0 %vm2408_vm14, %v7116_v3 }
 0x3d5   : > { %7513 = vmatmul.mubr.msk.f32.gmra.mxu0 %vm2408_vm14, %v7117_v47 }
 0x3d6   : > { %5098 = vmatprep.mubr.f32.mxu0 %v10866_v21 }
 0x417   : > { %v9513_v38 = vpop.f32.mrf.mxu1 }
 0x418   : > { %v7399_v49 = vpop.f32.mrf.mxu0 }
 0x419   : > { %v2635_v29 = vpop.f32.mrf.mxu1 }
 0x41a   : > { %v2722_v36 = vpop.f32.mrf.mxu0 }
 0x41d   : > { %v7402_v0 = vpop.f32.mrf.mxu0 }
 0x41e   : > { %v2639_v18 = vpop.f32.mrf.mxu1 }
 0x41f   : > { %v2732_v20 = vpop.f32.mrf.mxu0 }
 0x420   : > { %v2641_v12 = vpop.f32.mrf.mxu1 }
 0x423   : > { %v9515_v35 = vpop.f32.mrf.mxu0 }
 0x424   : > { %v2645_v5 = vpop.f32.mrf.mxu1 }
 0x425   : > { %v2877_v46 = vpop.f32.mrf.mxu0 }
 0x426   : > { %v2647_v45 = vpop.f32.mrf.mxu1  ;;  %v2878_v25 = vadd.f32 %v2877_v46, %v2635_v29 }
 0x427   : > { %v2881_v6 = vpop.f32.mrf.mxu0 }
 0x428   : > { %v2651_v52 = vpop.f32.mrf.mxu1  ;;  %v2882_v61 = vadd.f32 %v2881_v6, %v2639_v18 }
 0x429   : > { %v2883_v13 = vpop.f32.mrf.mxu0 }
 0x42a   : > { %v2653_v27 = vpop.f32.mrf.mxu1  ;;  %v2884_v41 = vadd.f32 %v2883_v13, %v2641_v12 }
 0x42b   : > { %v2887_v34 = vpop.f32.mrf.mxu0 }
 0x42c   : > { %v2888_v51 = vadd.f32 %v2887_v34, %v2645_v5  ;;  %v7413_v44 = vpop.f32.mrf.mxu1 }
 0x42d   : > { %v9517_v63 = vadd.f32 %v7413_v44, %v7399_v49  ;;  %v2889_v53 = vpop.f32.mrf.mxu0 }
 0x42e   : > { %v2890_v32 = vadd.f32 %v2889_v53, %v2647_v45  ;;  %v2964_v33 = vpop.f32.mrf.mxu1 }
 0x42f   : > { %v9519_v31 = vadd.f32 %v2964_v33, %v2722_v36 }
 0x430   : > { %v7416_v22 = vpop.f32.mrf.mxu1 }
 0x431   : > { %v2893_v59 = vpop.f32.mrf.mxu0  ;;  %v2980_v60 = vadd.f32 %v7416_v22, %v7402_v0 }
 0x432   : > { %v2894_v19 = vadd.f32 %v2893_v59, %v2651_v52  ;;  %v2974_v43 = vpop.f32.mrf.mxu1 }
 0x433   : > { %v2895_v11 = vpop.f32.mrf.mxu0  ;;  %v9521_v28 = vadd.f32 %v2974_v43, %v2732_v20 }
 0x434   : > { %v2896_v4 = vadd.f32 %v2895_v11, %v2653_v27 }
 0x436   : > { %v9523_v15 = vpop.f32.mrf.mxu1 }
 0x437   : > { %v9525_v39 = vpop.f32.mrf.mxu0 }
 0x438   : > { %v3124_v50 = vpop.f32.mrf.mxu1 }
 0x439   : > { %v9527_v9 = vadd.f32 %v3124_v50, %v2878_v25  ;;  %v9529_v55 = vpop.f32.mrf.mxu0 }
 0x43b   : > { %v3128_v30 = vpop.f32.mrf.mxu1  ;;  %v7430_v62 = vpop.f32.mrf.mxu0 }
 0x43c   : > { %v9531_v26 = vadd.f32 %v3128_v30, %v2882_v61  ;;  %v9533_v7 = vadd.f32 %v7430_v62, %v2980_v60 }
 0x43d   : > { %v3130_v56 = vpop.f32.mrf.mxu1  ;;  %v9539_v42 = vpop.f32.mrf.mxu0 }
 0x43e   : > { %v9535_v58 = vadd.f32 %v3130_v56, %v2884_v41 }
 0x440   : > { %v3134_v54 = vpop.f32.mrf.mxu1 }
 0x441   : > { %v9537_v17 = vadd.f32 %v3134_v54, %v2888_v51 }
 0x442   : > { %v3136_v1 = vpop.f32.mrf.mxu1 }
 0x443   : > { %v9541_v14 = vadd.f32 %v3136_v1, %v2890_v32 }
 0x444   : > { %v3140_v8 = vpop.f32.mrf.mxu1  ;;  %v3381_v57 = vpop.f32.mrf.mxu0 }
 0x445   : > { %v9543_v24 = vadd.f32 %v3140_v8, %v2894_v19  ;;  %v2876_v8 = vadd.f32 %v9515_v35, %v9513_v38 }
 0x446   : > { %v3142_v2 = vpop.f32.mrf.mxu1  ;;  %v3383_v48 = vpop.f32.mrf.mxu0 }
 0x447   : > { %v9545_v23 = vadd.f32 %v3142_v2, %v2896_v4  ;;  %v3230_v21 = vadd.f32 %v9523_v15, %v2876_v8 }
 0x448   : > { %v9547_v16 = vpop.f32.mrf.mxu0  ;;  %v9549_v40 = vpop.f32.mrf.mxu1 }
 0x44a   : > { %v9551_v10 = vpop.f32.mrf.mxu0  ;;  %v9553_v3 = vpop.f32.mrf.mxu1 }
 0x44c   : > { %v9555_v37 = vpop.f32.mrf.mxu1 }
 0x44d   : > { %v9557_v47 = vpop.f32.mrf.mxu0 }
 0x44e   : > { %v9559_v49 = vpop.f32.mrf.mxu1 }
 0x44f   : > { %v9561_v29 = vpop.f32.mrf.mxu0 }
 0x452   : > { %v3640_v36 = vpop.f32.mrf.mxu1 }
 0x453   : > { %v9563_v0 = vpop.f32.mrf.mxu0 }
 0x454   : > { %v3642_v18 = vpop.f32.mrf.mxu1 }
 0x455   : > { %v9565_v20 = vpop.f32.mrf.mxu0 }
 0x456   : > { %v9567_v12 = vpop.f32.mrf.mxu1 }
 0x457   : > { %v9569_v5 = vpop.f32.mrf.mxu0 }
 0x458   : > { %v9571_v46 = vpop.f32.mrf.mxu1 }
 0x459   : > { %v9573_v45 = vpop.f32.mrf.mxu0 }
 0x45a   : > { %v9575_v25 = vpop.f32.mrf.mxu1 }
 0x45b   : > { %v9577_v6 = vpop.f32.mrf.mxu0 }
 0x45c   : > { %v9579_v52 = vpop.f32.mrf.mxu1 }
 0x45d   : > { %v9583_v13 = vpop.f32.mrf.mxu0 }
 0x45e   : > { %v9581_v61 = vpop.f32.mrf.mxu1 }
 0x460   : > { %v9585_v27 = vpop.f32.mrf.mxu1 }
 0x462   : > { %v3899_v41 = vpop.f32.mrf.mxu0  ;;  %v9587_v34 = vpop.f32.mrf.mxu1 }
 0x464   : > { %v3901_v51 = vpop.f32.mrf.mxu0  ;;  %v9589_v44 = vpop.f32.mrf.mxu1 }
 0x467   : > { %v9591_v53 = vpop.f32.mrf.mxu1 }
 0x468   : > { %v9593_v32 = vpop.f32.mrf.mxu0 }
 0x469   : > { %10908 = vst [vmem:[#allocation30_spill] sm:$0xff] %v9593_v32  ;;  %v9595_v33 = vpop.f32.mrf.mxu1  ;;  %v9632_v32 = vpop.permute.xlu0 %4812 }
 0x46a   : > { %10909 = vst [vmem:[#allocation20_spill] sm:$0xff] %v9595_v33  ;;  %v9597_v22 = vpop.f32.mrf.mxu0  ;;  %10920 = vst [vmem:[#allocation16_spill] sm:$0xff] %v9632_v32 }
 0x46d   : > { %v4158_v59 = vpop.f32.mrf.mxu1  ;;  %v9645_v32 = vpop.permute.xlu0 %4802 }
 0x46e   : > { %v9599_v60 = vpop.f32.mrf.mxu0 }
 0x46f   : > { %10910 = vst [vmem:[#allocation9_spill] sm:$0xff] %v9599_v60  ;;  %v4160_v19 = vpop.f32.mrf.mxu1 }
 0x470   : > { %v9601_v43 = vpop.f32.mrf.mxu0 }
 0x471   : > { %10911 = vst [vmem:[#allocation24_spill] sm:$0xff] %v9601_v43  ;;  %v9603_v11 = vpop.f32.mrf.mxu1  ;;  %v3489_v43 = vadd.f32 %v3381_v57, %v3230_v21 }
 0x472   : > { %10912 = vst [vmem:[#allocation21_spill] sm:$0xff] %v9603_v11  ;;  %v9605_v4 = vpop.f32.mrf.mxu0 }
 0x473   : > { %10913 = vst [vmem:[#allocation10_spill] sm:$0xff] %v9605_v4  ;;  %v9607_v50 = vpop.f32.mrf.mxu1 }
 0x474   : > { %10914 = vst [vmem:[#allocation7_spill] sm:$0xff] %v9607_v50  ;;  %v9609_v30 = vpop.f32.mrf.mxu0 }
 0x475   : > { %10915 = vst [vmem:[#allocation22_spill] sm:$0xff] %v9609_v30  ;;  %v9611_v62 = vpop.f32.mrf.mxu1 }
 0x476   : > { %10916 = vst [vmem:[#allocation28_spill] sm:$0xff] %v9611_v62  ;;  %v7483_v56 = vpop.f32.mrf.mxu0  ;;  %v3748_v62 = vadd.f32 %v3640_v36, %v3489_v43  ;;  %v3235_v36 = vadd.f32 %v9525_v39, %v9517_v63  ;;  %v3493_v63 = vadd.f32 %v9551_v10, %v9535_v58 }
 0x477   : > { %v9613_v54 = vpop.f32.mrf.mxu1 }
 0x478   : > { %10917 = vst [vmem:[#allocation31_spill] sm:$0xff] %v9613_v54  ;;  %v9615_v1 = vpop.f32.mrf.mxu0  ;;  %v4007_v60 = vadd.f32 %v3899_v41, %v3748_v62 }
 0x479   : > { %v9619_v2 = vpop.f32.mrf.mxu1 }
 0x47a   : > { %10918 = vst [vmem:[#allocation34_spill] sm:$0xff] %v9619_v2  ;;  %v9622_v11 = vpop.f32.mrf.mxu0  ;;  %v4266_v35 = vadd.f32 %v4158_v59, %v4007_v60  ;;  %v3490_v2 = vadd.f32 %v3383_v48, %v9527_v9  ;;  %v3232_v59 = vadd.f32 %v9529_v55, %v9519_v31  ;;  %v3238_v60 = vadd.f32 %v9539_v42, %v9521_v28 }
 0x47b   : > { %v9624_v4 = vpop.f32.mrf.mxu1  ;;  %v3494_v9 = vadd.f32 %v9549_v40, %v3235_v36  ;;  %v3495_v31 = vadd.f32 %v9557_v47, %v9537_v17  ;;  %v3500_v28 = vadd.f32 %v9555_v37, %v9533_v7  ;;  %v3498_v17 = vadd.f32 %v9563_v0, %v9543_v24 }
 0x47c   : > { %10919 = vst [vmem:[#allocation27_spill] sm:$0xff] %v9624_v4  ;;  %v9628_v50 = vpop.f32.mrf.mxu0  ;;  %v3749_v4 = vadd.f32 %v3642_v18, %v3490_v2  ;;  %v3497_v58 = vadd.f32 %v9559_v49, %v3238_v60  ;;  %v3499_v7 = vadd.f32 %v9565_v20, %v9545_v23  ;;  %v3752_v49 = vadd.f32 %v9571_v46, %v3493_v63 }
 0x47d   : > { %v9626_v30 = vpop.f32.mrf.mxu1  ;;  %v3753_v55 = vadd.f32 %v9569_v5, %v3494_v9  ;;  %v3754_v24 = vadd.f32 %v9575_v25, %v3495_v31  ;;  %v3759_v0 = vadd.f32 %v9577_v6, %v3500_v28  ;;  %v3757_v46 = vadd.f32 %v9581_v61, %v3498_v17 }
 0x47e   : > { %v4008_v39 = vadd.f32 %v3901_v51, %v3749_v4  ;;  %v4011_v25 = vadd.f32 %v9597_v22, %v3752_v49 }
 0x47f   : > { %v9630_v54 = vpop.f32.mrf.mxu1  ;;  %v4012_v47 = vadd.f32 %v9587_v34, %v3753_v55  ;;  %v4018_v36 = vadd.f32 %v9591_v53, %v3759_v0 }
 0x481   : > { %v4417_v33 = vpop.f32.mrf.mxu0  ;;  %v4271_v20 = vadd.f32 %v7483_v56, %v4012_v47  ;;  %v3758_v56 = vadd.f32 %v9585_v27, %v3499_v7  ;;  %v4277_v53 = vadd.f32 %v9622_v11, %v4018_v36  ;;  %v10928_v11 = vld [vmem:[#allocation22_spill] sm:$0xff] }
 0x482   : > { %v9634_v38 = vpop.f32.mrf.mxu1  ;;  %v4525_v21 = vadd.f32 %v4417_v33, %v4266_v35  ;;  %v3492_v33 = vadd.f32 %v9547_v16, %v9531_v26  ;;  %v3491_v35 = vadd.f32 %v9553_v3, %v3232_v59  ;;  %v3496_v26 = vadd.f32 %v9561_v29, %v9541_v14  ;;  %v9672_v3 = vpop.permute.xlu1 %4817 }
 0x483   : > { %v4419_v15 = vpop.f32.mrf.mxu0  ;;  %v4267_v16 = vadd.f32 %v4160_v19, %v4008_v39  ;;  %v4536_v55 = vadd.f32 %v9634_v38, %v4277_v53 }
 0x484   : > { %v9636_v8 = vpop.f32.mrf.mxu1  ;;  %v3750_v37 = vadd.f32 %v9573_v45, %v3491_v35  ;;  %v3751_v14 = vadd.f32 %v9567_v12, %v3492_v33  ;;  %v3755_v45 = vadd.f32 %v9579_v52, %v3496_v26  ;;  %v3756_v12 = vadd.f32 %v9583_v13, %v3497_v58  ;;  %v10923_v52 = vld [vmem:[#allocation20_spill] sm:$0xff]  ;;  %v10924_v13 = vld [vmem:[#allocation9_spill] sm:$0xff] }
 0x485   : > { %v9639_v57 = vpop.f32.mrf.mxu0  ;;  %v4526_v29 = vadd.f32 %v4419_v15, %v4267_v16  ;;  %v4013_v60 = vadd.f32 %v10924_v13, %v3754_v24 }
 0x486   : > { %v4676_v43 = vpop.f32.mrf.mxu1  ;;  %v4009_v23 = vadd.f32 %v9589_v44, %v3750_v37  ;;  %v4530_v44 = vadd.f32 %v9626_v30, %v4271_v20  ;;  %v4015_v59 = vadd.f32 %v10923_v52, %v3756_v12  ;;  %v4808_v9 = vpop.permute.xlu1 %4807  ;;  %v10927_v30 = vld [vmem:[#allocation21_spill] sm:$0xff] }
 0x487   : > { %v9643_v41 = vpop.f32.mrf.mxu0  ;;  %v4784_v62 = vadd.f32 %v4676_v43, %v4525_v21  ;;  %v10922_v43 = vld [vmem:[#allocation30_spill] sm:$0xff] }
 0x488   : > { %v4678_v48 = vpop.f32.mrf.mxu1  ;;  %v4268_v6 = vadd.f32 %v9615_v1, %v4009_v23  ;;  %v10926_v1 = vld [vmem:[#allocation24_spill] sm:$0xff]  ;;  %v4274_v27 = vadd.f32 %v9628_v50, %v4015_v59 }
 0x489   : > { %v4820_v18 = vadd.f32 %v9645_v32, %v4784_v62  ;;  %v9657_v2 = vpop.f32.mrf.mxu0  ;;  %v4785_v34 = vadd.f32 %v4678_v48, %v4526_v29  ;;  %v4010_v62 = vadd.f32 %v10922_v43, %v3751_v14  ;;  %v10925_v48 = vld [vmem:[#allocation7_spill] sm:$0xff]  ;;  %v4014_v39 = vadd.f32 %v10926_v1, %v3755_v45 }
 0x48a   : > { %v9665_v42 = vpop.f32.mrf.mxu1  ;;  %v4270_v33 = vadd.f32 %v10925_v48, %v4011_v25  ;;  %v4527_v22 = vadd.f32 %v9630_v54, %v4268_v6  ;;  %v10929_v54 = vld [vmem:[#allocation28_spill] sm:$0xff]  ;;  %v4533_v7 = vadd.f32 %v9636_v8, %v4274_v27 }
 0x48b   : > { %v4832_v40 = vmax.f32 %v4820_v18, 0.0  ;;  %v9670_v10 = vpop.f32.mrf.mxu0  ;;  %v4269_v18 = vadd.f32 %v10927_v30, %v4010_v62  ;;  %v4821_v35 = vadd.f32 %v9645_v32, %v4785_v34  ;;  %v4272_v17 = vadd.f32 %v10929_v54, %v4013_v60  ;;  %v10932_v34 = vld [vmem:[#allocation10_spill] sm:$0xff] }
 0x48c   : > { %v4684_v5 = vpop.f32.mrf.mxu1  ;;  %v4529_v26 = vadd.f32 %v9643_v41, %v4270_v33  ;;  %v4016_v36 = vadd.f32 %v10932_v34, %v3757_v46  ;;  %v10935_v62 = vld [vmem:[#allocation34_spill] sm:$0xff] }
 0x48d   : > { %v9682_v51 = vpop.f32.mrf.mxu0  ;;  %v4844_v4 = vsel %vm8341_vm12, %v4832_v40, 0.0  ;;  %v4017_v40 = vadd.f32 %v10928_v11, %v3758_v56  ;;  %v4528_v37 = vadd.f32 %v9639_v57, %v4269_v18  ;;  %v4531_v41 = vadd.f32 %v9657_v2, %v4272_v17 }
 0x48e   : > { %4868 = vrot.lane.b32.xlu0 %v4844_v4, %s7671_s26  ;;  %v4688_v21 = vpop.f32.mrf.mxu1  ;;  %v4788_v50 = vadd.f32 %v4684_v5, %v4529_v26  ;;  %v10930_v4 = vld [vmem:[#allocation31_spill] sm:$0xff]  ;;  %v4833_v24 = vmax.f32 %v4821_v35, 0.0  ;;  %v4275_v52 = vadd.f32 %v10935_v62, %v4016_v36 }
 0x48f   : > { %v4437_v15 = vpop.f32.mrf.mxu0  ;;  %v4273_v38 = vadd.f32 %v10930_v4, %v4014_v39  ;;  %v4787_v0 = vadd.f32 %v9665_v42, %v4528_v37  ;;  %v10934_v42 = vld [vmem:[#allocation16_spill] sm:$0xff] }
 0x490   : > { %v4690_v31 = vpop.f32.mrf.mxu1  ;;  %v4824_v2 = vadd.f32 %v4808_v9, %v4788_v50  ;;  %v4845_v60 = vsel %vm8382_vm13, %v4833_v24, 0.0 }
 0x491   : > { %v7511_v61 = vpop.f32.mrf.mxu0  ;;  %v4532_v6 = vadd.f32 %v9670_v10, %v4273_v38  ;;  %v4823_v59 = vadd.f32 %v4808_v9, %v4787_v0 }
 0x492   : > { %v4789_v63 = vadd.f32 %v7511_v61, %v4530_v44  ;;  %v4694_v23 = vpop.f32.mrf.mxu1  ;;  %v4790_v44 = vadd.f32 %v4688_v21, %v4531_v41  ;;  %v4534_v21 = vadd.f32 %v9682_v51, %v4275_v52  ;;  %v4836_v53 = vmax.f32 %v4824_v2, 0.0 }
 0x493   : > { %v4765_v28 = vpop.f32.mrf.mxu0  ;;  %v4791_v10 = vadd.f32 %v4690_v31, %v4532_v6  ;;  %v4835_v1 = vmax.f32 %v4823_v59, 0.0 }
 0x494   : > { %v4825_v58 = vadd.f32 %v4808_v9, %v4789_v63  ;;  %v4786_v16 = vadd.f32 %v4765_v28, %v4527_v22  ;;  %v4696_v13 = vpop.f32.mrf.mxu1  ;;  %v4826_v22 = vadd.f32 %v10934_v42, %v4790_v44  ;;  %v4848_v27 = vsel %vm8382_vm13, %v4836_v53, 0.0 }
 0x495   : > { %v7514_v47 = vpop.f32.mrf.mxu0  ;;  %v4827_v39 = vadd.f32 %v10934_v42, %v4791_v10  ;;  %v4847_v28 = vsel %vm8341_vm12, %v4835_v1, 0.0 }
 0x496   : > { %v4837_v14 = vmax.f32 %v4825_v58, 0.0  ;;  %v4822_v49 = vadd.f32 %v9645_v32, %v4786_v16  ;;  %v4795_v29 = vadd.f32 %v7514_v47, %v4536_v55  ;;  %v10933_v32 = vld [vmem:[#allocation27_spill] sm:$0xff]  ;;  %v4838_v51 = vmax.f32 %v4826_v22, 0.0 }
 0x497   : > { %v4775_v20 = vpop.f32.mrf.mxu0  ;;  %v4276_v25 = vadd.f32 %v10933_v32, %v4017_v40  ;;  %v4839_v35 = vmax.f32 %v4827_v39, 0.0 }
 0x498   : > { %v4834_v45 = vmax.f32 %v4822_v49, 0.0  ;;  %v4831_v8 = vadd.f32 %v9672_v3, %v4795_v29  ;;  %v4792_v12 = vadd.f32 %v4775_v20, %v4533_v7  ;;  %v4849_v5 = vsel %vm8337_vm10, %v4837_v14, 0.0 }
 0x499   : > { %4878 = vrot.lane.b32.xlu1 %v4849_v5, %s7671_s26  ;;  %v4535_v61 = vadd.f32 %v4437_v15, %v4276_v25  ;;  %v4793_v15 = vadd.f32 %v4694_v23, %v4534_v21  ;;  %v4850_v26 = vsel %vm8341_vm12, %v4838_v51, 0.0  ;;  %v4851_v16 = vsel %vm8382_vm13, %v4839_v35, 0.0 }
 0x49a   : > { %v4828_v56 = vadd.f32 %v10934_v42, %v4792_v12  ;;  %v4846_v43 = vsel %vm8337_vm10, %v4834_v45, 0.0  ;;  %v4843_v48 = vmax.f32 %v4831_v8, 0.0 }
 0x49b   : > { %4872 = vrot.lane.b32.xlu0 %v4846_v43, %s7671_s26  ;;  %v4794_v63 = vadd.f32 %v4696_v13, %v4535_v61  ;;  %v4829_v31 = vadd.f32 %v9672_v3, %v4793_v15 }
 0x49c   : > { %v4840_v33 = vmax.f32 %v4828_v56, 0.0  ;;  %v4855_v30 = vsel %vm8337_vm10, %v4843_v48, 0.0 }
 0x49d   : > { %4870 = vrot.lane.b32.xlu1 %v4845_v60, %s7671_s26  ;;  %v4830_v18 = vadd.f32 %v9672_v3, %v4794_v63  ;;  %v4841_v58 = vmax.f32 %v4829_v31, 0.0 }
 0x49e   : > { %v4852_v9 = vsel %vm8337_vm10, %v4840_v33, 0.0  ;;  %vm7672_vm10 = vmmov 0  }
 0x49f   : > { %4884 = vrot.lane.b32.xlu0 %v4852_v9, %s7671_s26  ;;  %v4842_v55 = vmax.f32 %v4830_v18, 0.0  ;;  %v4853_v11 = vsel %vm8341_vm12, %v4841_v58, 0.0  ;;  %vm10985_vm12 = vcmask 588800  }
 0x4a1   : > { %4890 = vrot.lane.b32.xlu1 %v4855_v30, %s7671_s26  ;;  %v4854_v3 = vsel %vm8382_vm13, %v4842_v55, 0.0  ;;  %vm10987_vm13 = vmmov %vm10985_vm12 }
 0x4a3   : > { %4876 = vrot.lane.b32.xlu0 %v4848_v27, %s7671_s26 }
 0x4a5   : > { %4874 = vrot.lane.b32.xlu1 %v4847_v28, %s7671_s26 }
 0x4a7   : > { %4880 = vrot.lane.b32.xlu0 %v4850_v26, %s7671_s26 }
 0x4a9   : > { %4882 = vrot.lane.b32.xlu1 %v4851_v16, %s7671_s26 }
 0x4ab   : > { %4888 = vrot.lane.b32.xlu0 %v4854_v3, %s7671_s26 }
 0x4ad   : > { %4886 = vrot.lane.b32.xlu1 %v4853_v11, %s7671_s26 }
 0x500   : > { %v4869_v40 = vpop.permute.xlu0 %4868 }
 0x501   : > { %v9763_v54 = vsel %vm2408_vm14, 0.0, %v4869_v40 }
 0x502   : > { %4975 = vrot.lane.b32.xlu1 %v9763_v54, %s7661_s9 }
 0x50b   : > { %v4879_v17 = vpop.permute.xlu1 %4878 }
 0x50c   : > { %v4921_v7 = vsel %vm2408_vm14, %v4879_v17, 0.0 }
 0x50d   : > { %4931 = vst.msk [vmem:[#allocation3 + $0x38] sm:$0xff] %vm2444_vm15, %v4921_v7  ;;  %v4873_v37 = vpop.permute.xlu0 %4872 }
 0x50e   : > { %v4920_v47 = vsel %vm2408_vm14, %v4873_v37, 0.0 }
 0x50f   : > { %4927 = vst.msk [vmem:[#allocation3 + $0x18] sm:$0xff] %vm2444_vm15, %v4920_v47  ;;  %v4871_v19 = vpop.permute.xlu1 %4870 }
 0x510   : > { %v9772_v50 = vsel %vm2408_vm14, %v4869_v40, %v4871_v19  ;;  %v9775_v14 = vsel %vm2408_vm14, %v4871_v19, %v4873_v37 }
 0x511   : > { %v4885_v49 = vpop.permute.xlu0 %4884  ;;  %4979 = vrot.lane.b32.xlu0 %v9775_v14, %s7661_s9 }
 0x512   : > { %v4922_v29 = vsel %vm2408_vm14, %v4885_v49, 0.0 }
 0x513   : > { %4935 = vst.msk [vmem:[#allocation3 + $0x58] sm:$0xff] %vm2444_vm15, %v4922_v29  ;;  %v4891_v4 = vpop.permute.xlu1 %4890 }
 0x514   : > { %v4923_v38 = vsel %vm2408_vm14, %v4891_v4, 0.0  ;;  %v9782_v41 = vld [vmem:[#allocation3 + $0x38] sm:$0xff] }
 0x515   : > { %4939 = vst.msk [vmem:[#allocation3 + $0x78] sm:$0xff] %vm2444_vm15, %v4923_v38  ;;  %4989 = vrot.lane.b32.xlu1 %v9782_v41, %s7661_s9  ;;  %v4877_v24 = vpop.permute.xlu0 %4876  ;;  %5179 = vrot.lane.b32.xlu0 %v9775_v14, %s7662_s10  ;;  %vm10988_vm15 = vmmov %vm10985_vm12 }
 0x516   : > { %v9790_v0 = vsel %vm2408_vm14, %v4877_v24, %v4879_v17  ;;  %v9870_v42 = vld [vmem:[#allocation3 + $0x18] sm:$0xff] }
 0x517   : > { %v4875_v23 = vpop.permute.xlu1 %4874 }
 0x518   : > { %v9793_v20 = vsel %vm2408_vm14, %v4875_v23, %v4877_v24  ;;  %v9796_v45 = vsel %vm2408_vm14, 0.0, %v4875_v23 }
 0x519   : > { %5175 = vrot.lane.b32.xlu1 %v9763_v54, %s7662_s10  ;;  %v4881_v8 = vpop.permute.xlu0 %4880  ;;  %5381 = vrot.lane.b32.xlu0 %v9775_v14, %s7663_s11 }
 0x51a   : > { %v9803_v12 = vsel %vm2408_vm14, 0.0, %v4881_v8  ;;  %v9872_v56 = vld [vmem:[#allocation3 + $0x58] sm:$0xff] }
 0x51b   : > { %v4883_v57 = vpop.permute.xlu1 %4882 }
 0x51c   : > { %v9806_v5 = vsel %vm2408_vm14, %v4881_v8, %v4883_v57  ;;  %v9809_v34 = vsel %vm2408_vm14, %v4883_v57, %v4885_v49  ;;  %v9836_v44 = vld [vmem:[#allocation3 + $0x78] sm:$0xff] }
 0x51d   : > { %5189 = vrot.lane.b32.xlu1 %v9782_v41, %s7662_s10  ;;  %v4889_v36 = vpop.permute.xlu0 %4888  ;;  %5586 = vrot.lane.b32.xlu0 %v9775_v14, %s7664_s12 }
 0x51e   : > { %v9816_v32 = vsel %vm2408_vm14, %v4889_v36, %v4891_v4 }
 0x51f   : > { %v4887_v25 = vpop.permute.xlu1 %4886 }
 0x520   : > { %v9819_v6 = vsel %vm2408_vm14, %v4887_v25, %v4889_v36  ;;  %v9822_v2 = vsel %vm2408_vm14, 0.0, %v4887_v25  ;;  %v10957_v36 = vmov 0.0  }
 0x521   : > { %5377 = vrot.lane.b32.xlu1 %v9763_v54, %s7663_s11  ;;  %5791 = vrot.lane.b32.xlu0 %v9775_v14, %s7665_s13 }
 0x522   : > { %7523 = vmatprep.mubr.msk.f32.mxu1 %vm7672_vm10, %v10957_v36 }
 0x525   : > { %5391 = vrot.lane.b32.xlu1 %v9782_v41, %s7663_s11  ;;  %5996 = vrot.lane.b32.xlu0 %v9775_v14, %s7666_s14 }
 0x529   : > { %5582 = vrot.lane.b32.xlu1 %v9763_v54, %s7664_s12  ;;  %6201 = vrot.lane.b32.xlu0 %v9775_v14, %s7667_s15 }
 0x52d   : > { %5596 = vrot.lane.b32.xlu1 %v9782_v41, %s7664_s12  ;;  %5005 = vrot.lane.b32.xlu0 %v9836_v44, %s7661_s9 }
 0x531   : > { %5787 = vrot.lane.b32.xlu1 %v9763_v54, %s7665_s13  ;;  %5205 = vrot.lane.b32.xlu0 %v9836_v44, %s7662_s10 }
 0x535   : > { %5801 = vrot.lane.b32.xlu1 %v9782_v41, %s7665_s13  ;;  %5407 = vrot.lane.b32.xlu0 %v9836_v44, %s7663_s11 }
 0x539   : > { %5992 = vrot.lane.b32.xlu1 %v9763_v54, %s7666_s14  ;;  %5612 = vrot.lane.b32.xlu0 %v9836_v44, %s7664_s12 }
 0x53d   : > { %6006 = vrot.lane.b32.xlu1 %v9782_v41, %s7666_s14  ;;  %5817 = vrot.lane.b32.xlu0 %v9836_v44, %s7665_s13 }
 0x541   : > { %6197 = vrot.lane.b32.xlu1 %v9763_v54, %s7667_s15  ;;  %6022 = vrot.lane.b32.xlu0 %v9836_v44, %s7666_s14 }
 0x545   : > { %6211 = vrot.lane.b32.xlu1 %v9782_v41, %s7667_s15  ;;  %6227 = vrot.lane.b32.xlu0 %v9836_v44, %s7667_s15 }
 0x549   : > { %4977 = vrot.lane.b32.xlu1 %v9772_v50, %s7661_s9  ;;  %4987 = vrot.lane.b32.xlu0 %v9790_v0, %s7661_s9 }
 0x54d   : > { %4981 = vrot.lane.b32.xlu1 %v9870_v42, %s7661_s9  ;;  %4997 = vrot.lane.b32.xlu0 %v9872_v56, %s7661_s9 }
 0x551   : > { %5177 = vrot.lane.b32.xlu1 %v9772_v50, %s7662_s10  ;;  %5187 = vrot.lane.b32.xlu0 %v9790_v0, %s7662_s10 }
 0x555   : > { %5181 = vrot.lane.b32.xlu1 %v9870_v42, %s7662_s10  ;;  %5197 = vrot.lane.b32.xlu0 %v9872_v56, %s7662_s10 }
 0x559   : > { %5379 = vrot.lane.b32.xlu1 %v9772_v50, %s7663_s11  ;;  %5389 = vrot.lane.b32.xlu0 %v9790_v0, %s7663_s11 }
 0x55d   : > { %5383 = vrot.lane.b32.xlu1 %v9870_v42, %s7663_s11  ;;  %5399 = vrot.lane.b32.xlu0 %v9872_v56, %s7663_s11 }
 0x561   : > { %5584 = vrot.lane.b32.xlu1 %v9772_v50, %s7664_s12  ;;  %5594 = vrot.lane.b32.xlu0 %v9790_v0, %s7664_s12 }
 0x565   : > { %5588 = vrot.lane.b32.xlu1 %v9870_v42, %s7664_s12  ;;  %5604 = vrot.lane.b32.xlu0 %v9872_v56, %s7664_s12 }
 0x569   : > { %5789 = vrot.lane.b32.xlu1 %v9772_v50, %s7665_s13  ;;  %5799 = vrot.lane.b32.xlu0 %v9790_v0, %s7665_s13 }
 0x56d   : > { %5793 = vrot.lane.b32.xlu1 %v9870_v42, %s7665_s13  ;;  %5809 = vrot.lane.b32.xlu0 %v9872_v56, %s7665_s13 }
 0x571   : > { %5994 = vrot.lane.b32.xlu1 %v9772_v50, %s7666_s14  ;;  %6004 = vrot.lane.b32.xlu0 %v9790_v0, %s7666_s14 }
 0x574   : > { %v9930_v43 = vpop.permute.xlu1 %4975 }
 0x575   : > { %5998 = vrot.lane.b32.xlu1 %v9870_v42, %s7666_s14  ;;  %6014 = vrot.lane.b32.xlu0 %v9872_v56, %s7666_s14 }
 0x579   : > { %6199 = vrot.lane.b32.xlu1 %v9772_v50, %s7667_s15  ;;  %6209 = vrot.lane.b32.xlu0 %v9790_v0, %s7667_s15 }
 0x57d   : > { %6203 = vrot.lane.b32.xlu1 %v9870_v42, %s7667_s15  ;;  %6219 = vrot.lane.b32.xlu0 %v9872_v56, %s7667_s15 }
 0x581   : > { %4983 = vrot.lane.b32.xlu1 %v9796_v45, %s7661_s9  ;;  %6414 = vrot.lane.b32.xlu0 %v9790_v0, %s7668_s16 }
 0x583   : > { %v9932_v62 = vpop.permute.xlu0 %4979 }
 0x585   : > { %5183 = vrot.lane.b32.xlu1 %v9796_v45, %s7662_s10  ;;  %4991 = vrot.lane.b32.xlu0 %v9803_v12, %s7661_s9 }
 0x587   : > { %v9938_v52 = vpop.permute.xlu1 %4989  ;;  %v9940_v59 = vpop.permute.xlu0 %5179 }
 0x589   : > { %5385 = vrot.lane.b32.xlu1 %v9796_v45, %s7663_s11  ;;  %5191 = vrot.lane.b32.xlu0 %v9803_v12, %s7662_s10 }
 0x58b   : > { %v9946_v13 = vpop.permute.xlu1 %5175  ;;  %v9948_v46 = vpop.permute.xlu0 %5381 }
 0x58d   : > { %5590 = vrot.lane.b32.xlu1 %v9796_v45, %s7664_s12  ;;  %5393 = vrot.lane.b32.xlu0 %v9803_v12, %s7663_s11 }
 0x58f   : > { %v9954_v60 = vpop.permute.xlu1 %5189  ;;  %v9956_v61 = vpop.permute.xlu0 %5586 }
 0x590   : > { %10937 = vst [vmem:[#allocation6_spill] sm:$0xff] %v9956_v61 }
 0x591   : > { %5795 = vrot.lane.b32.xlu1 %v9796_v45, %s7665_s13  ;;  %5598 = vrot.lane.b32.xlu0 %v9803_v12, %s7664_s12 }
 0x593   : > { %v9962_v10 = vpop.permute.xlu1 %5377  ;;  %v9964_v48 = vpop.permute.xlu0 %5791 }
 0x594   : > { %10938 = vst [vmem:[#allocation14_spill] sm:$0xff] %v9964_v48 }
 0x595   : > { %6000 = vrot.lane.b32.xlu1 %v9796_v45, %s7666_s14  ;;  %5803 = vrot.lane.b32.xlu0 %v9803_v12, %s7665_s13 }
 0x597   : > { %v9970_v33 = vpop.permute.xlu1 %5391  ;;  %v9972_v21 = vpop.permute.xlu0 %5996 }
 0x598   : > { %10939 = vst [vmem:[#allocation11_spill] sm:$0xff] %v9972_v21 }
 0x599   : > { %6205 = vrot.lane.b32.xlu1 %v9796_v45, %s7667_s15  ;;  %6008 = vrot.lane.b32.xlu0 %v9803_v12, %s7666_s14 }
 0x59b   : > { %v9978_v53 = vpop.permute.xlu1 %5582  ;;  %v9980_v22 = vpop.permute.xlu0 %6201 }
 0x59c   : > { %10940 = vst [vmem:[#allocation26_spill] sm:$0xff] %v9978_v53  ;;  %10941 = vst [vmem:[#allocation12_spill] sm:$0xff] %v9980_v22 }
 0x59d   : > { %4985 = vrot.lane.b32.xlu1 %v9793_v20, %s7661_s9  ;;  %6213 = vrot.lane.b32.xlu0 %v9803_v12, %s7667_s15 }
 0x59f   : > { %v9986_v63 = vpop.permute.xlu1 %5596  ;;  %v9988_v9 = vpop.permute.xlu0 %5005 }
 0x5a0   : > { %10942 = vst [vmem:[#allocation8_spill] sm:$0xff] %v9986_v63 }
 0x5a1   : > { %5185 = vrot.lane.b32.xlu1 %v9793_v20, %s7662_s10  ;;  %6418 = vrot.lane.b32.xlu0 %v9803_v12, %s7668_s16 }
 0x5a3   : > { %v9994_v1 = vpop.permute.xlu1 %5787  ;;  %v9996_v39 = vpop.permute.xlu0 %5205 }
 0x5a4   : > { %10943 = vst [vmem:[#allocation23_spill] sm:$0xff] %v9994_v1 }
 0x5a5   : > { %5387 = vrot.lane.b32.xlu1 %v9793_v20, %s7663_s11  ;;  %4993 = vrot.lane.b32.xlu0 %v9806_v5, %s7661_s9 }
 0x5a7   : > { %v10002_v15 = vpop.permute.xlu1 %5801  ;;  %v10004_v30 = vpop.permute.xlu0 %5407 }
 0x5a8   : > { %10944 = vst [vmem:[#allocation29_spill] sm:$0xff] %v10002_v15 }
 0x5a9   : > { %5592 = vrot.lane.b32.xlu1 %v9793_v20, %s7664_s12  ;;  %5195 = vrot.lane.b32.xlu0 %v9809_v34, %s7662_s10 }
 0x5ab   : > { %v10010_v51 = vpop.permute.xlu1 %5992  ;;  %v10012_v18 = vpop.permute.xlu0 %5612 }
 0x5ac   : > { %10945 = vst [vmem:[#allocation32_spill] sm:$0xff] %v10010_v51 }
 0x5ad   : > { %5797 = vrot.lane.b32.xlu1 %v9793_v20, %s7665_s13  ;;  %5397 = vrot.lane.b32.xlu0 %v9809_v34, %s7663_s11 }
 0x5af   : > { %v10018_v27 = vpop.permute.xlu1 %6006  ;;  %v10020_v35 = vpop.permute.xlu0 %5817 }
 0x5b0   : > { %10946 = vst [vmem:[#allocation15_spill] sm:$0xff] %v10018_v27  ;;  %10947 = vst [vmem:[#allocation17_spill] sm:$0xff] %v10020_v35 }
 0x5b1   : > { %6002 = vrot.lane.b32.xlu1 %v9793_v20, %s7666_s14  ;;  %5602 = vrot.lane.b32.xlu0 %v9809_v34, %s7664_s12 }
 0x5b3   : > { %v10026_v31 = vpop.permute.xlu1 %6197  ;;  %v10028_v28 = vpop.permute.xlu0 %6022 }
 0x5b4   : > { %10948 = vst [vmem:[#allocation33_spill] sm:$0xff] %v10026_v31  ;;  %10949 = vst [vmem:[#allocation18_spill] sm:$0xff] %v10028_v28 }
 0x5b5   : > { %6207 = vrot.lane.b32.xlu1 %v9793_v20, %s7667_s15  ;;  %5807 = vrot.lane.b32.xlu0 %v9809_v34, %s7665_s13 }
 0x5b7   : > { %v10034_v55 = vpop.permute.xlu1 %6211  ;;  %v10036_v26 = vpop.permute.xlu0 %6227 }
 0x5b8   : > { %10950 = vst [vmem:[#allocation19_spill] sm:$0xff] %v10034_v55  ;;  %10951 = vst [vmem:[#allocation35_spill] sm:$0xff] %v10036_v26 }
 0x5b9   : > { %6412 = vrot.lane.b32.xlu1 %v9793_v20, %s7668_s16  ;;  %6012 = vrot.lane.b32.xlu0 %v9809_v34, %s7666_s14 }
 0x5bb   : > { %v10042_v58 = vpop.permute.xlu1 %4977  ;;  %v10044_v16 = vpop.permute.xlu0 %4987 }
 0x5bd   : > { %4995 = vrot.lane.b32.xlu1 %v9809_v34, %s7661_s9  ;;  %6217 = vrot.lane.b32.xlu0 %v9809_v34, %s7667_s15 }
 0x5bf   : > { %v10050_v3 = vpop.permute.xlu1 %4981  ;;  %v10052_v11 = vpop.permute.xlu0 %4997 }
 0x5c1   : > { %5193 = vrot.lane.b32.xlu1 %v9806_v5, %s7662_s10  ;;  %6422 = vrot.lane.b32.xlu0 %v9809_v34, %s7668_s16 }
 0x5c3   : > { %v10058_v40 = vpop.permute.xlu1 %5177  ;;  %v10060_v17 = vpop.permute.xlu0 %5187 }
 0x5c5   : > { %5395 = vrot.lane.b32.xlu1 %v9806_v5, %s7663_s11  ;;  %5199 = vrot.lane.b32.xlu0 %v9822_v2, %s7662_s10 }
 0x5c7   : > { %v10066_v7 = vpop.permute.xlu1 %5181  ;;  %v10068_v37 = vpop.permute.xlu0 %5197 }
 0x5c9   : > { %5600 = vrot.lane.b32.xlu1 %v9806_v5, %s7664_s12  ;;  %5401 = vrot.lane.b32.xlu0 %v9822_v2, %s7663_s11 }
 0x5cb   : > { %v10074_v47 = vpop.permute.xlu1 %5379  ;;  %v10076_v19 = vpop.permute.xlu0 %5389 }
 0x5cd   : > { %5805 = vrot.lane.b32.xlu1 %v9806_v5, %s7665_s13  ;;  %5606 = vrot.lane.b32.xlu0 %v9822_v2, %s7664_s12 }
 0x5cf   : > { %v10082_v49 = vpop.permute.xlu1 %5383  ;;  %v10084_v29 = vpop.permute.xlu0 %5399 }
 0x5d1   : > { %6010 = vrot.lane.b32.xlu1 %v9806_v5, %s7666_s14  ;;  %5811 = vrot.lane.b32.xlu0 %v9822_v2, %s7665_s13 }
 0x5d3   : > { %v10090_v4 = vpop.permute.xlu1 %5584  ;;  %v10092_v38 = vpop.permute.xlu0 %5594 }
 0x5d4   : > { %10952 = vst [vmem:[#allocation25_spill] sm:$0xff] %v10090_v4  ;;  %10953 = vst [vmem:[#allocation36_spill] sm:$0xff] %v10092_v38 }
 0x5d5   : > { %6215 = vrot.lane.b32.xlu1 %v9806_v5, %s7667_s15  ;;  %6016 = vrot.lane.b32.xlu0 %v9822_v2, %s7666_s14 }
 0x5d7   : > { %v10098_v24 = vpop.permute.xlu1 %5588  ;;  %v10100_v23 = vpop.permute.xlu0 %5604 }
 0x5d8   : > { %10954 = vst [vmem:[#allocation37_spill] sm:$0xff] %v10098_v24 }
 0x5d9   : > { %6420 = vrot.lane.b32.xlu1 %v9806_v5, %s7668_s16  ;;  %6221 = vrot.lane.b32.xlu0 %v9822_v2, %s7667_s15 }
 0x5db   : > { %v10106_v8 = vpop.permute.xlu1 %5789  ;;  %v10108_v57 = vpop.permute.xlu0 %5799 }
 0x5dc   : > { %10955 = vst [vmem:[#allocation38_spill] sm:$0xff] %v10106_v8  ;;  %10956 = vst [vmem:[#allocation4_spill] sm:$0xff] %v10108_v57 }
 0x5dd   : > { %4999 = vrot.lane.b32.xlu1 %v9822_v2, %s7661_s9  ;;  %6426 = vrot.lane.b32.xlu0 %v9822_v2, %s7668_s16 }
 0x5df   : > { %v10116_v25 = vpop.permute.xlu1 %5793  ;;  %v10118_v31 = vpop.permute.xlu0 %5809 }
 0x5e0   : > { %10958 = vst [vmem:[#allocation30_spill] sm:$0xff] %v10116_v25  ;;  %10959 = vst [vmem:[#allocation20_spill] sm:$0xff] %v10118_v31 }
 0x5e1   : > { %5001 = vrot.lane.b32.xlu1 %v9819_v6, %s7661_s9  ;;  %5003 = vrot.lane.b32.xlu0 %v9816_v32, %s7661_s9 }
 0x5e3   : > { %v10124_v22 = vpop.permute.xlu1 %5994  ;;  %v10126_v55 = vpop.permute.xlu0 %6004 }
 0x5e4   : > { %10960 = vst [vmem:[#allocation9_spill] sm:$0xff] %v10124_v22  ;;  %10961 = vst [vmem:[#allocation7_spill] sm:$0xff] %v10126_v55 }
 0x5e5   : > { %6410 = vrot.lane.b32.xlu1 %v9796_v45, %s7668_s16  ;;  %6432 = vrot.lane.b32.xlu0 %v9836_v44, %s7668_s16 }
 0x5e7   : > { %v10132_v26 = vpop.permute.xlu1 %5998  ;;  %v10134_v51 = vpop.permute.xlu0 %6014 }
 0x5e8   : > { %10962 = vst [vmem:[#allocation24_spill] sm:$0xff] %v10132_v26  ;;  %10963 = vst [vmem:[#allocation21_spill] sm:$0xff] %v10134_v51 }
 0x5e9   : > { %5201 = vrot.lane.b32.xlu1 %v9819_v6, %s7662_s10  ;;  %5203 = vrot.lane.b32.xlu0 %v9816_v32, %s7662_s10 }
 0x5eb   : > { %v10140_v21 = vpop.permute.xlu1 %6199  ;;  %v10142_v22 = vpop.permute.xlu0 %6209 }
 0x5ec   : > { %10964 = vst [vmem:[#allocation22_spill] sm:$0xff] %v10140_v21  ;;  %10965 = vst [vmem:[#allocation28_spill] sm:$0xff] %v10142_v22 }
 0x5ed   : > { %6404 = vrot.lane.b32.xlu1 %v9772_v50, %s7668_s16  ;;  %6406 = vrot.lane.b32.xlu0 %v9775_v14, %s7668_s16 }
 0x5ef   : > { %v10148_v27 = vpop.permute.xlu1 %6203  ;;  %v10150_v26 = vpop.permute.xlu0 %6219 }
 0x5f0   : > { %10966 = vst [vmem:[#allocation31_spill] sm:$0xff] %v10148_v27 }
 0x5f1   : > { %5403 = vrot.lane.b32.xlu1 %v9819_v6, %s7663_s11  ;;  %5405 = vrot.lane.b32.xlu0 %v9816_v32, %s7663_s11  ;;  %s278_s11 = scalar_lea.vmem %s10726_s7, %s7614_s29 }
 0x5f3   : > { %v4984_v51 = vpop.permute.xlu1 %4983  ;;  %v10156_v21 = vpop.permute.xlu0 %6414 }
 0x5f4   : > { %10967 = vst [vmem:[#allocation13_spill] sm:$0xff] %v10156_v21 }
 0x5f5   : > { %6402 = vrot.lane.b32.xlu1 %v9763_v54, %s7668_s16  ;;  %6424 = vrot.lane.b32.xlu0 %v9872_v56, %s7668_s16 }
 0x5f7   : > { %v5184_v28 = vpop.permute.xlu1 %5183  ;;  %v10162_v1 = vpop.permute.xlu0 %4991 }
 0x5f9   : > { %5608 = vrot.lane.b32.xlu1 %v9819_v6, %s7664_s12  ;;  %5610 = vrot.lane.b32.xlu0 %v9816_v32, %s7664_s12 }
 0x5fb   : > { %v5386_v27 = vpop.permute.xlu1 %5385  ;;  %v10168_v8 = vpop.permute.xlu0 %5191 }
 0x5fd   : > { %6416 = vrot.lane.b32.xlu1 %v9782_v41, %s7668_s16  ;;  %6631 = vrot.lane.b32.xlu0 %v9822_v2, %s7669_s17 }
 0x5ff   : > { %v5591_v21 = vpop.permute.xlu1 %5590  ;;  %v10174_v48 = vpop.permute.xlu0 %5393 }
 0x601   : > { %5813 = vrot.lane.b32.xlu1 %v9819_v6, %s7665_s13  ;;  %5815 = vrot.lane.b32.xlu0 %v9816_v32, %s7665_s13 }
 0x603   : > { %v5796_v25 = vpop.permute.xlu1 %5795  ;;  %v10180_v15 = vpop.permute.xlu0 %5598 }
 0x604   : > { %10968 = vst [vmem:[#allocation10_spill] sm:$0xff] %v10180_v15 }
 0x605   : > { %6625 = vrot.lane.b32.xlu1 %v9806_v5, %s7669_s17  ;;  %6627 = vrot.lane.b32.xlu0 %v9809_v34, %s7669_s17 }
 0x607   : > { %v6001_v57 = vpop.permute.xlu1 %6000  ;;  %v10186_v2 = vpop.permute.xlu0 %5803 }
 0x608   : > { %10969 = vst [vmem:[#allocation27_spill] sm:$0xff] %v10186_v2 }
 0x609   : > { %6018 = vrot.lane.b32.xlu1 %v9819_v6, %s7666_s14  ;;  %6020 = vrot.lane.b32.xlu0 %v9816_v32, %s7666_s14 }
 0x60b   : > { %v6206_v31 = vpop.permute.xlu1 %6205  ;;  %v6009_v35 = vpop.permute.xlu0 %6008 }
 0x60d   : > { %6408 = vrot.lane.b32.xlu1 %v9870_v42, %s7668_s16  ;;  %6623 = vrot.lane.b32.xlu0 %v9803_v12, %s7669_s17 }
 0x60f   : > { %v10196_v5 = vpop.permute.xlu1 %4985  ;;  %v6214_v34 = vpop.permute.xlu0 %6213 }
 0x610   : > { %v10200_v2 = vsel %vm357_vm1, %v4984_v51, %v10196_v5 }
 0x611   : > { %6223 = vrot.lane.b32.xlu1 %v9819_v6, %s7667_s15  ;;  %6225 = vrot.lane.b32.xlu0 %v9816_v32, %s7667_s15 }
 0x613   : > { %v10206_v53 = vpop.permute.xlu1 %5185  ;;  %v6419_v4 = vpop.permute.xlu0 %6418 }
 0x614   : > { %v10210_v61 = vsel %vm563_vm3, %v5184_v28, %v10206_v53 }
 0x615   : > { %6617 = vrot.lane.b32.xlu1 %v9793_v20, %s7669_s17  ;;  %6619 = vrot.lane.b32.xlu0 %v9790_v0, %s7669_s17 }
 0x617   : > { %v10216_v12 = vpop.permute.xlu1 %5387  ;;  %v10218_v51 = vpop.permute.xlu0 %4993 }
 0x618   : > { %v10222_v24 = vsel %vm772_vm4, %v5386_v27, %v10216_v12 }
 0x619   : > { %6428 = vrot.lane.b32.xlu1 %v9819_v6, %s7668_s16  ;;  %6430 = vrot.lane.b32.xlu0 %v9816_v32, %s7668_s16 }
 0x61b   : > { %v10228_v28 = vpop.permute.xlu1 %5592  ;;  %v10230_v20 = vpop.permute.xlu0 %5195 }
 0x61c   : > { %10970 = vst [vmem:[#allocation16_spill] sm:$0xff] %v10228_v28  ;;  %v10234_v0 = vsel %vm993_vm5, %v5591_v21, %v10228_v28 }
 0x61d   : > { %10971 = vst [vmem:[#allocation34_spill] sm:$0xff] %v10234_v0  ;;  %6615 = vrot.lane.b32.xlu1 %v9796_v45, %s7669_s17  ;;  %6637 = vrot.lane.b32.xlu0 %v9836_v44, %s7669_s17 }
 0x61f   : > { %v10240_v27 = vpop.permute.xlu1 %5797  ;;  %v10242_v63 = vpop.permute.xlu0 %5397 }
 0x620   : > { %10972 = vst [vmem:[#allocation5_spill] sm:$0xff] %v10240_v27  ;;  %v10246_v38 = vsel %vm1214_vm6, %v5796_v25, %v10240_v27 }
 0x621   : > { %10973 = vst [vmem:[#allocation39_spill] sm:$0xff] %v10246_v38  ;;  %6633 = vrot.lane.b32.xlu1 %v9819_v6, %s7669_s17  ;;  %6635 = vrot.lane.b32.xlu0 %v9816_v32, %s7669_s17 }
 0x623   : > { %v6003_v21 = vpop.permute.xlu1 %6002  ;;  %v10252_v0 = vpop.permute.xlu0 %5602 }
 0x624   : > { %v10255_v45 = vsel %vm1435_vm7, %v6001_v57, %v6003_v21  ;;  %v10259_v44 = vsel %vm1435_vm7, %v6003_v21, %v10126_v55 }
 0x625   : > { %10974 = vst [vmem:[#allocation40_spill] sm:$0xff] %v10255_v45  ;;  %10975 = vst [vmem:[#allocation41_spill] sm:$0xff] %v10259_v44  ;;  %6609 = vrot.lane.b32.xlu1 %v9772_v50, %s7669_s17  ;;  %6611 = vrot.lane.b32.xlu0 %v9775_v14, %s7669_s17  ;;  %v6810_v14 = vld [vmem:[%s10725_s6] sm:$0xf] }
 0x627   : > { %v6208_v6 = vpop.permute.xlu1 %6207  ;;  %v10265_v25 = vpop.permute.xlu0 %5807 }
 0x628   : > { %10976 = vst [vmem:[#allocation42_spill] sm:$0xff] %v10265_v25  ;;  %v10268_v32 = vsel %vm1656_vm8, %v6206_v31, %v6208_v6  ;;  %v10272_v57 = vsel %vm1656_vm8, %v6208_v6, %v10142_v22 }
 0x629   : > { %10977 = vst [vmem:[#allocation43_spill] sm:$0xff] %v10268_v32  ;;  %10978 = vst [vmem:[#allocation44_spill] sm:$0xff] %v10272_v57  ;;  %6607 = vrot.lane.b32.xlu1 %v9763_v54, %s7669_s17  ;;  %6629 = vrot.lane.b32.xlu0 %v9872_v56, %s7669_s17 }
 0x62b   : > { %v10278_v50 = vpop.permute.xlu1 %6412  ;;  %v10280_v21 = vpop.permute.xlu0 %6012 }
 0x62c   : > { %10979 = vst [vmem:[#allocation45_spill] sm:$0xff] %v10280_v21 }
 0x62d   : > { %6621 = vrot.lane.b32.xlu1 %v9782_v41, %s7669_s17  ;;  %6613 = vrot.lane.b32.xlu0 %v9870_v42, %s7669_s17 }
 0x62f   : > { %v4996_v31 = vpop.permute.xlu1 %4995  ;;  %v6218_v6 = vpop.permute.xlu0 %6217 }
 0x630   : > { %v10291_v54 = vsel %vm1656_vm8, %v6218_v6, %v10150_v26 }
 0x631   : > { %10980 = vst [vmem:[#allocation46_spill] sm:$0xff] %v10291_v54  ;;  %6813 = vperm.xlu1 %7643, %v6810_v14  }
 0x633   : > { %v10293_v56 = vpop.permute.xlu1 %5193  ;;  %v10295_v32 = vpop.permute.xlu0 %6422 }
 0x637   : > { %v10297_v57 = vpop.permute.xlu1 %5395  ;;  %v5200_v41 = vpop.permute.xlu0 %5199 }
 0x63b   : > { %v10299_v22 = vpop.permute.xlu1 %5600  ;;  %v10301_v42 = vpop.permute.xlu0 %5401 }
 0x63f   : > { %v10303_v45 = vpop.permute.xlu1 %5805  ;;  %v10305_v44 = vpop.permute.xlu0 %5606 }
 0x640   : > { %10981 = vst [vmem:[#allocation47_spill] sm:$0xff] %v10303_v45 }
 0x643   : > { %v6011_v55 = vpop.permute.xlu1 %6010  ;;  %v10307_v38 = vpop.permute.xlu0 %5811 }
 0x644   : > { %10982 = vst [vmem:[#allocation48_spill] sm:$0xff] %v10307_v38  ;;  %v10310_v26 = vsel %vm1435_vm7, %v6009_v35, %v6011_v55  ;;  %v10314_v14 = vsel %vm1435_vm7, %v6011_v55, %v10280_v21 }
 0x645   : > { %10983 = vst [vmem:[#allocation49_spill] sm:$0xff] %v10310_v26  ;;  %10984 = vst [vmem:[#allocation50_spill] sm:$0xff] %v10314_v14 }
 0x647   : > { %v6216_v54 = vpop.permute.xlu1 %6215  ;;  %v10316_v27 = vpop.permute.xlu0 %6016 }
 0x648   : > { %v10319_v25 = vsel %vm1656_vm8, %v6214_v34, %v6216_v54  ;;  %v10322_v45 = vsel %vm1656_vm8, %v6216_v54, %v6218_v6 }
 0x64b   : > { %v6421_v28 = vpop.permute.xlu1 %6420  ;;  %v10324_v15 = vpop.permute.xlu0 %6221 }
 0x64c   : > { %v10327_v38 = vsel %vm10985_vm12, %v6419_v4, %v6421_v28  ;;  %v10331_v35 = vsel %vm10987_vm13, %v6421_v28, %v10295_v32  ;;  %v5015_v4 = vsel %vm357_vm1, %v4996_v31, %v10052_v11  ;;  %v5014_v28 = vsel %vm357_vm1, %v10218_v51, %v4996_v31  ;;  %vm11048_vm13 = vmmov %vm10899_vm0 }
 0x64d   : > { %10986 = vst [vmem:[#allocation51_spill] sm:$0xff] %v10327_v38  ;;  %v5011_v11 = vsel %vm357_vm1, %v10196_v5, %v10044_v16  ;;  %v7126_v5 = vld [vmem:[%s10724_s5 + $0x4] sm:$0xf] }
 0x64f   : > { %v5000_v55 = vpop.permute.xlu1 %4999  ;;  %v10333_v26 = vpop.permute.xlu0 %6426 }
 0x653   : > { %v5002_v14 = vpop.permute.xlu1 %5001  ;;  %v5004_v21 = vpop.permute.xlu0 %5003 }
 0x654   : > { %v5016_v34 = vsel %vm357_vm1, %v5000_v55, %v5002_v14  ;;  %v5018_v6 = vsel %vm357_vm1, %v5004_v21, %v9988_v9  ;;  %v5017_v54 = vsel %vm357_vm1, %v5002_v14, %v5004_v21  ;;  %v5013_v55 = vsel %vm357_vm1, %v10162_v1, %v10218_v51 }
 0x655   : > { %5058 = vmatprep.subr.mxu0 %v5017_v54  ;;  %7516 = vmatpush3.msra.mxu1 %v5018_v6  ;;  %v5012_v1 = vsel %vm357_vm1, %v10044_v16, %v9938_v52  ;;  %v5009_v51 = vsel %vm357_vm1, %v9932_v62, %v10050_v3  ;;  %v5007_v16 = vsel %vm357_vm1, %v9930_v43, %v10042_v58 }
 0x656   : > { %5059 = vmatpush1.msra.mxu0 %v5016_v34  ;;  %7517 = vmatprep.subr.mxu1 %v10957_v36  ;;  %v5215_v43 = vsel %vm563_vm3, %v10230_v20, %v10068_v37  ;;  %v5213_v14 = vsel %vm563_vm3, %v10168_v8, %v10293_v56  ;;  %v5211_v37 = vsel %vm563_vm3, %v10206_v53, %v10060_v17 }
 0x657   : > { %v6411_v38 = vpop.permute.xlu1 %6410  ;;  %5060 = vmatprep.subr.mxu0 %v5014_v28  ;;  %7518 = vmatpush3.msra.mxu1 %v5015_v4  ;;  %v10347_v9 = vpop.permute.xlu0 %6432  ;;  %v5212_v34 = vsel %vm563_vm3, %v10060_v17, %v9954_v60  ;;  %v5207_v60 = vsel %vm563_vm3, %v9946_v13, %v10058_v40  ;;  %v4956_v17 = vld [vmem:[%s10724_s5] sm:$0xf]  ;;  %v5415_v6 = vsel %vm772_vm4, %v10174_v48, %v10297_v57 }
 0x658   : > { %v10351_v21 = vsel %vm10988_vm15, %v6411_v38, %v10278_v50  ;;  %5061 = vmatpush1.msra.mxu0 %v5013_v55  ;;  %7519 = vmatprep.subr.mxu1 %v10957_v36  ;;  %v5008_v38 = vsel %vm357_vm1, %v10042_v58, %v9932_v62  ;;  %v5414_v4 = vsel %vm772_vm4, %v10076_v19, %v9970_v33  ;;  %v10989_v55 = vld [vmem:[#allocation10_spill] sm:$0xff]  ;;  %vm11035_vm1 = vmmov %vm10985_vm12 }
 0x659   : > { %5062 = vmatprep.subr.mxu0 %v5011_v11  ;;  %7520 = vmatpush3.msra.mxu1 %v5012_v1  ;;  %v5411_v48 = vsel %vm772_vm4, %v9948_v46, %v10082_v49  ;;  %v5409_v33 = vsel %vm772_vm4, %v9962_v10, %v10074_v47  ;;  %v5622_v10 = vsel %vm993_vm5, %v10252_v0, %v10100_v23  ;;  %v10990_v1 = vld [vmem:[#allocation36_spill] sm:$0xff]  ;;  %vm11044_vm2 = vmmov %vm11035_vm1 }
 0x65a   : > { %5063 = vmatpush1.msra.mxu0 %v10200_v2  ;;  %7521 = vmatprep.subr.mxu1 %v10957_v36  ;;  %v5620_v11 = vsel %vm993_vm5, %v10989_v55, %v10299_v22  ;;  %v10991_v23 = vld [vmem:[#allocation16_spill] sm:$0xff]  ;;  %vm11045_vm9 = vmmov %vm11035_vm1 }
 0x65b   : > { %v5202_v31 = vpop.permute.xlu1 %5201  ;;  %5064 = vmatprep.subr.mxu0 %v5008_v38  ;;  %7522 = vmatpush3.msra.mxu1 %v5009_v51  ;;  %v5204_v52 = vpop.permute.xlu0 %5203  ;;  %v5618_v51 = vsel %vm993_vm5, %v10991_v23, %v10990_v1  ;;  %v10992_v38 = vld [vmem:[#allocation8_spill] sm:$0xff]  ;;  %vm11047_vm12 = vmmov %vm10899_vm0 }
 0x65c   : > { %v5216_v3 = vsel %vm563_vm3, %v5200_v41, %v5202_v31  ;;  %v5218_v2 = vsel %vm563_vm3, %v5204_v52, %v9996_v39  ;;  %5065 = vmatpush1.msra.mxu0 %v5007_v16  ;;  %7526 = vmatprep.subr.mxu1 %v10957_v36  ;;  %v5217_v62 = vsel %vm563_vm3, %v5202_v31, %v5204_v52  ;;  %v10994_v31 = vld [vmem:[#allocation6_spill] sm:$0xff]  ;;  %vm11049_vm15 = vmmov %vm10899_vm0 }
 0x65d   : > { %7524 = vmatmul.mubr.msk.f32.vlgmr.msra.gmra.mxu1 %vm2408_vm14, %v7126_v5  ;;  %5258 = vmatprep.subr.mxu0 %v5217_v62  ;;  %v5214_v39 = vsel %vm563_vm3, %v10293_v56, %v10230_v20  ;;  %v5209_v20 = vsel %vm563_vm3, %v9940_v59, %v10066_v7  ;;  %v5208_v56 = vsel %vm563_vm3, %v10058_v40, %v9940_v59  ;;  %v10995_v16 = vld [vmem:[#allocation34_spill] sm:$0xff]  ;;  %v7134_v62 = vld [vmem:[%s10724_s5 + $0xc] sm:$0xf]  ;;  %vm11036_vm3 = vmmov %vm11035_vm1 }
 0x65e   : > { %7527 = vmatpush3.msra.mxu1 %v5218_v2  ;;  %7127 = vmatmul.mubr.msk.f32.vlgmr.msra.gmra.mxu0 %vm2408_vm14, %v7126_v5  ;;  %v5619_v5 = vsel %vm993_vm5, %v10990_v1, %v10992_v38  ;;  %v11012_v1 = vld [vmem:[#allocation18_spill] sm:$0xff] }
 0x65f   : > { %v10384_v58 = vpop.permute.xlu1 %6404  ;;  %5259 = vmatpush1.msra.mxu0 %v5216_v3  ;;  %7528 = vmatprep.subr.mxu1 %v10957_v36  ;;  %v10390_v41 = vpop.permute.xlu0 %6406  ;;  %v10996_v3 = vld [vmem:[#allocation25_spill] sm:$0xff] }
 0x660   : > { %5260 = vmatprep.subr.mxu0 %v5214_v39  ;;  %7529 = vmatpush3.msra.mxu1 %v5215_v43  ;;  %v5615_v2 = vsel %vm993_vm5, %v10996_v3, %v10994_v31  ;;  %v10997_v39 = vld [vmem:[#allocation26_spill] sm:$0xff] }
 0x661   : > { %5261 = vmatpush1.msra.mxu0 %v5213_v14  ;;  %7530 = vmatprep.subr.mxu1 %v10957_v36  ;;  %v5614_v14 = vsel %vm993_vm5, %v10997_v39, %v10996_v3  ;;  %v11015_v3 = vld [vmem:[#allocation50_spill] sm:$0xff] }
 0x662   : > { %5262 = vmatprep.subr.mxu0 %v5211_v37  ;;  %7531 = vmatpush3.msra.mxu1 %v5212_v34  ;;  %v10998_v37 = vld [vmem:[#allocation17_spill] sm:$0xff] }
 0x663   : > { %v5404_v8 = vpop.permute.xlu1 %5403  ;;  %5263 = vmatpush1.msra.mxu0 %v10210_v61  ;;  %7532 = vmatprep.subr.mxu1 %v10957_v36  ;;  %v5406_v53 = vpop.permute.xlu0 %5405 }
 0x664   : > { %5264 = vmatprep.subr.mxu0 %v5208_v56  ;;  %7533 = vmatpush3.msra.mxu1 %v5209_v20  ;;  %v5419_v7 = vsel %vm772_vm4, %v5404_v8, %v5406_v53  ;;  %v5420_v61 = vsel %vm772_vm4, %v5406_v53, %v10004_v30  ;;  %v5418_v59 = vsel %vm772_vm4, %v10301_v42, %v5404_v8  ;;  %v10999_v8 = vld [vmem:[#allocation48_spill] sm:$0xff] }
 0x665   : > { %5265 = vmatpush1.msra.mxu0 %v5207_v60  ;;  %7534 = vmatprep.mubr.msk.f32.mxu1 %vm7672_vm10, %v10957_v36  ;;  %v5417_v30 = vsel %vm772_vm4, %v10242_v63, %v10084_v29  ;;  %v5416_v42 = vsel %vm772_vm4, %v10297_v57, %v10242_v63  ;;  %v5413_v29 = vsel %vm772_vm4, %v10216_v12, %v10076_v19  ;;  %v7131_v19 = vld [vmem:[%s10724_s5 + $0x8] sm:$0xf] }
 0x666   : > { %7537 = vmatprep.subr.mxu1 %v10957_v36  ;;  %5298 = vmatprep.mubr.f32.mxu0 %v10957_v36  ;;  %v5410_v63 = vsel %vm772_vm4, %v10074_v47, %v9948_v46  ;;  %v5621_v47 = vsel %vm993_vm5, %v10299_v22, %v10252_v0  ;;  %v10993_v0 = vld [vmem:[#allocation37_spill] sm:$0xff]  ;;  %vm11037_vm4 = vmmov %vm11035_vm1 }
 0x667   : > { %v10425_v13 = vpop.permute.xlu1 %6402  ;;  %7535 = vmatmul.mubr.msk.f32.vlgmr.msra.gmra.mxu1 %vm2408_vm14, %v4956_v17  ;;  %5460 = vmatprep.subr.mxu0 %v5419_v7  ;;  %v10428_v40 = vpop.permute.xlu0 %6424  ;;  %v5616_v52 = vsel %vm993_vm5, %v10994_v31, %v10993_v0  ;;  %v11001_v7 = vld [vmem:[#allocation42_spill] sm:$0xff]  ;;  %v11013_v0 = vld [vmem:[#allocation21_spill] sm:$0xff] }
 0x668   : > { %7538 = vmatpush3.msra.mxu1 %v5420_v61  ;;  %7129 = vmatmul.mubr.msk.f32.vlgmr.msra.gmra.mxu0 %vm2408_vm14, %v4956_v17  ;;  %v11000_v17 = vld [vmem:[#allocation20_spill] sm:$0xff]  ;;  %v11014_v31 = vld [vmem:[#allocation45_spill] sm:$0xff] }
 0x669   : > { %5461 = vmatpush1.msra.mxu0 %v5418_v59  ;;  %7539 = vmatprep.subr.mxu1 %v10957_v36  ;;  %v5827_v61 = vsel %vm1214_vm6, %v11001_v7, %v11000_v17  ;;  %v11002_v59 = vld [vmem:[#allocation47_spill] sm:$0xff] }
 0x66a   : > { %5462 = vmatprep.subr.mxu0 %v5416_v42  ;;  %7540 = vmatpush3.msra.mxu1 %v5417_v30  ;;  %v5826_v30 = vsel %vm1214_vm6, %v11002_v59, %v11001_v7  ;;  %v11003_v42 = vld [vmem:[#allocation27_spill] sm:$0xff]  ;;  %v7140_v7 = vld [vmem:[%s10724_s5 + $0x14] sm:$0xf] }
 0x66b   : > { %v5609_v54 = vpop.permute.xlu1 %5608  ;;  %5463 = vmatpush1.msra.mxu0 %v5415_v6  ;;  %7541 = vmatprep.subr.mxu1 %v10957_v36  ;;  %v5611_v28 = vpop.permute.xlu0 %5610  ;;  %v5825_v6 = vsel %vm1214_vm6, %v11003_v42, %v11002_v59  ;;  %v11024_v59 = vld [vmem:[#allocation32_spill] sm:$0xff]  ;;  %v11025_v42 = vld [vmem:[#allocation35_spill] sm:$0xff] }
 0x66c   : > { %5464 = vmatprep.subr.mxu0 %v5413_v29  ;;  %7542 = vmatpush3.msra.mxu1 %v5414_v4  ;;  %v5625_v49 = vsel %vm993_vm5, %v5611_v28, %v10012_v18  ;;  %v5624_v46 = vsel %vm993_vm5, %v5609_v54, %v5611_v28  ;;  %v5623_v57 = vsel %vm993_vm5, %v10305_v44, %v5609_v54  ;;  %v11004_v29 = vld [vmem:[#allocation4_spill] sm:$0xff]  ;;  %v11005_v4 = vld [vmem:[#allocation5_spill] sm:$0xff]  ;;  %vm11038_vm5 = vmmov %vm11035_vm1 }
 0x66d   : > { %5465 = vmatpush1.msra.mxu0 %v10222_v24  ;;  %7543 = vmatprep.subr.mxu1 %v10957_v36  ;;  %v5823_v28 = vsel %vm1214_vm6, %v11005_v4, %v11004_v29 }
 0x66e   : > { %5466 = vmatprep.subr.mxu0 %v5410_v63  ;;  %7544 = vmatpush3.msra.mxu1 %v5411_v48  ;;  %v11006_v48 = vld [vmem:[#allocation29_spill] sm:$0xff] }
 0x66f   : > { %v10462_v12 = vpop.permute.xlu1 %6416  ;;  %5467 = vmatpush1.msra.mxu0 %v5409_v33  ;;  %5500 = vmatprep.mubr.f32.mxu0 %v10957_v36  ;;  %v10468_v24 = vpop.permute.xlu0 %6631  ;;  %v5824_v63 = vsel %vm1214_vm6, %v11004_v29, %v11006_v48 }
 0x670   : > { %7545 = vmatprep.mubr.msk.f32.mxu1 %vm7672_vm10, %v10957_v36  ;;  %7548 = vmatprep.subr.mxu1 %v10957_v36 }
 0x671   : > { %7132 = vmatmul.mubr.msk.f32.vlgmr.msra.gmra.mxu0 %vm2408_vm14, %v7131_v19  ;;  %7546 = vmatmul.mubr.msk.f32.vlgmr.msra.gmra.mxu1 %vm2408_vm14, %v7131_v19  ;;  %v11007_v19 = vld [vmem:[#allocation30_spill] sm:$0xff] }
 0x672   : > { %5665 = vmatprep.subr.mxu0 %v5624_v46  ;;  %7549 = vmatpush3.msra.mxu1 %v5625_v49  ;;  %v11008_v49 = vld [vmem:[#allocation14_spill] sm:$0xff] }
 0x673   : > { %v5814_v18 = vpop.permute.xlu1 %5813  ;;  %5666 = vmatpush1.msra.mxu0 %v5623_v57  ;;  %7550 = vmatprep.subr.mxu1 %v10957_v36  ;;  %v5816_v44 = vpop.permute.xlu0 %5815  ;;  %v5821_v46 = vsel %vm1214_vm6, %v11008_v49, %v11007_v19  ;;  %v11009_v57 = vld [vmem:[#allocation39_spill] sm:$0xff]  ;;  %v11028_v19 = vld [vmem:[#allocation28_spill] sm:$0xff] }
 0x674   : > { %5667 = vmatprep.subr.mxu0 %v5621_v47  ;;  %7551 = vmatpush3.msra.mxu1 %v5622_v10  ;;  %v5830_v34 = vsel %vm1214_vm6, %v5816_v44, %v10998_v37  ;;  %v5829_v20 = vsel %vm1214_vm6, %v5814_v18, %v5816_v44  ;;  %v5828_v56 = vsel %vm1214_vm6, %v10999_v8, %v5814_v18  ;;  %v11010_v10 = vld [vmem:[#allocation38_spill] sm:$0xff]  ;;  %v11011_v44 = vld [vmem:[#allocation23_spill] sm:$0xff]  ;;  %v11019_v37 = vld [vmem:[#allocation41_spill] sm:$0xff] }
 0x675   : > { %5668 = vmatpush1.msra.mxu0 %v5620_v11  ;;  %7552 = vmatprep.subr.mxu1 %v10957_v36  ;;  %v5820_v18 = vsel %vm1214_vm6, %v11010_v10, %v11008_v49  ;;  %v7137_v47 = vld [vmem:[%s10724_s5 + $0x10] sm:$0xf]  ;;  %v5819_v55 = vsel %vm1214_vm6, %v11011_v44, %v11010_v10  ;;  %v11030_v10 = vld [vmem:[#allocation31_spill] sm:$0xff]  ;;  %vm11040_vm6 = vmmov %vm11035_vm1 }
 0x676   : > { %5669 = vmatprep.subr.mxu0 %v5618_v51  ;;  %7553 = vmatpush3.msra.mxu1 %v5619_v5  ;;  %v11032_v44 = vld [vmem:[#allocation43_spill] sm:$0xff] }
 0x677   : > { %v10497_v22 = vpop.permute.xlu1 %6625  ;;  %5670 = vmatpush1.msra.mxu0 %v10995_v16  ;;  %7554 = vmatprep.subr.mxu1 %v10957_v36  ;;  %v10507_v43 = vpop.permute.xlu0 %6627 }
 0x678   : > { %5671 = vmatprep.subr.mxu0 %v5615_v2  ;;  %7555 = vmatpush3.msra.mxu1 %v5616_v52  ;;  %v6032_v52 = vsel %vm1435_vm7, %v11014_v31, %v11013_v0  ;;  %v11016_v2 = vld [vmem:[#allocation15_spill] sm:$0xff] }
 0x679   : > { %7556 = vmatprep.mubr.msk.f32.mxu1 %vm7672_vm10, %v10957_v36  ;;  %5672 = vmatpush1.msra.mxu0 %v5614_v14  ;;  %v11018_v14 = vld [vmem:[#allocation49_spill] sm:$0xff] }
 0x67a   : > { %5705 = vmatprep.mubr.f32.mxu0 %v10957_v36  ;;  %7557 = vmatmul.mubr.msk.f32.vlgmr.msra.gmra.mxu1 %vm2408_vm14, %v7134_v62 }
 0x67b   : > { %v6019_v53 = vpop.permute.xlu1 %6018  ;;  %7559 = vmatprep.subr.mxu1 %v10957_v36  ;;  %7135 = vmatmul.mubr.msk.f32.vlgmr.msra.gmra.mxu0 %vm2408_vm14, %v7134_v62  ;;  %v6021_v60 = vpop.permute.xlu0 %6020  ;;  %v11017_v62 = vld [vmem:[#allocation7_spill] sm:$0xff] }
 0x67c   : > { %5870 = vmatprep.subr.mxu0 %v5829_v20  ;;  %7560 = vmatpush3.msra.mxu1 %v5830_v34  ;;  %v6035_v23 = vsel %vm1435_vm7, %v6021_v60, %v11012_v1  ;;  %v6034_v51 = vsel %vm1435_vm7, %v6019_v53, %v6021_v60  ;;  %v6033_v5 = vsel %vm1435_vm7, %v10316_v27, %v6019_v53  ;;  %v11020_v34 = vld [vmem:[#allocation24_spill] sm:$0xff]  ;;  %v11021_v20 = vld [vmem:[#allocation11_spill] sm:$0xff]  ;;  %v11023_v60 = vld [vmem:[#allocation9_spill] sm:$0xff] }
 0x67d   : > { %5871 = vmatpush1.msra.mxu0 %v5828_v56  ;;  %7561 = vmatprep.subr.mxu1 %v10957_v36  ;;  %v6029_v39 = vsel %vm1435_vm7, %v11017_v62, %v11016_v2  ;;  %v6026_v8 = vsel %vm1435_vm7, %v11021_v20, %v11020_v34  ;;  %v11022_v56 = vld [vmem:[#allocation40_spill] sm:$0xff]  ;;  %v6025_v17 = vsel %vm1435_vm7, %v11023_v60, %v11021_v20  ;;  %v11034_v1 = vld [vmem:[#allocation33_spill] sm:$0xff] }
 0x67e   : > { %5872 = vmatprep.subr.mxu0 %v5826_v30  ;;  %7562 = vmatpush3.msra.mxu1 %v5827_v61  ;;  %v6024_v30 = vsel %vm1435_vm7, %v11024_v59, %v11023_v60  ;;  %vm11042_vm7 = vmmov %vm11035_vm1 }
 0x67f   : > { %v10533_v54 = vpop.permute.xlu1 %6408  ;;  %5873 = vmatpush1.msra.mxu0 %v5825_v6  ;;  %7563 = vmatprep.subr.mxu1 %v10957_v36  ;;  %v10542_v33 = vpop.permute.xlu0 %6623 }
 0x680   : > { %5874 = vmatprep.subr.mxu0 %v5823_v28  ;;  %7564 = vmatpush3.msra.mxu1 %v5824_v63  ;;  %v11026_v63 = vld [vmem:[#allocation46_spill] sm:$0xff] }
 0x681   : > { %5875 = vmatpush1.msra.mxu0 %v11009_v57  ;;  %7565 = vmatprep.subr.mxu1 %v10957_v36  ;;  %v11029_v57 = vld [vmem:[#allocation44_spill] sm:$0xff] }
 0x682   : > { %5876 = vmatprep.subr.mxu0 %v5820_v18  ;;  %7566 = vmatpush3.msra.mxu1 %v5821_v46  ;;  %v11031_v18 = vld [vmem:[#allocation12_spill] sm:$0xff] }
 0x683   : > { %v6224_v11 = vpop.permute.xlu1 %6223  ;;  %7567 = vmatprep.mubr.msk.f32.mxu1 %vm7672_vm10, %v10957_v36  ;;  %5877 = vmatpush1.msra.mxu0 %v5819_v55  ;;  %v6226_v38 = vpop.permute.xlu0 %6225 }
 0x684   : > { %5910 = vmatprep.mubr.f32.mxu0 %v10957_v36  ;;  %7568 = vmatmul.mubr.msk.f32.vlgmr.msra.gmra.mxu1 %vm2408_vm14, %v7137_v47  ;;  %v6240_v6 = vsel %vm1656_vm8, %v6226_v38, %v11025_v42  ;;  %v6239_v29 = vsel %vm1656_vm8, %v6224_v11, %v6226_v38  ;;  %v6238_v4 = vsel %vm1656_vm8, %v10324_v15, %v6224_v11  ;;  %v11027_v15 = vld [vmem:[#allocation19_spill] sm:$0xff] }
 0x685   : > { %7570 = vmatprep.subr.mxu1 %v10957_v36  ;;  %7138 = vmatmul.mubr.msk.f32.vlgmr.msra.gmra.mxu0 %vm2408_vm14, %v7137_v47  ;;  %v6234_v49 = vsel %vm1656_vm8, %v11028_v19, %v11027_v15  ;;  %v6231_v47 = vsel %vm1656_vm8, %v11031_v18, %v11030_v10 }
 0x686   : > { %6075 = vmatprep.subr.mxu0 %v6034_v51  ;;  %7571 = vmatpush3.msra.mxu1 %v6035_v23 }
 0x687   : > { %6076 = vmatpush1.msra.mxu0 %v6033_v5  ;;  %7572 = vmatprep.subr.mxu1 %v10957_v36  ;;  %v10573_v16 = vpop.permute.xlu1 %6617  ;;  %v10575_v27 = vpop.permute.xlu0 %6619 }
 0x688   : > { %6077 = vmatprep.subr.mxu0 %v11015_v3  ;;  %7573 = vmatpush3.msra.mxu1 %v6032_v52  ;;  %v11041_v3 = vld [vmem:[#allocation51_spill] sm:$0xff] }
 0x689   : > { %6078 = vmatpush1.msra.mxu0 %v11018_v14  ;;  %7574 = vmatprep.subr.mxu1 %v10957_v36 }
 0x68a   : > { %6079 = vmatprep.subr.mxu0 %v11019_v37  ;;  %7575 = vmatpush3.msra.mxu1 %v6029_v39  ;;  %v6646_v39 = vsel %vm11049_vm15, %v10497_v22, %v10507_v43 }
 0x68b   : > { %6080 = vmatpush1.msra.mxu0 %v11022_v56  ;;  %7576 = vmatprep.subr.mxu1 %v10957_v36  ;;  %v6429_v53 = vpop.permute.xlu1 %6428  ;;  %v6431_v61 = vpop.permute.xlu0 %6430 }
 0x68c   : > { %6081 = vmatprep.subr.mxu0 %v6025_v17  ;;  %7577 = vmatpush3.msra.mxu1 %v6026_v8  ;;  %v6445_v51 = vsel %vm11035_vm1, %v6431_v61, %v10347_v9  ;;  %v6444_v38 = vsel %vm11036_vm3, %v6429_v53, %v6431_v61  ;;  %v6443_v0 = vsel %vm11037_vm4, %v10333_v26, %v6429_v53  ;;  %v11039_v26 = vld [vmem:[#allocation13_spill] sm:$0xff]  ;;  %vm11051_vm3 = vmmov %vm10899_vm0 }
 0x68d   : > { %7578 = vmatprep.mubr.msk.f32.mxu1 %vm7672_vm10, %v10957_v36  ;;  %6082 = vmatpush1.msra.mxu0 %v6024_v30  ;;  %v6442_v9 = vsel %vm11038_vm5, %v10295_v32, %v10428_v40  ;;  %v6439_v52 = vsel %vm11040_vm6, %v11039_v26, %v10462_v12  ;;  %v6438_v2 = vsel %vm11042_vm7, %v10278_v50, %v11039_v26  ;;  %v7146_v12 = vld [vmem:[%s10724_s5 + $0x1c] sm:$0xf]  ;;  %vm11052_vm4 = vmmov %vm10899_vm0 }
 0x68e   : > { %6115 = vmatprep.mubr.f32.mxu0 %v10957_v36  ;;  %7579 = vmatmul.mubr.msk.f32.vlgmr.msra.gmra.mxu1 %vm2408_vm14, %v7140_v7  ;;  %v6435_v40 = vsel %vm11044_vm2, %v10384_v58, %v10390_v41  ;;  %v6434_v50 = vsel %vm11045_vm9, %v10425_v13, %v10384_v58  ;;  %v6643_v37 = vsel %vm11052_vm4, %v10573_v16, %v10575_v27  ;;  %vm11053_vm5 = vmmov %vm10899_vm0 }
 0x68f   : > { %7581 = vmatprep.subr.mxu1 %v10957_v36  ;;  %7141 = vmatmul.mubr.msk.f32.vlgmr.msra.gmra.mxu0 %vm2408_vm14, %v7140_v7  ;;  %v10609_v28 = vpop.permute.xlu1 %6615  ;;  %v6638_v48 = vpop.permute.xlu0 %6637  ;;  %vm11054_vm6 = vmmov %vm10899_vm0 }
 0x690   : > { %6280 = vmatprep.subr.mxu0 %v6239_v29  ;;  %7582 = vmatpush3.msra.mxu1 %v6240_v6  ;;  %vm11055_vm7 = vmmov %vm10899_vm0 }
 0x691   : > { %6281 = vmatpush1.msra.mxu0 %v6238_v4  ;;  %7583 = vmatprep.subr.mxu1 %v10957_v36 }
 0x692   : > { %6282 = vmatprep.subr.mxu0 %v10322_v45  ;;  %7584 = vmatpush3.msra.mxu1 %v11026_v63  ;;  %v11033_v45 = vld [vmem:[#allocation22_spill] sm:$0xff] }
 0x693   : > { %6283 = vmatpush1.msra.mxu0 %v10319_v25  ;;  %7585 = vmatprep.subr.mxu1 %v10957_v36  ;;  %v6634_v46 = vpop.permute.xlu1 %6633  ;;  %v6230_v55 = vsel %vm1656_vm8, %v11033_v45, %v11031_v18  ;;  %v7143_v25 = vld [vmem:[%s10724_s5 + $0x18] sm:$0xf]  ;;  %v6636_v11 = vpop.permute.xlu0 %6635  ;;  %v6229_v23 = vsel %vm1656_vm8, %v11034_v1, %v11033_v45  ;;  %vm11043_vm8 = vmmov %vm11035_vm1 }
 0x694   : > { %6284 = vmatprep.subr.mxu0 %v11029_v57  ;;  %7586 = vmatpush3.msra.mxu1 %v6234_v49  ;;  %vm11050_vm1 = vmmov %vm10899_vm0 }
 0x695   : > { %6285 = vmatpush1.msra.mxu0 %v11032_v44  ;;  %7587 = vmatprep.subr.mxu1 %v10957_v36 }
 0x696   : > { %6286 = vmatprep.subr.mxu0 %v6230_v55  ;;  %7588 = vmatpush3.msra.mxu1 %v6231_v47 }
 0x697   : > { %7589 = vmatprep.mubr.msk.f32.mxu1 %vm7672_vm10, %v10957_v36  ;;  %6287 = vmatpush1.msra.mxu0 %v6229_v23  ;;  %v6610_v5 = vpop.permute.xlu1 %6609  ;;  %v6612_v31 = vpop.permute.xlu0 %6611 }
 0x698   : > { %6320 = vmatprep.mubr.f32.mxu0 %v10957_v36  ;;  %7590 = vmatmul.mubr.msk.f32.vlgmr.msra.gmra.mxu1 %vm2408_vm14, %v7143_v25 }
 0x699   : > { %7592 = vmatprep.subr.mxu1 %v10957_v36  ;;  %7144 = vmatmul.mubr.msk.f32.vlgmr.msra.gmra.mxu0 %vm2408_vm14, %v7143_v25 }
 0x69a   : > { %6485 = vmatprep.subr.mxu0 %v6444_v38  ;;  %7593 = vmatpush3.msra.mxu1 %v6445_v51 }
 0x69b   : > { %6486 = vmatpush1.msra.mxu0 %v6443_v0  ;;  %7594 = vmatprep.subr.mxu1 %v10957_v36  ;;  %v6608_v32 = vpop.permute.xlu1 %6607  ;;  %v6630_v62 = vpop.permute.xlu0 %6629 }
 0x69c   : > { %6487 = vmatprep.subr.mxu0 %v10331_v35  ;;  %7595 = vmatpush3.msra.mxu1 %v6442_v9  ;;  %v6436_v35 = vsel %vm11043_vm8, %v10390_v41, %v10533_v54  ;;  %v6649_v54 = vsel %vm10899_vm0, %v6634_v46, %v6636_v11  ;;  %v6648_v41 = vsel %vm11047_vm12, %v10468_v24, %v6634_v46  ;;  %vm11056_vm8 = vmmov %vm10899_vm0 }
 0x69d   : > { %6488 = vmatpush1.msra.mxu0 %v11041_v3  ;;  %7596 = vmatprep.subr.mxu1 %v10957_v36  ;;  %v6647_v13 = vsel %vm11048_vm13, %v10507_v43, %v6630_v62  ;;  %v6645_v24 = vsel %vm11050_vm1, %v10542_v33, %v10497_v22  ;;  %v6642_v43 = vsel %vm11053_vm5, %v10609_v28, %v10573_v16  ;;  %v7149_v33 = vld [vmem:[%s10724_s5 + $0x20] sm:$0xf] }
 0x69e   : > { %6489 = vmatprep.subr.mxu0 %v6438_v2  ;;  %7597 = vmatpush3.msra.mxu1 %v6439_v52  ;;  %v6639_v20 = vsel %vm11054_vm6, %v6608_v32, %v6610_v5  ;;  %v6640_v22 = vsel %vm11055_vm7, %v6610_v5, %v6612_v31 }
 0x69f   : > { %6490 = vmatpush1.msra.mxu0 %v10351_v21  ;;  %7598 = vmatprep.subr.mxu1 %v10957_v36  ;;  %v6650_v21 = vsel %vm11046_vm11, %v6636_v11, %v6638_v48  ;;  %v6622_v58 = vpop.permute.xlu1 %6621  ;;  %v6614_v34 = vpop.permute.xlu0 %6613 }
 0x6a0   : > { %6491 = vmatprep.subr.mxu0 %v6435_v40  ;;  %7599 = vmatpush3.msra.mxu1 %v6436_v35  ;;  %v6644_v14 = vsel %vm11051_vm3, %v10575_v27, %v6622_v58  ;;  %v6641_v27 = vsel %vm11056_vm8, %v6612_v31, %v6614_v34 }
 0x6a1   : > { %7600 = vmatprep.mubr.msk.f32.mxu1 %vm7672_vm10, %v10957_v36  ;;  %6492 = vmatpush1.msra.mxu0 %v6434_v50 }
 0x6a2   : > { %6525 = vmatprep.mubr.f32.mxu0 %v10957_v36  ;;  %7601 = vmatmul.mubr.msk.f32.vlgmr.msra.gmra.mxu1 %vm2408_vm14, %v7146_v12 }
 0x6a3   : > { %7603 = vmatprep.subr.mxu1 %v10957_v36  ;;  %7147 = vmatmul.mubr.msk.f32.vlgmr.msra.gmra.mxu0 %vm2408_vm14, %v7146_v12 }
 0x6a4   : > { %6690 = vmatprep.subr.mxu0 %v6649_v54  ;;  %7604 = vmatpush3.msra.mxu1 %v6650_v21 }
 0x6a5   : > { %6691 = vmatpush1.msra.mxu0 %v6648_v41  ;;  %6730 = vmatprep.mubr.f32.mxu0 %v10957_v36 }
 0x6a6   : > { %6692 = vmatprep.subr.mxu0 %v6646_v39  ;;  %7605 = vmatprep.subr.mxu1 %v10957_v36 }
 0x6a7   : > { %6693 = vmatpush1.msra.mxu0 %v6645_v24  ;;  %7606 = vmatpush3.msra.mxu1 %v6647_v13 }
 0x6a8   : > { %6694 = vmatprep.subr.mxu0 %v6643_v37  ;;  %7607 = vmatprep.subr.mxu1 %v10957_v36 }
 0x6a9   : > { %6695 = vmatpush1.msra.mxu0 %v6642_v43  ;;  %7608 = vmatpush3.msra.mxu1 %v6644_v14 }
 0x6aa   : > { %6696 = vmatprep.subr.mxu0 %v6640_v22  ;;  %7609 = vmatprep.subr.mxu1 %v10957_v36 }
 0x6ab   : > { %6697 = vmatpush1.msra.mxu0 %v6639_v20  ;;  %7610 = vmatpush3.msra.mxu1 %v6641_v27 }
 0x6ac   : > { %7150 = vmatmul.mubr.msk.f32.vlgmr.msra.gmra.mxu0 %vm2408_vm14, %v7149_v33  ;;  %7611 = vmatprep.mubr.msk.f32.mxu1 %vm7672_vm10, %v10957_v36  ;;  %v6814_v14 = vpop.permute.xlu1 %6813 }
 0x6ad   : > { %7612 = vmatmul.mubr.msk.f32.vlgmr.msra.gmra.mxu1 %vm2408_vm14, %v7149_v33 }
 0x71d   : > { %v5171_v16 = vpop.f32.mrf.mxu1 }
 0x71e   : > { %v5100_v61 = vpop.f32.mrf.mxu0 }
 0x71f   : > { %v7525_v8 = vpop.f32.mrf.mxu1 }
 0x720   : > { %v5102_v30 = vpop.f32.mrf.mxu0 }
 0x727   : > { %v5371_v56 = vpop.f32.mrf.mxu1 }
 0x728   : > { %v5300_v42 = vpop.f32.mrf.mxu0  ;;  %v5372_v45 = vadd.f32 %v5371_v56, %v5171_v16 }
 0x729   : > { %v7536_v53 = vpop.f32.mrf.mxu1  ;;  %v5301_v44 = vadd.f32 %v5300_v42, %v5100_v61 }
 0x72a   : > { %v5302_v29 = vpop.f32.mrf.mxu0 }
 0x72b   : > { %v5303_v25 = vadd.f32 %v5302_v29, %v5102_v30 }
 0x731   : > { %v5573_v60 = vpop.f32.mrf.mxu1  ;;  %v5502_v28 = vpop.f32.mrf.mxu0 }
 0x732   : > { %v5577_v11 = vadd.f32 %v5502_v28, %v5301_v44  ;;  %v5579_v1 = vadd.f32 %v5573_v60, %v5372_v45 }
 0x733   : > { %v7547_v17 = vpop.f32.mrf.mxu1  ;;  %v5504_v48 = vpop.f32.mrf.mxu0 }
 0x734   : > { %v5578_v51 = vadd.f32 %v5504_v48, %v5303_v25 }
 0x73a   : > { %v5778_v7 = vpop.f32.mrf.mxu1 }
 0x73b   : > { %v5707_v63 = vpop.f32.mrf.mxu0  ;;  %v5784_v5 = vadd.f32 %v5778_v7, %v5579_v1 }
 0x73c   : > { %v7558_v59 = vpop.f32.mrf.mxu1  ;;  %v5782_v38 = vadd.f32 %v5707_v63, %v5577_v11 }
 0x73d   : > { %v5709_v19 = vpop.f32.mrf.mxu0 }
 0x73e   : > { %v5783_v31 = vadd.f32 %v5709_v19, %v5578_v51 }
 0x744   : > { %v5983_v6 = vpop.f32.mrf.mxu1 }
 0x745   : > { %v5912_v49 = vpop.f32.mrf.mxu0  ;;  %v5989_v52 = vadd.f32 %v5983_v6, %v5784_v5 }
 0x746   : > { %v7569_v4 = vpop.f32.mrf.mxu1  ;;  %v5987_v26 = vadd.f32 %v5912_v49, %v5782_v38 }
 0x747   : > { %v5914_v46 = vpop.f32.mrf.mxu0 }
 0x748   : > { %v5988_v2 = vadd.f32 %v5914_v46, %v5783_v31 }
 0x74e   : > { %v6188_v36 = vpop.f32.mrf.mxu1 }
 0x74f   : > { %v6117_v10 = vpop.f32.mrf.mxu0  ;;  %v6194_v35 = vadd.f32 %v6188_v36, %v5989_v52 }
 0x750   : > { %v7580_v15 = vpop.f32.mrf.mxu1  ;;  %v6192_v32 = vadd.f32 %v6117_v10, %v5987_v26 }
 0x751   : > { %v6119_v47 = vpop.f32.mrf.mxu0 }
 0x752   : > { %v6193_v40 = vadd.f32 %v6119_v47, %v5988_v2 }
 0x758   : > { %v6393_v57 = vpop.f32.mrf.mxu1 }
 0x759   : > { %v6322_v55 = vpop.f32.mrf.mxu0  ;;  %v6399_v50 = vadd.f32 %v6393_v57, %v6194_v35 }
 0x75a   : > { %v7591_v18 = vpop.f32.mrf.mxu1  ;;  %v6397_v12 = vadd.f32 %v6322_v55, %v6192_v32 }
 0x75b   : > { %v6324_v0 = vpop.f32.mrf.mxu0 }
 0x75c   : > { %v6398_v54 = vadd.f32 %v6324_v0, %v6193_v40 }
 0x762   : > { %v6598_v23 = vpop.f32.mrf.mxu1 }
 0x763   : > { %v6527_v3 = vpop.f32.mrf.mxu0  ;;  %v6604_v41 = vadd.f32 %v6598_v23, %v6399_v50 }
 0x764   : > { %v7602_v9 = vpop.f32.mrf.mxu1  ;;  %v6602_v62 = vadd.f32 %v6527_v3, %v6397_v12 }
 0x765   : > { %v6529_v21 = vpop.f32.mrf.mxu0 }
 0x766   : > { %v6603_v13 = vadd.f32 %v6529_v21, %v6398_v54 }
 0x76c   : > { %v6732_v58 = vpop.f32.mrf.mxu0 }
 0x76d   : > { %v6807_v39 = vadd.f32 %v6732_v58, %v6602_v62  ;;  %v6803_v24 = vpop.f32.mrf.mxu1 }
 0x76e   : > { %v6734_v37 = vpop.f32.mrf.mxu0  ;;  %v6809_v34 = vadd.f32 %v6803_v24, %v6604_v41 }
 0x76f   : > { %v6816_v43 = vadd.f32 %v6814_v14, %v6807_v39  ;;  %v6808_v20 = vadd.f32 %v6734_v37, %v6603_v13  ;;  %v7613_v22 = vpop.f32.mrf.mxu1 }
 0x770   : > { %v6818_v33 = vadd.f32 %v6814_v14, %v6809_v34 }
 0x771   : > { %7646 = vtanh.f32 %v6816_v43  ;;  %v6817_v27 = vadd.f32 %v6814_v14, %v6808_v20 }
 0x772   : > { %7648 = vtanh.f32 %v6818_v33 }
 0x773   : > { %7650 = vtanh.f32 %v6817_v27 }
 0x77e   : > { %v7647_v16 = vpop.eup %7646 }
 0x77f   : > { %v7649_v8 = vpop.eup %7648 }
 0x780   : > { %v7651_v56 = vpop.eup %7650  ;;  %6827 = vst [vmem:[%s278_s11 + $0x8] sm:$0xf] %v7649_v8 }
 0x781   : > { %v6824_v53 = vcombine.low %v7647_v16, %v7651_v56 }
 0x783   : > { %6826 = vst [vmem:[%s278_s11] sm:$0xff] %v6824_v53 }
 0x784 PF: > { %s17_s24 = sadd.s32 1, %s7658_s24  }
 0x785   : > { %p14_p4 = scmp.ge.s32.totalorder %s17_s24, 4  }
 0x787   :  { %16 = sbr.rel (!%p14_p4) target bundleno = 1 (0x1), region = 102 }

</bundles_post_ra>
